<compile_context>
chip_gen: v5e
topology: v5e:2x2
jax: 0.10.0
libtpu: 0.0.40
codegen_flags: <defaults>
</compile_context>

<pallas_src>
import jax
import jax.numpy as jnp
from jax import lax
from jax.experimental import pallas as pl
from jax.experimental.pallas import tpu as pltpu

# ----------------- scaled-down model dims -----------------
B, S    = 2, 8              # batch, sequence length
H       = 32                # "768" hidden size
NH      = 2                 # attention heads (stand-in encoder)
HD      = H // NH           # 16
FFN     = 4 * H             # 128
LSTM_H  = H // 2            # 16 per direction
DIRS    = 2
PACK    = 4 * DIRS * LSTM_H  # 128 packed gate lanes: gate-major [i|f|g|o], direction-minor
VOCAB   = 16                # tag vocab (fc output / argmax)
FC_PAD  = 128               # fc output lane-padded to a full vreg width
TOK_V   = 64                # token vocab for the embedding stand-in

# bias / LN-gain slab row indices (each row lane-padded to 128)
_R_EG, _R_EB, _R_BQKV, _R_BO = 0, 1, 2, 3
_R_G1, _R_BE1, _R_B1, _R_B2 = 4, 5, 6, 7
_R_G2, _R_BE2, _R_LB0, _R_LB1, _R_FCB = 8, 9, 10, 11, 12
_B_ROWS = 16

# weight slab row ranges (all offsets multiples of 8 -> tile-aligned ref slices)
_W_QKV = (0, 32)      # (H, 3H) fused q|k|v, lane-padded
_W_O   = (32, 64)     # (H, H) attention out-proj, lane-padded
_W_1   = (64, 96)     # (H, FFN)
_W_2   = (96, 224)    # (FFN, H), lane-padded
_W_IH0 = (224, 256)   # (H, PACK)
_W_HH0 = (256, 288)   # (2*LSTM_H, PACK) block-diagonal
_W_IH1 = (288, 320)
_W_HH1 = (320, 352)
_W_FC  = (352, 384)   # (H, VOCAB), lane-padded
_W_ROWS = 384


def _vmem():
    return pl.BlockSpec(memory_space=pltpu.MemorySpace.VMEM)


# ----------------- the fused Pallas kernel -----------------
def ner_fused_kernel(emb_ref, b_ref, w_ref, logits_ref):
    scale = 1.0 / (HD ** 0.5)
    bsl = b_ref[...]                                   # (16, 128) bias/gain slab, read once

    def layernorm(z, g, b):
        mu = jnp.mean(z, axis=-1, keepdims=True)
        var = jnp.mean((z - mu) ** 2, axis=-1, keepdims=True)
        return (z - mu) * lax.rsqrt(var + 1e-12) * g + b

    # ---- embedding LayerNorm (emb arrives pre-flattened to (B*S, H) batch-major rows) ----
    x0 = layernorm(emb_ref[...], bsl[_R_EG:_R_EG + 1, :H], bsl[_R_EB:_R_EB + 1, :H])

    # ---- fused QKV: one (B*S,H) @ (H,128) matmul, columns = [q | k | v | pad] ----
    qkv = (jnp.dot(x0, w_ref[_W_QKV[0]:_W_QKV[1], :], preferred_element_type=jnp.float32)
           + bsl[_R_BQKV:_R_BQKV + 1, :])
    q, k, v = qkv[:, 0:H], qkv[:, H:2 * H], qkv[:, 2 * H:3 * H]

    # ---- attention with heads folded into the einsum batch dim: (B*NH, S, HD) ----
    def fold_heads(z):                                 # (B*S, H) -> (NH*B, S, HD)
        z2 = jnp.concatenate([z[:, h * HD:(h + 1) * HD] for h in range(NH)], axis=0)
        return z2.reshape(NH * B, S, HD)

    qh, kh, vh = fold_heads(q), fold_heads(k), fold_heads(v)
    sc = jnp.einsum('bqd,bkd->bqk', qh, kh, preferred_element_type=jnp.float32) * scale
    sc = sc - jnp.max(sc, axis=-1, keepdims=True)      # ONE softmax over all (head,batch)
    ex = jnp.exp(sc)
    pr = ex / jnp.sum(ex, axis=-1, keepdims=True)      # exact divide (argmax parity)
    ctxh = jnp.einsum('bqk,bkd->bqd', pr, vh,
                      preferred_element_type=jnp.float32).reshape(NH * B * S, HD)
    ctx = jnp.concatenate([ctxh[h * B * S:(h + 1) * B * S, :] for h in range(NH)],
                          axis=-1)                     # (B*S, H), [head0 | head1] lanes

    attn = (jnp.dot(ctx, w_ref[_W_O[0]:_W_O[1], :],
                    preferred_element_type=jnp.float32)[:, :H]
            + bsl[_R_BO:_R_BO + 1, :H])
    h1 = layernorm(x0 + attn, bsl[_R_G1:_R_G1 + 1, :H], bsl[_R_BE1:_R_BE1 + 1, :H])
    # TODO(synk): tanh-approx GELU kept (stand-in encoder); HF BERT uses exact erf GELU.
    ff = jax.nn.gelu(jnp.dot(h1, w_ref[_W_1[0]:_W_1[1], :],
                             preferred_element_type=jnp.float32)
                     + bsl[_R_B1:_R_B1 + 1, :])
    ff = (jnp.dot(ff, w_ref[_W_2[0]:_W_2[1], :],
                  preferred_element_type=jnp.float32)[:, :H]
          + bsl[_R_B2:_R_B2 + 1, :H])
    enc = layernorm(h1 + ff, bsl[_R_G2:_R_G2 + 1, :H], bsl[_R_BE2:_R_BE2 + 1, :H])  # (B*S, H)

    # ---- 2-layer biLSTM, both directions packed gate-major / direction-minor (128 lanes) ----
    lane = lax.broadcasted_iota(jnp.int32, (B, PACK), 1)
    fwd_cols = (lane & LSTM_H) == 0                    # lanes with (c % 32) < 16 -> fwd gates
    out_lane = lax.broadcasted_iota(jnp.int32, (B, DIRS * LSTM_H), 1) < LSTM_H

    def bilstm_layer(x_flat, wih, whh, bias):
        # Hoisted input projection + combined bias: one (B*S, H) @ (H, 128) matmul.
        gx = jnp.dot(x_flat, wih, preferred_element_type=jnp.float32) + bias    # (B*S, PACK)

        # Per-step packed x-gates: fwd columns read time t, bwd columns read time S-1-t.
        # These depend only on gx, i.e. they are entirely off the serial h->h chain.
        def rows_at(t):                                # (B, PACK): row b = gx[b*S + t]
            return jnp.concatenate([gx[b * S + t:b * S + t + 1, :] for b in range(B)], axis=0)

        gx_sel = [jnp.where(fwd_cols, rows_at(t), rows_at(S - 1 - t)) for t in range(S)]

        h = jnp.zeros((B, DIRS * LSTM_H), jnp.float32)  # [h_fwd | h_bwd] per batch row
        c = jnp.zeros((B, DIRS * LSTM_H), jnp.float32)
        hs = []
        for t in range(S):                             # static unroll (S = 8)
            # Block-diagonal whh -> recurrent term needs no per-step slicing/concat selection.
            gates = gx_sel[t] + jnp.dot(h, whh, preferred_element_type=jnp.float32)  # (B,128)
            sg = jax.nn.sigmoid(gates)                 # full-width EUP pass, then slice
            th = jnp.tanh(gates)
            ig = sg[:, 0 * DIRS * LSTM_H:1 * DIRS * LSTM_H]   # [i_fwd | i_bwd]
            fg = sg[:, 1 * DIRS * LSTM_H:2 * DIRS * LSTM_H]
            gg = th[:, 2 * DIRS * LSTM_H:3 * DIRS * LSTM_H]
            og = sg[:, 3 * DIRS * LSTM_H:4 * DIRS * LSTM_H]
            c = fg * c + ig * gg
            h = og * jnp.tanh(c)
            hs.append(h)

        # batch-major output row b*S + s = [fwd hidden @ s | bwd hidden that consumed x_s]
        hsel = [jnp.where(out_lane, hs[s], hs[S - 1 - s]) for s in range(S)]
        return jnp.concatenate([hsel[s][b:b + 1, :] for b in range(B) for s in range(S)],
                               axis=0)                 # (B*S, 2*LSTM_H)

    l0 = bilstm_layer(enc, w_ref[_W_IH0[0]:_W_IH0[1], :], w_ref[_W_HH0[0]:_W_HH0[1], :],
                      bsl[_R_LB0:_R_LB0 + 1, :])
    l1 = bilstm_layer(l0, w_ref[_W_IH1[0]:_W_IH1[1], :], w_ref[_W_HH1[0]:_W_HH1[1], :],
                      bsl[_R_LB1:_R_LB1 + 1, :])

    # ---- fc (Linear), lane-padded to 128 -> single lane-dense (unmasked) store ----
    logits_ref[...] = (jnp.dot(l1, w_ref[_W_FC[0]:_W_FC[1], :],
                               preferred_element_type=jnp.float32)
                       + bsl[_R_FCB:_R_FCB + 1, :])


# ----------------- wrapper -----------------
def ner_head_forward(x, y, p):
    # TODO(synk): pretrained bert-base-cased weights are not loadable here; a deterministic
    # stand-in (embedding lookup + one transformer layer) replaces it.  The gather, flatten,
    # 16-lane slice and argmax stay in XLA glue; everything else is ONE fused Pallas kernel.
    # (At real bert-base scale: add a batch grid axis with dimension_semantics=("parallel",)
    #  for v7x's 2 TCs, stream weights instead of keeping them VMEM-resident, and cast matmul
    #  operands to bf16 on v6e/v7x.)
    emb = (p["tok_emb"][x] + p["pos_emb"][None, :, :]).reshape(B * S, H)
    logits_pad = pl.pallas_call(
        ner_fused_kernel,
        out_shape=jax.ShapeDtypeStruct((B * S, FC_PAD), jnp.float32),
        in_specs=[_vmem(), _vmem(), _vmem()],
        out_specs=_vmem(),
    )(emb, p["b_slab"], p["w_slab"])
    logits = logits_pad[:, :VOCAB].reshape(B, S, VOCAB)
    y_hat = jnp.argmax(logits, axis=-1)
    return logits, y, y_hat


# ----------------- deterministic parameter init (packing done once in XLA) -----------------
def init_params(key):
    ks = iter(jax.random.split(key, 32))

    def nrm(shape, scale=0.02):
        return scale * jax.random.normal(next(ks), shape, jnp.float32)

    p = {}
    p["tok_emb"] = nrm((TOK_V, H))
    p["pos_emb"] = nrm((S, H))

    # encoder stand-in weights
    wq, wk, wv, wo = nrm((H, H)), nrm((H, H)), nrm((H, H)), nrm((H, H))
    w1, w2 = nrm((H, FFN)), nrm((FFN, H))

    # LSTM: PyTorch-layout per-direction weights, packed gate-major / direction-minor.
    def pack_lstm(wih_f, whh_f, b_f, wih_b, whh_b, b_b):
        hin = wih_f.shape[1]
        wih_p = jnp.zeros((hin, PACK), jnp.float32)
        whh_p = jnp.zeros((DIRS * LSTM_H, PACK), jnp.float32)   # block-diagonal by direction
        b_p = jnp.zeros((PACK,), jnp.float32)
        for gi in range(4):                                     # PyTorch gate order: i, f, g, o
            grows = slice(gi * LSTM_H, (gi + 1) * LSTM_H)
            for d, (wih, whh, bb) in enumerate(((wih_f, whh_f, b_f), (wih_b, whh_b, b_b))):
                cols = slice(gi * DIRS * LSTM_H + d * LSTM_H,
                             gi * DIRS * LSTM_H + (d + 1) * LSTM_H)
                wih_p = wih_p.at[:, cols].set(wih[grows, :].T)
                whh_p = whh_p.at[d * LSTM_H:(d + 1) * LSTM_H, cols].set(whh[grows, :].T)
                b_p = b_p.at[cols].set(bb[grows])
        return wih_p, whh_p, b_p

    lstm = []
    for layer in range(2):
        hin = H if layer == 0 else DIRS * LSTM_H
        wih_f, whh_f = nrm((4 * LSTM_H, hin), 0.1), nrm((4 * LSTM_H, LSTM_H), 0.1)
        wih_b, whh_b = nrm((4 * LSTM_H, hin), 0.1), nrm((4 * LSTM_H, LSTM_H), 0.1)
        b_f = nrm((4 * LSTM_H,), 0.1)                           # b_ih + b_hh combined
        b_b = nrm((4 * LSTM_H,), 0.1)
        lstm.append(pack_lstm(wih_f, whh_f, b_f, wih_b, whh_b, b_b))

    fc_w = nrm((H, VOCAB))                                      # Linear(H, vocab), pre-transposed
    fc_b = nrm((VOCAB,), 0.1)

    def pad_cols(w):
        return jnp.pad(w, ((0, 0), (0, FC_PAD - w.shape[1])))

    # single weight slab: every matmul operand lane-padded to 128, stacked along sublanes
    p["w_slab"] = jnp.concatenate([
        pad_cols(jnp.concatenate([wq, wk, wv], axis=1)),        # rows   0: 32  fused QKV
        pad_cols(wo),                                           # rows  32: 64
        w1,                                                     # rows  64: 96
        pad_cols(w2),                                           # rows  96:224
        lstm[0][0],                                             # rows 224:256  wih0
        lstm[0][1],                                             # rows 256:288  whh0
        lstm[1][0],                                             # rows 288:320  wih1
        lstm[1][1],                                             # rows 320:352  whh1
        pad_cols(fc_w),                                         # rows 352:384  fc
    ], axis=0)
    assert p["w_slab"].shape == (_W_ROWS, FC_PAD)

    # single bias / LayerNorm-gain slab
    def row(v):
        v = jnp.asarray(v, jnp.float32).reshape(1, -1)
        return jnp.pad(v, ((0, 0), (0, FC_PAD - v.shape[1])))

    b_rows = [
        row(jnp.ones((H,))), row(jnp.zeros((H,))),              # emb LN gamma / beta
        row(jnp.zeros((3 * H,))),                               # fused QKV bias
        row(jnp.zeros((H,))),                                   # attn out-proj bias
        row(jnp.ones((H,))), row(jnp.zeros((H,))),              # LN1 gamma / beta
        row(jnp.zeros((FFN,))), row(jnp.zeros((H,))),           # FFN biases
        row(jnp.ones((H,))), row(jnp.zeros((H,))),              # LN2 gamma / beta
        row(lstm[0][2]), row(lstm[1][2]),                       # packed LSTM biases
        row(fc_b),                                              # fc bias
    ]
    b_rows.append(jnp.zeros((_B_ROWS - len(b_rows), FC_PAD), jnp.float32))
    p["b_slab"] = jnp.concatenate(b_rows, axis=0)
    assert p["b_slab"].shape == (_B_ROWS, FC_PAD)
    return p


if __name__ == "__main__":
    key = jax.random.PRNGKey(0)
    k_p, k_x, k_y = jax.random.split(key, 3)
    params = init_params(k_p)
    x = jax.random.randint(k_x, (B, S), 0, TOK_V, dtype=jnp.int32)   # token ids
    y = jax.random.randint(k_y, (B, S), 0, VOCAB, dtype=jnp.int32)   # labels (passed through)

    fwd = jax.jit(ner_head_forward)
    logits, y_out, y_hat = fwd(x, y, params)
    jax.block_until_ready((logits, y_out, y_hat))

    assert logits.shape == (B, S, VOCAB) and logits.dtype == jnp.float32
    assert y_out.shape == (B, S)
    assert y_hat.shape == (B, S)
    assert bool(jnp.all(jnp.isfinite(logits)))
    assert bool(jnp.all(y_hat == jnp.argmax(logits, axis=-1)))
    print("KERNEL_OK")
</pallas_src>

<mosaic_0001>
module attributes {stable_mosaic.version = 11 : i64} {
  func.func @ner_fused_kernel(%arg0: memref<16x32xf32, #tpu.memory_space<vmem>>, %arg1: memref<16x128xf32, #tpu.memory_space<vmem>>, %arg2: memref<384x128xf32, #tpu.memory_space<vmem>>, %arg3: memref<16x128xf32, #tpu.memory_space<vmem>>) attributes {dimension_semantics = [], scalar_prefetch = 0 : i64, scratch_operands = 0 : i64, tpu.core_type = #tpu.core_type<tc>} {
    %c0 = arith.constant 0 : index
    %c0_0 = arith.constant 0 : index
    %0 = vector.load %arg1[%c0, %c0_0] : memref<16x128xf32, #tpu.memory_space<vmem>>, vector<16x128xf32>
    %c0_1 = arith.constant 0 : index
    %c0_2 = arith.constant 0 : index
    %1 = vector.load %arg0[%c0_1, %c0_2] : memref<16x32xf32, #tpu.memory_space<vmem>>, vector<16x32xf32>
    %2 = vector.extract_strided_slice %0 {offsets = [0, 0], sizes = [1, 32], strides = [1, 1]} : vector<16x128xf32> to vector<1x32xf32>
    %3 = vector.extract_strided_slice %0 {offsets = [1, 0], sizes = [1, 32], strides = [1, 1]} : vector<16x128xf32> to vector<1x32xf32>
    %cst = arith.constant dense<0.000000e+00> : vector<16xf32>
    %4 = vector.multi_reduction <add>, %1, %cst [1] : vector<16x32xf32> to vector<16xf32>
    %5 = vector.shape_cast %4 : vector<16xf32> to vector<16x1xf32>
    %cst_3 = arith.constant 3.200000e+01 : f32
    %6 = vector.broadcast %cst_3 : f32 to vector<16x1xf32>
    %7 = arith.divf %5, %6 : vector<16x1xf32>
    %8 = vector.broadcast %7 : vector<16x1xf32> to vector<16x32xf32>
    %9 = arith.subf %1, %8 : vector<16x32xf32>
    %10 = arith.mulf %9, %9 : vector<16x32xf32>
    %cst_4 = arith.constant dense<0.000000e+00> : vector<16xf32>
    %11 = vector.multi_reduction <add>, %10, %cst_4 [1] : vector<16x32xf32> to vector<16xf32>
    %12 = vector.shape_cast %11 : vector<16xf32> to vector<16x1xf32>
    %cst_5 = arith.constant 3.200000e+01 : f32
    %13 = vector.broadcast %cst_5 : f32 to vector<16x1xf32>
    %14 = arith.divf %12, %13 : vector<16x1xf32>
    %15 = vector.broadcast %7 : vector<16x1xf32> to vector<16x32xf32>
    %16 = arith.subf %1, %15 : vector<16x32xf32>
    %cst_6 = arith.constant 9.99999996E-13 : f32
    %17 = vector.broadcast %cst_6 : f32 to vector<16x1xf32>
    %18 = arith.addf %14, %17 : vector<16x1xf32>
    %19 = math.rsqrt %18 : vector<16x1xf32>
    %20 = vector.broadcast %19 : vector<16x1xf32> to vector<16x32xf32>
    %21 = arith.mulf %16, %20 : vector<16x32xf32>
    %22 = vector.broadcast %2 : vector<1x32xf32> to vector<16x32xf32>
    %23 = arith.mulf %21, %22 : vector<16x32xf32>
    %24 = vector.broadcast %3 : vector<1x32xf32> to vector<16x32xf32>
    %25 = arith.addf %23, %24 : vector<16x32xf32>
    %c0_7 = arith.constant 0 : index
    %c0_8 = arith.constant 0 : index
    %26 = vector.load %arg2[%c0_7, %c0_8] : memref<384x128xf32, #tpu.memory_space<vmem>>, vector<32x128xf32>
    %cst_9 = arith.constant dense<0.000000e+00> : vector<16x128xf32>
    %27 = tpu.matmul %25, %26, %cst_9 {dimension_numbers = #tpu.dot_dimension_numbers<[1], [0], [0], [1], [0, 0, 1, 1], [], []>} : vector<16x32xf32>, vector<32x128xf32>, vector<16x128xf32> -> vector<16x128xf32>
    %28 = vector.extract_strided_slice %0 {offsets = [2, 0], sizes = [1, 128], strides = [1, 1]} : vector<16x128xf32> to vector<1x128xf32>
    %29 = vector.broadcast %28 : vector<1x128xf32> to vector<16x128xf32>
    %30 = arith.addf %27, %29 : vector<16x128xf32>
    %31 = vector.extract_strided_slice %30 {offsets = [0, 0], sizes = [16, 32], strides = [1, 1]} : vector<16x128xf32> to vector<16x32xf32>
    %32 = vector.extract_strided_slice %30 {offsets = [0, 32], sizes = [16, 32], strides = [1, 1]} : vector<16x128xf32> to vector<16x32xf32>
    %33 = vector.extract_strided_slice %30 {offsets = [0, 64], sizes = [16, 32], strides = [1, 1]} : vector<16x128xf32> to vector<16x32xf32>
    %34 = vector.extract_strided_slice %31 {offsets = [0, 0], sizes = [16, 16], strides = [1, 1]} : vector<16x32xf32> to vector<16x16xf32>
    %35 = vector.extract_strided_slice %31 {offsets = [0, 16], sizes = [16, 16], strides = [1, 1]} : vector<16x32xf32> to vector<16x16xf32>
    %36 = tpu.concatenate %34, %35 in 0 : vector<16x16xf32>, vector<16x16xf32> -> vector<32x16xf32>
    %37 = vector.shape_cast %36 : vector<32x16xf32> to vector<4x8x16xf32>
    %38 = vector.extract_strided_slice %32 {offsets = [0, 0], sizes = [16, 16], strides = [1, 1]} : vector<16x32xf32> to vector<16x16xf32>
    %39 = vector.extract_strided_slice %32 {offsets = [0, 16], sizes = [16, 16], strides = [1, 1]} : vector<16x32xf32> to vector<16x16xf32>
    %40 = tpu.concatenate %38, %39 in 0 : vector<16x16xf32>, vector<16x16xf32> -> vector<32x16xf32>
    %41 = vector.shape_cast %40 : vector<32x16xf32> to vector<4x8x16xf32>
    %42 = vector.extract_strided_slice %33 {offsets = [0, 0], sizes = [16, 16], strides = [1, 1]} : vector<16x32xf32> to vector<16x16xf32>
    %43 = vector.extract_strided_slice %33 {offsets = [0, 16], sizes = [16, 16], strides = [1, 1]} : vector<16x32xf32> to vector<16x16xf32>
    %44 = tpu.concatenate %42, %43 in 0 : vector<16x16xf32>, vector<16x16xf32> -> vector<32x16xf32>
    %45 = vector.shape_cast %44 : vector<32x16xf32> to vector<4x8x16xf32>
    "tpu.trace_start"() <{level = 10 : i32, message = "bqd,bkd->bqk"}> : () -> ()
    %cst_10 = arith.constant dense<0.000000e+00> : vector<4x8x8xf32>
    %46 = tpu.matmul %37, %41, %cst_10 {dimension_numbers = #tpu.dot_dimension_numbers<[2], [2], [1], [1], [0, 0, 0, 1, 1, 1], [0], [0]>} : vector<4x8x16xf32>, vector<4x8x16xf32>, vector<4x8x8xf32> -> vector<4x8x8xf32>
    "tpu.trace_stop"() : () -> ()
    %cst_11 = arith.constant 2.500000e-01 : f32
    %47 = vector.broadcast %cst_11 : f32 to vector<4x8x8xf32>
    %48 = arith.mulf %46, %47 : vector<4x8x8xf32>
    %cst_12 = arith.constant dense<0xFF800000> : vector<4x8xf32>
    %49 = vector.multi_reduction <maximumf>, %48, %cst_12 [2] : vector<4x8x8xf32> to vector<4x8xf32>
    %50 = vector.shape_cast %49 : vector<4x8xf32> to vector<4x8x1xf32>
    %51 = vector.broadcast %50 : vector<4x8x1xf32> to vector<4x8x8xf32>
    %52 = arith.subf %48, %51 : vector<4x8x8xf32>
    %53 = math.exp %52 : vector<4x8x8xf32>
    %cst_13 = arith.constant dense<0.000000e+00> : vector<4x8xf32>
    %54 = vector.multi_reduction <add>, %53, %cst_13 [2] : vector<4x8x8xf32> to vector<4x8xf32>
    %55 = vector.shape_cast %54 : vector<4x8xf32> to vector<4x8x1xf32>
    %56 = vector.broadcast %55 : vector<4x8x1xf32> to vector<4x8x8xf32>
    %57 = arith.divf %53, %56 : vector<4x8x8xf32>
    "tpu.trace_start"() <{level = 10 : i32, message = "bqk,bkd->bqd"}> : () -> ()
    %cst_14 = arith.constant dense<0.000000e+00> : vector<4x8x16xf32>
    %58 = tpu.matmul %57, %45, %cst_14 {dimension_numbers = #tpu.dot_dimension_numbers<[2], [1], [1], [2], [0, 0, 0, 1, 1, 2], [0], [0]>} : vector<4x8x8xf32>, vector<4x8x16xf32>, vector<4x8x16xf32> -> vector<4x8x16xf32>
    "tpu.trace_stop"() : () -> ()
    %59 = vector.shape_cast %58 : vector<4x8x16xf32> to vector<32x16xf32>
    %60 = vector.extract_strided_slice %59 {offsets = [0, 0], sizes = [16, 16], strides = [1, 1]} : vector<32x16xf32> to vector<16x16xf32>
    %61 = vector.extract_strided_slice %59 {offsets = [16, 0], sizes = [16, 16], strides = [1, 1]} : vector<32x16xf32> to vector<16x16xf32>
    %62 = tpu.concatenate %60, %61 in 1 : vector<16x16xf32>, vector<16x16xf32> -> vector<16x32xf32>
    %c32 = arith.constant 32 : index
    %c0_15 = arith.constant 0 : index
    %63 = vector.load %arg2[%c32, %c0_15] : memref<384x128xf32, #tpu.memory_space<vmem>>, vector<32x128xf32>
    %cst_16 = arith.constant dense<0.000000e+00> : vector<16x128xf32>
    %64 = tpu.matmul %62, %63, %cst_16 {dimension_numbers = #tpu.dot_dimension_numbers<[1], [0], [0], [1], [0, 0, 1, 1], [], []>} : vector<16x32xf32>, vector<32x128xf32>, vector<16x128xf32> -> vector<16x128xf32>
    %65 = vector.extract_strided_slice %64 {offsets = [0, 0], sizes = [16, 32], strides = [1, 1]} : vector<16x128xf32> to vector<16x32xf32>
    %66 = vector.extract_strided_slice %0 {offsets = [3, 0], sizes = [1, 32], strides = [1, 1]} : vector<16x128xf32> to vector<1x32xf32>
    %67 = vector.broadcast %66 : vector<1x32xf32> to vector<16x32xf32>
    %68 = arith.addf %65, %67 : vector<16x32xf32>
    %69 = arith.addf %25, %68 : vector<16x32xf32>
    %70 = vector.extract_strided_slice %0 {offsets = [4, 0], sizes = [1, 32], strides = [1, 1]} : vector<16x128xf32> to vector<1x32xf32>
    %71 = vector.extract_strided_slice %0 {offsets = [5, 0], sizes = [1, 32], strides = [1, 1]} : vector<16x128xf32> to vector<1x32xf32>
    %cst_17 = arith.constant dense<0.000000e+00> : vector<16xf32>
    %72 = vector.multi_reduction <add>, %69, %cst_17 [1] : vector<16x32xf32> to vector<16xf32>
    %73 = vector.shape_cast %72 : vector<16xf32> to vector<16x1xf32>
    %cst_18 = arith.constant 3.200000e+01 : f32
    %74 = vector.broadcast %cst_18 : f32 to vector<16x1xf32>
    %75 = arith.divf %73, %74 : vector<16x1xf32>
    %76 = vector.broadcast %75 : vector<16x1xf32> to vector<16x32xf32>
    %77 = arith.subf %69, %76 : vector<16x32xf32>
    %78 = arith.mulf %77, %77 : vector<16x32xf32>
    %cst_19 = arith.constant dense<0.000000e+00> : vector<16xf32>
    %79 = vector.multi_reduction <add>, %78, %cst_19 [1] : vector<16x32xf32> to vector<16xf32>
    %80 = vector.shape_cast %79 : vector<16xf32> to vector<16x1xf32>
    %cst_20 = arith.constant 3.200000e+01 : f32
    %81 = vector.broadcast %cst_20 : f32 to vector<16x1xf32>
    %82 = arith.divf %80, %81 : vector<16x1xf32>
    %83 = vector.broadcast %75 : vector<16x1xf32> to vector<16x32xf32>
    %84 = arith.subf %69, %83 : vector<16x32xf32>
    %cst_21 = arith.constant 9.99999996E-13 : f32
    %85 = vector.broadcast %cst_21 : f32 to vector<16x1xf32>
    %86 = arith.addf %82, %85 : vector<16x1xf32>
    %87 = math.rsqrt %86 : vector<16x1xf32>
    %88 = vector.broadcast %87 : vector<16x1xf32> to vector<16x32xf32>
    %89 = arith.mulf %84, %88 : vector<16x32xf32>
    %90 = vector.broadcast %70 : vector<1x32xf32> to vector<16x32xf32>
    %91 = arith.mulf %89, %90 : vector<16x32xf32>
    %92 = vector.broadcast %71 : vector<1x32xf32> to vector<16x32xf32>
    %93 = arith.addf %91, %92 : vector<16x32xf32>
    %c64 = arith.constant 64 : index
    %c0_22 = arith.constant 0 : index
    %94 = vector.load %arg2[%c64, %c0_22] : memref<384x128xf32, #tpu.memory_space<vmem>>, vector<32x128xf32>
    %cst_23 = arith.constant dense<0.000000e+00> : vector<16x128xf32>
    %95 = tpu.matmul %93, %94, %cst_23 {dimension_numbers = #tpu.dot_dimension_numbers<[1], [0], [0], [1], [0, 0, 1, 1], [], []>} : vector<16x32xf32>, vector<32x128xf32>, vector<16x128xf32> -> vector<16x128xf32>
    %96 = vector.extract_strided_slice %0 {offsets = [6, 0], sizes = [1, 128], strides = [1, 1]} : vector<16x128xf32> to vector<1x128xf32>
    %97 = vector.broadcast %96 : vector<1x128xf32> to vector<16x128xf32>
    %98 = arith.addf %95, %97 : vector<16x128xf32>
    %99 = arith.mulf %98, %98 : vector<16x128xf32>
    %100 = arith.mulf %98, %99 : vector<16x128xf32>
    %cst_24 = arith.constant 4.471500e-02 : f32
    %101 = vector.broadcast %cst_24 : f32 to vector<16x128xf32>
    %102 = arith.mulf %101, %100 : vector<16x128xf32>
    %103 = arith.addf %98, %102 : vector<16x128xf32>
    %cst_25 = arith.constant 0.797884583 : f32
    %104 = vector.broadcast %cst_25 : f32 to vector<16x128xf32>
    %105 = arith.mulf %104, %103 : vector<16x128xf32>
    %106 = math.tanh %105 : vector<16x128xf32>
    %cst_26 = arith.constant 1.000000e+00 : f32
    %107 = vector.broadcast %cst_26 : f32 to vector<16x128xf32>
    %108 = arith.addf %107, %106 : vector<16x128xf32>
    %cst_27 = arith.constant 5.000000e-01 : f32
    %109 = vector.broadcast %cst_27 : f32 to vector<16x128xf32>
    %110 = arith.mulf %109, %108 : vector<16x128xf32>
    %111 = arith.mulf %98, %110 : vector<16x128xf32>
    %c96 = arith.constant 96 : index
    %c0_28 = arith.constant 0 : index
    %112 = vector.load %arg2[%c96, %c0_28] : memref<384x128xf32, #tpu.memory_space<vmem>>, vector<128x128xf32>
    %cst_29 = arith.constant dense<0.000000e+00> : vector<16x128xf32>
    %113 = tpu.matmul %111, %112, %cst_29 {dimension_numbers = #tpu.dot_dimension_numbers<[1], [0], [0], [1], [0, 0, 1, 1], [], []>} : vector<16x128xf32>, vector<128x128xf32>, vector<16x128xf32> -> vector<16x128xf32>
    %114 = vector.extract_strided_slice %113 {offsets = [0, 0], sizes = [16, 32], strides = [1, 1]} : vector<16x128xf32> to vector<16x32xf32>
    %115 = vector.extract_strided_slice %0 {offsets = [7, 0], sizes = [1, 32], strides = [1, 1]} : vector<16x128xf32> to vector<1x32xf32>
    %116 = vector.broadcast %115 : vector<1x32xf32> to vector<16x32xf32>
    %117 = arith.addf %114, %116 : vector<16x32xf32>
    %118 = arith.addf %93, %117 : vector<16x32xf32>
    %119 = vector.extract_strided_slice %0 {offsets = [8, 0], sizes = [1, 32], strides = [1, 1]} : vector<16x128xf32> to vector<1x32xf32>
    %120 = vector.extract_strided_slice %0 {offsets = [9, 0], sizes = [1, 32], strides = [1, 1]} : vector<16x128xf32> to vector<1x32xf32>
    %cst_30 = arith.constant dense<0.000000e+00> : vector<16xf32>
    %121 = vector.multi_reduction <add>, %118, %cst_30 [1] : vector<16x32xf32> to vector<16xf32>
    %122 = vector.shape_cast %121 : vector<16xf32> to vector<16x1xf32>
    %cst_31 = arith.constant 3.200000e+01 : f32
    %123 = vector.broadcast %cst_31 : f32 to vector<16x1xf32>
    %124 = arith.divf %122, %123 : vector<16x1xf32>
    %125 = vector.broadcast %124 : vector<16x1xf32> to vector<16x32xf32>
    %126 = arith.subf %118, %125 : vector<16x32xf32>
    %127 = arith.mulf %126, %126 : vector<16x32xf32>
    %cst_32 = arith.constant dense<0.000000e+00> : vector<16xf32>
    %128 = vector.multi_reduction <add>, %127, %cst_32 [1] : vector<16x32xf32> to vector<16xf32>
    %129 = vector.shape_cast %128 : vector<16xf32> to vector<16x1xf32>
    %cst_33 = arith.constant 3.200000e+01 : f32
    %130 = vector.broadcast %cst_33 : f32 to vector<16x1xf32>
    %131 = arith.divf %129, %130 : vector<16x1xf32>
    %132 = vector.broadcast %124 : vector<16x1xf32> to vector<16x32xf32>
    %133 = arith.subf %118, %132 : vector<16x32xf32>
    %cst_34 = arith.constant 9.99999996E-13 : f32
    %134 = vector.broadcast %cst_34 : f32 to vector<16x1xf32>
    %135 = arith.addf %131, %134 : vector<16x1xf32>
    %136 = math.rsqrt %135 : vector<16x1xf32>
    %137 = vector.broadcast %136 : vector<16x1xf32> to vector<16x32xf32>
    %138 = arith.mulf %133, %137 : vector<16x32xf32>
    %139 = vector.broadcast %119 : vector<1x32xf32> to vector<16x32xf32>
    %140 = arith.mulf %138, %139 : vector<16x32xf32>
    %141 = vector.broadcast %120 : vector<1x32xf32> to vector<16x32xf32>
    %142 = arith.addf %140, %141 : vector<16x32xf32>
    %143 = tpu.iota {dimensions = array<i32: 1>} : vector<2x128xi32>
    %c16_i32 = arith.constant 16 : i32
    %144 = vector.broadcast %c16_i32 : i32 to vector<2x128xi32>
    %145 = arith.andi %143, %144 : vector<2x128xi32>
    %c0_i32 = arith.constant 0 : i32
    %146 = vector.broadcast %c0_i32 : i32 to vector<2x128xi32>
    %147 = arith.cmpi eq, %145, %146 : vector<2x128xi32>
    %148 = tpu.iota {dimensions = array<i32: 1>} : vector<2x32xi32>
    %c16_i32_35 = arith.constant 16 : i32
    %149 = vector.broadcast %c16_i32_35 : i32 to vector<2x32xi32>
    %150 = arith.cmpi slt, %148, %149 : vector<2x32xi32>
    %c224 = arith.constant 224 : index
    %c0_36 = arith.constant 0 : index
    %151 = vector.load %arg2[%c224, %c0_36] : memref<384x128xf32, #tpu.memory_space<vmem>>, vector<32x128xf32>
    %c256 = arith.constant 256 : index
    %c0_37 = arith.constant 0 : index
    %152 = vector.load %arg2[%c256, %c0_37] : memref<384x128xf32, #tpu.memory_space<vmem>>, vector<32x128xf32>
    %153 = vector.extract_strided_slice %0 {offsets = [10, 0], sizes = [1, 128], strides = [1, 1]} : vector<16x128xf32> to vector<1x128xf32>
    %cst_38 = arith.constant dense<0.000000e+00> : vector<16x128xf32>
    %154 = tpu.matmul %142, %151, %cst_38 {dimension_numbers = #tpu.dot_dimension_numbers<[1], [0], [0], [1], [0, 0, 1, 1], [], []>} : vector<16x32xf32>, vector<32x128xf32>, vector<16x128xf32> -> vector<16x128xf32>
    %155 = vector.broadcast %153 : vector<1x128xf32> to vector<16x128xf32>
    %156 = arith.addf %154, %155 : vector<16x128xf32>
    %157 = vector.extract_strided_slice %156 {offsets = [0, 0], sizes = [1, 128], strides = [1, 1]} : vector<16x128xf32> to vector<1x128xf32>
    %158 = vector.extract_strided_slice %156 {offsets = [8, 0], sizes = [1, 128], strides = [1, 1]} : vector<16x128xf32> to vector<1x128xf32>
    %159 = tpu.concatenate %157, %158 in 0 : vector<1x128xf32>, vector<1x128xf32> -> vector<2x128xf32>
    %160 = vector.extract_strided_slice %156 {offsets = [7, 0], sizes = [1, 128], strides = [1, 1]} : vector<16x128xf32> to vector<1x128xf32>
    %161 = vector.extract_strided_slice %156 {offsets = [15, 0], sizes = [1, 128], strides = [1, 1]} : vector<16x128xf32> to vector<1x128xf32>
    %162 = tpu.concatenate %160, %161 in 0 : vector<1x128xf32>, vector<1x128xf32> -> vector<2x128xf32>
    %163 = arith.select %147, %159, %162 : vector<2x128xi1>, vector<2x128xf32>
    %164 = vector.extract_strided_slice %156 {offsets = [1, 0], sizes = [1, 128], strides = [1, 1]} : vector<16x128xf32> to vector<1x128xf32>
    %165 = vector.extract_strided_slice %156 {offsets = [9, 0], sizes = [1, 128], strides = [1, 1]} : vector<16x128xf32> to vector<1x128xf32>
    %166 = tpu.concatenate %164, %165 in 0 : vector<1x128xf32>, vector<1x128xf32> -> vector<2x128xf32>
    %167 = vector.extract_strided_slice %156 {offsets = [6, 0], sizes = [1, 128], strides = [1, 1]} : vector<16x128xf32> to vector<1x128xf32>
    %168 = vector.extract_strided_slice %156 {offsets = [14, 0], sizes = [1, 128], strides = [1, 1]} : vector<16x128xf32> to vector<1x128xf32>
    %169 = tpu.concatenate %167, %168 in 0 : vector<1x128xf32>, vector<1x128xf32> -> vector<2x128xf32>
    %170 = arith.select %147, %166, %169 : vector<2x128xi1>, vector<2x128xf32>
    %171 = vector.extract_strided_slice %156 {offsets = [2, 0], sizes = [1, 128], strides = [1, 1]} : vector<16x128xf32> to vector<1x128xf32>
    %172 = vector.extract_strided_slice %156 {offsets = [10, 0], sizes = [1, 128], strides = [1, 1]} : vector<16x128xf32> to vector<1x128xf32>
    %173 = tpu.concatenate %171, %172 in 0 : vector<1x128xf32>, vector<1x128xf32> -> vector<2x128xf32>
    %174 = vector.extract_strided_slice %156 {offsets = [5, 0], sizes = [1, 128], strides = [1, 1]} : vector<16x128xf32> to vector<1x128xf32>
    %175 = vector.extract_strided_slice %156 {offsets = [13, 0], sizes = [1, 128], strides = [1, 1]} : vector<16x128xf32> to vector<1x128xf32>
    %176 = tpu.concatenate %174, %175 in 0 : vector<1x128xf32>, vector<1x128xf32> -> vector<2x128xf32>
    %177 = arith.select %147, %173, %176 : vector<2x128xi1>, vector<2x128xf32>
    %178 = vector.extract_strided_slice %156 {offsets = [3, 0], sizes = [1, 128], strides = [1, 1]} : vector<16x128xf32> to vector<1x128xf32>
    %179 = vector.extract_strided_slice %156 {offsets = [11, 0], sizes = [1, 128], strides = [1, 1]} : vector<16x128xf32> to vector<1x128xf32>
    %180 = tpu.concatenate %178, %179 in 0 : vector<1x128xf32>, vector<1x128xf32> -> vector<2x128xf32>
    %181 = vector.extract_strided_slice %156 {offsets = [4, 0], sizes = [1, 128], strides = [1, 1]} : vector<16x128xf32> to vector<1x128xf32>
    %182 = vector.extract_strided_slice %156 {offsets = [12, 0], sizes = [1, 128], strides = [1, 1]} : vector<16x128xf32> to vector<1x128xf32>
    %183 = tpu.concatenate %181, %182 in 0 : vector<1x128xf32>, vector<1x128xf32> -> vector<2x128xf32>
    %184 = arith.select %147, %180, %183 : vector<2x128xi1>, vector<2x128xf32>
    %185 = vector.extract_strided_slice %156 {offsets = [4, 0], sizes = [1, 128], strides = [1, 1]} : vector<16x128xf32> to vector<1x128xf32>
    %186 = vector.extract_strided_slice %156 {offsets = [12, 0], sizes = [1, 128], strides = [1, 1]} : vector<16x128xf32> to vector<1x128xf32>
    %187 = tpu.concatenate %185, %186 in 0 : vector<1x128xf32>, vector<1x128xf32> -> vector<2x128xf32>
    %188 = vector.extract_strided_slice %156 {offsets = [3, 0], sizes = [1, 128], strides = [1, 1]} : vector<16x128xf32> to vector<1x128xf32>
    %189 = vector.extract_strided_slice %156 {offsets = [11, 0], sizes = [1, 128], strides = [1, 1]} : vector<16x128xf32> to vector<1x128xf32>
    %190 = tpu.concatenate %188, %189 in 0 : vector<1x128xf32>, vector<1x128xf32> -> vector<2x128xf32>
    %191 = arith.select %147, %187, %190 : vector<2x128xi1>, vector<2x128xf32>
    %192 = vector.extract_strided_slice %156 {offsets = [5, 0], sizes = [1, 128], strides = [1, 1]} : vector<16x128xf32> to vector<1x128xf32>
    %193 = vector.extract_strided_slice %156 {offsets = [13, 0], sizes = [1, 128], strides = [1, 1]} : vector<16x128xf32> to vector<1x128xf32>
    %194 = tpu.concatenate %192, %193 in 0 : vector<1x128xf32>, vector<1x128xf32> -> vector<2x128xf32>
    %195 = vector.extract_strided_slice %156 {offsets = [2, 0], sizes = [1, 128], strides = [1, 1]} : vector<16x128xf32> to vector<1x128xf32>
    %196 = vector.extract_strided_slice %156 {offsets = [10, 0], sizes = [1, 128], strides = [1, 1]} : vector<16x128xf32> to vector<1x128xf32>
    %197 = tpu.concatenate %195, %196 in 0 : vector<1x128xf32>, vector<1x128xf32> -> vector<2x128xf32>
    %198 = arith.select %147, %194, %197 : vector<2x128xi1>, vector<2x128xf32>
    %199 = vector.extract_strided_slice %156 {offsets = [6, 0], sizes = [1, 128], strides = [1, 1]} : vector<16x128xf32> to vector<1x128xf32>
    %200 = vector.extract_strided_slice %156 {offsets = [14, 0], sizes = [1, 128], strides = [1, 1]} : vector<16x128xf32> to vector<1x128xf32>
    %201 = tpu.concatenate %199, %200 in 0 : vector<1x128xf32>, vector<1x128xf32> -> vector<2x128xf32>
    %202 = vector.extract_strided_slice %156 {offsets = [1, 0], sizes = [1, 128], strides = [1, 1]} : vector<16x128xf32> to vector<1x128xf32>
    %203 = vector.extract_strided_slice %156 {offsets = [9, 0], sizes = [1, 128], strides = [1, 1]} : vector<16x128xf32> to vector<1x128xf32>
    %204 = tpu.concatenate %202, %203 in 0 : vector<1x128xf32>, vector<1x128xf32> -> vector<2x128xf32>
    %205 = arith.select %147, %201, %204 : vector<2x128xi1>, vector<2x128xf32>
    %206 = vector.extract_strided_slice %156 {offsets = [7, 0], sizes = [1, 128], strides = [1, 1]} : vector<16x128xf32> to vector<1x128xf32>
    %207 = vector.extract_strided_slice %156 {offsets = [15, 0], sizes = [1, 128], strides = [1, 1]} : vector<16x128xf32> to vector<1x128xf32>
    %208 = tpu.concatenate %206, %207 in 0 : vector<1x128xf32>, vector<1x128xf32> -> vector<2x128xf32>
    %209 = vector.extract_strided_slice %156 {offsets = [0, 0], sizes = [1, 128], strides = [1, 1]} : vector<16x128xf32> to vector<1x128xf32>
    %210 = vector.extract_strided_slice %156 {offsets = [8, 0], sizes = [1, 128], strides = [1, 1]} : vector<16x128xf32> to vector<1x128xf32>
    %211 = tpu.concatenate %209, %210 in 0 : vector<1x128xf32>, vector<1x128xf32> -> vector<2x128xf32>
    %212 = arith.select %147, %208, %211 : vector<2x128xi1>, vector<2x128xf32>
    %cst_39 = arith.constant 0.000000e+00 : f32
    %213 = vector.broadcast %cst_39 : f32 to vector<2x32xf32>
    %cst_40 = arith.constant 0.000000e+00 : f32
    %214 = vector.broadcast %cst_40 : f32 to vector<2x32xf32>
    %cst_41 = arith.constant dense<0.000000e+00> : vector<2x128xf32>
    %215 = tpu.matmul %213, %152, %cst_41 {dimension_numbers = #tpu.dot_dimension_numbers<[1], [0], [0], [1], [0, 0, 1, 1], [], []>} : vector<2x32xf32>, vector<32x128xf32>, vector<2x128xf32> -> vector<2x128xf32>
    %216 = arith.addf %163, %215 : vector<2x128xf32>
    %217 = arith.negf %216 : vector<2x128xf32>
    %218 = math.exp %217 : vector<2x128xf32>
    %cst_42 = arith.constant 1.000000e+00 : f32
    %219 = vector.broadcast %cst_42 : f32 to vector<2x128xf32>
    %220 = arith.addf %219, %218 : vector<2x128xf32>
    %221 = arith.divf %219, %220 : vector<2x128xf32>
    %222 = math.tanh %216 : vector<2x128xf32>
    %223 = vector.extract_strided_slice %221 {offsets = [0, 0], sizes = [2, 32], strides = [1, 1]} : vector<2x128xf32> to vector<2x32xf32>
    %224 = vector.extract_strided_slice %221 {offsets = [0, 32], sizes = [2, 32], strides = [1, 1]} : vector<2x128xf32> to vector<2x32xf32>
    %225 = vector.extract_strided_slice %222 {offsets = [0, 64], sizes = [2, 32], strides = [1, 1]} : vector<2x128xf32> to vector<2x32xf32>
    %226 = vector.extract_strided_slice %221 {offsets = [0, 96], sizes = [2, 32], strides = [1, 1]} : vector<2x128xf32> to vector<2x32xf32>
    %227 = arith.mulf %224, %214 : vector<2x32xf32>
    %228 = arith.mulf %223, %225 : vector<2x32xf32>
    %229 = arith.addf %227, %228 : vector<2x32xf32>
    %230 = math.tanh %229 : vector<2x32xf32>
    %231 = arith.mulf %226, %230 : vector<2x32xf32>
    %cst_43 = arith.constant dense<0.000000e+00> : vector<2x128xf32>
    %232 = tpu.matmul %231, %152, %cst_43 {dimension_numbers = #tpu.dot_dimension_numbers<[1], [0], [0], [1], [0, 0, 1, 1], [], []>} : vector<2x32xf32>, vector<32x128xf32>, vector<2x128xf32> -> vector<2x128xf32>
    %233 = arith.addf %170, %232 : vector<2x128xf32>
    %234 = arith.negf %233 : vector<2x128xf32>
    %235 = math.exp %234 : vector<2x128xf32>
    %cst_44 = arith.constant 1.000000e+00 : f32
    %236 = vector.broadcast %cst_44 : f32 to vector<2x128xf32>
    %237 = arith.addf %236, %235 : vector<2x128xf32>
    %238 = arith.divf %236, %237 : vector<2x128xf32>
    %239 = math.tanh %233 : vector<2x128xf32>
    %240 = vector.extract_strided_slice %238 {offsets = [0, 0], sizes = [2, 32], strides = [1, 1]} : vector<2x128xf32> to vector<2x32xf32>
    %241 = vector.extract_strided_slice %238 {offsets = [0, 32], sizes = [2, 32], strides = [1, 1]} : vector<2x128xf32> to vector<2x32xf32>
    %242 = vector.extract_strided_slice %239 {offsets = [0, 64], sizes = [2, 32], strides = [1, 1]} : vector<2x128xf32> to vector<2x32xf32>
    %243 = vector.extract_strided_slice %238 {offsets = [0, 96], sizes = [2, 32], strides = [1, 1]} : vector<2x128xf32> to vector<2x32xf32>
    %244 = arith.mulf %241, %229 : vector<2x32xf32>
    %245 = arith.mulf %240, %242 : vector<2x32xf32>
    %246 = arith.addf %244, %245 : vector<2x32xf32>
    %247 = math.tanh %246 : vector<2x32xf32>
    %248 = arith.mulf %243, %247 : vector<2x32xf32>
    %cst_45 = arith.constant dense<0.000000e+00> : vector<2x128xf32>
    %249 = tpu.matmul %248, %152, %cst_45 {dimension_numbers = #tpu.dot_dimension_numbers<[1], [0], [0], [1], [0, 0, 1, 1], [], []>} : vector<2x32xf32>, vector<32x128xf32>, vector<2x128xf32> -> vector<2x128xf32>
    %250 = arith.addf %177, %249 : vector<2x128xf32>
    %251 = arith.negf %250 : vector<2x128xf32>
    %252 = math.exp %251 : vector<2x128xf32>
    %cst_46 = arith.constant 1.000000e+00 : f32
    %253 = vector.broadcast %cst_46 : f32 to vector<2x128xf32>
    %254 = arith.addf %253, %252 : vector<2x128xf32>
    %255 = arith.divf %253, %254 : vector<2x128xf32>
    %256 = math.tanh %250 : vector<2x128xf32>
    %257 = vector.extract_strided_slice %255 {offsets = [0, 0], sizes = [2, 32], strides = [1, 1]} : vector<2x128xf32> to vector<2x32xf32>
    %258 = vector.extract_strided_slice %255 {offsets = [0, 32], sizes = [2, 32], strides = [1, 1]} : vector<2x128xf32> to vector<2x32xf32>
    %259 = vector.extract_strided_slice %256 {offsets = [0, 64], sizes = [2, 32], strides = [1, 1]} : vector<2x128xf32> to vector<2x32xf32>
    %260 = vector.extract_strided_slice %255 {offsets = [0, 96], sizes = [2, 32], strides = [1, 1]} : vector<2x128xf32> to vector<2x32xf32>
    %261 = arith.mulf %258, %246 : vector<2x32xf32>
    %262 = arith.mulf %257, %259 : vector<2x32xf32>
    %263 = arith.addf %261, %262 : vector<2x32xf32>
    %264 = math.tanh %263 : vector<2x32xf32>
    %265 = arith.mulf %260, %264 : vector<2x32xf32>
    %cst_47 = arith.constant dense<0.000000e+00> : vector<2x128xf32>
    %266 = tpu.matmul %265, %152, %cst_47 {dimension_numbers = #tpu.dot_dimension_numbers<[1], [0], [0], [1], [0, 0, 1, 1], [], []>} : vector<2x32xf32>, vector<32x128xf32>, vector<2x128xf32> -> vector<2x128xf32>
    %267 = arith.addf %184, %266 : vector<2x128xf32>
    %268 = arith.negf %267 : vector<2x128xf32>
    %269 = math.exp %268 : vector<2x128xf32>
    %cst_48 = arith.constant 1.000000e+00 : f32
    %270 = vector.broadcast %cst_48 : f32 to vector<2x128xf32>
    %271 = arith.addf %270, %269 : vector<2x128xf32>
    %272 = arith.divf %270, %271 : vector<2x128xf32>
    %273 = math.tanh %267 : vector<2x128xf32>
    %274 = vector.extract_strided_slice %272 {offsets = [0, 0], sizes = [2, 32], strides = [1, 1]} : vector<2x128xf32> to vector<2x32xf32>
    %275 = vector.extract_strided_slice %272 {offsets = [0, 32], sizes = [2, 32], strides = [1, 1]} : vector<2x128xf32> to vector<2x32xf32>
    %276 = vector.extract_strided_slice %273 {offsets = [0, 64], sizes = [2, 32], strides = [1, 1]} : vector<2x128xf32> to vector<2x32xf32>
    %277 = vector.extract_strided_slice %272 {offsets = [0, 96], sizes = [2, 32], strides = [1, 1]} : vector<2x128xf32> to vector<2x32xf32>
    %278 = arith.mulf %275, %263 : vector<2x32xf32>
    %279 = arith.mulf %274, %276 : vector<2x32xf32>
    %280 = arith.addf %278, %279 : vector<2x32xf32>
    %281 = math.tanh %280 : vector<2x32xf32>
    %282 = arith.mulf %277, %281 : vector<2x32xf32>
    %cst_49 = arith.constant dense<0.000000e+00> : vector<2x128xf32>
    %283 = tpu.matmul %282, %152, %cst_49 {dimension_numbers = #tpu.dot_dimension_numbers<[1], [0], [0], [1], [0, 0, 1, 1], [], []>} : vector<2x32xf32>, vector<32x128xf32>, vector<2x128xf32> -> vector<2x128xf32>
    %284 = arith.addf %191, %283 : vector<2x128xf32>
    %285 = arith.negf %284 : vector<2x128xf32>
    %286 = math.exp %285 : vector<2x128xf32>
    %cst_50 = arith.constant 1.000000e+00 : f32
    %287 = vector.broadcast %cst_50 : f32 to vector<2x128xf32>
    %288 = arith.addf %287, %286 : vector<2x128xf32>
    %289 = arith.divf %287, %288 : vector<2x128xf32>
    %290 = math.tanh %284 : vector<2x128xf32>
    %291 = vector.extract_strided_slice %289 {offsets = [0, 0], sizes = [2, 32], strides = [1, 1]} : vector<2x128xf32> to vector<2x32xf32>
    %292 = vector.extract_strided_slice %289 {offsets = [0, 32], sizes = [2, 32], strides = [1, 1]} : vector<2x128xf32> to vector<2x32xf32>
    %293 = vector.extract_strided_slice %290 {offsets = [0, 64], sizes = [2, 32], strides = [1, 1]} : vector<2x128xf32> to vector<2x32xf32>
    %294 = vector.extract_strided_slice %289 {offsets = [0, 96], sizes = [2, 32], strides = [1, 1]} : vector<2x128xf32> to vector<2x32xf32>
    %295 = arith.mulf %292, %280 : vector<2x32xf32>
    %296 = arith.mulf %291, %293 : vector<2x32xf32>
    %297 = arith.addf %295, %296 : vector<2x32xf32>
    %298 = math.tanh %297 : vector<2x32xf32>
    %299 = arith.mulf %294, %298 : vector<2x32xf32>
    %cst_51 = arith.constant dense<0.000000e+00> : vector<2x128xf32>
    %300 = tpu.matmul %299, %152, %cst_51 {dimension_numbers = #tpu.dot_dimension_numbers<[1], [0], [0], [1], [0, 0, 1, 1], [], []>} : vector<2x32xf32>, vector<32x128xf32>, vector<2x128xf32> -> vector<2x128xf32>
    %301 = arith.addf %198, %300 : vector<2x128xf32>
    %302 = arith.negf %301 : vector<2x128xf32>
    %303 = math.exp %302 : vector<2x128xf32>
    %cst_52 = arith.constant 1.000000e+00 : f32
    %304 = vector.broadcast %cst_52 : f32 to vector<2x128xf32>
    %305 = arith.addf %304, %303 : vector<2x128xf32>
    %306 = arith.divf %304, %305 : vector<2x128xf32>
    %307 = math.tanh %301 : vector<2x128xf32>
    %308 = vector.extract_strided_slice %306 {offsets = [0, 0], sizes = [2, 32], strides = [1, 1]} : vector<2x128xf32> to vector<2x32xf32>
    %309 = vector.extract_strided_slice %306 {offsets = [0, 32], sizes = [2, 32], strides = [1, 1]} : vector<2x128xf32> to vector<2x32xf32>
    %310 = vector.extract_strided_slice %307 {offsets = [0, 64], sizes = [2, 32], strides = [1, 1]} : vector<2x128xf32> to vector<2x32xf32>
    %311 = vector.extract_strided_slice %306 {offsets = [0, 96], sizes = [2, 32], strides = [1, 1]} : vector<2x128xf32> to vector<2x32xf32>
    %312 = arith.mulf %309, %297 : vector<2x32xf32>
    %313 = arith.mulf %308, %310 : vector<2x32xf32>
    %314 = arith.addf %312, %313 : vector<2x32xf32>
    %315 = math.tanh %314 : vector<2x32xf32>
    %316 = arith.mulf %311, %315 : vector<2x32xf32>
    %cst_53 = arith.constant dense<0.000000e+00> : vector<2x128xf32>
    %317 = tpu.matmul %316, %152, %cst_53 {dimension_numbers = #tpu.dot_dimension_numbers<[1], [0], [0], [1], [0, 0, 1, 1], [], []>} : vector<2x32xf32>, vector<32x128xf32>, vector<2x128xf32> -> vector<2x128xf32>
    %318 = arith.addf %205, %317 : vector<2x128xf32>
    %319 = arith.negf %318 : vector<2x128xf32>
    %320 = math.exp %319 : vector<2x128xf32>
    %cst_54 = arith.constant 1.000000e+00 : f32
    %321 = vector.broadcast %cst_54 : f32 to vector<2x128xf32>
    %322 = arith.addf %321, %320 : vector<2x128xf32>
    %323 = arith.divf %321, %322 : vector<2x128xf32>
    %324 = math.tanh %318 : vector<2x128xf32>
    %325 = vector.extract_strided_slice %323 {offsets = [0, 0], sizes = [2, 32], strides = [1, 1]} : vector<2x128xf32> to vector<2x32xf32>
    %326 = vector.extract_strided_slice %323 {offsets = [0, 32], sizes = [2, 32], strides = [1, 1]} : vector<2x128xf32> to vector<2x32xf32>
    %327 = vector.extract_strided_slice %324 {offsets = [0, 64], sizes = [2, 32], strides = [1, 1]} : vector<2x128xf32> to vector<2x32xf32>
    %328 = vector.extract_strided_slice %323 {offsets = [0, 96], sizes = [2, 32], strides = [1, 1]} : vector<2x128xf32> to vector<2x32xf32>
    %329 = arith.mulf %326, %314 : vector<2x32xf32>
    %330 = arith.mulf %325, %327 : vector<2x32xf32>
    %331 = arith.addf %329, %330 : vector<2x32xf32>
    %332 = math.tanh %331 : vector<2x32xf32>
    %333 = arith.mulf %328, %332 : vector<2x32xf32>
    %cst_55 = arith.constant dense<0.000000e+00> : vector<2x128xf32>
    %334 = tpu.matmul %333, %152, %cst_55 {dimension_numbers = #tpu.dot_dimension_numbers<[1], [0], [0], [1], [0, 0, 1, 1], [], []>} : vector<2x32xf32>, vector<32x128xf32>, vector<2x128xf32> -> vector<2x128xf32>
    %335 = arith.addf %212, %334 : vector<2x128xf32>
    %336 = arith.negf %335 : vector<2x128xf32>
    %337 = math.exp %336 : vector<2x128xf32>
    %cst_56 = arith.constant 1.000000e+00 : f32
    %338 = vector.broadcast %cst_56 : f32 to vector<2x128xf32>
    %339 = arith.addf %338, %337 : vector<2x128xf32>
    %340 = arith.divf %338, %339 : vector<2x128xf32>
    %341 = math.tanh %335 : vector<2x128xf32>
    %342 = vector.extract_strided_slice %340 {offsets = [0, 0], sizes = [2, 32], strides = [1, 1]} : vector<2x128xf32> to vector<2x32xf32>
    %343 = vector.extract_strided_slice %340 {offsets = [0, 32], sizes = [2, 32], strides = [1, 1]} : vector<2x128xf32> to vector<2x32xf32>
    %344 = vector.extract_strided_slice %341 {offsets = [0, 64], sizes = [2, 32], strides = [1, 1]} : vector<2x128xf32> to vector<2x32xf32>
    %345 = vector.extract_strided_slice %340 {offsets = [0, 96], sizes = [2, 32], strides = [1, 1]} : vector<2x128xf32> to vector<2x32xf32>
    %346 = arith.mulf %343, %331 : vector<2x32xf32>
    %347 = arith.mulf %342, %344 : vector<2x32xf32>
    %348 = arith.addf %346, %347 : vector<2x32xf32>
    %349 = math.tanh %348 : vector<2x32xf32>
    %350 = arith.mulf %345, %349 : vector<2x32xf32>
    %351 = arith.select %150, %231, %350 : vector<2x32xi1>, vector<2x32xf32>
    %352 = arith.select %150, %248, %333 : vector<2x32xi1>, vector<2x32xf32>
    %353 = arith.select %150, %265, %316 : vector<2x32xi1>, vector<2x32xf32>
    %354 = arith.select %150, %282, %299 : vector<2x32xi1>, vector<2x32xf32>
    %355 = arith.select %150, %299, %282 : vector<2x32xi1>, vector<2x32xf32>
    %356 = arith.select %150, %316, %265 : vector<2x32xi1>, vector<2x32xf32>
    %357 = arith.select %150, %333, %248 : vector<2x32xi1>, vector<2x32xf32>
    %358 = arith.select %150, %350, %231 : vector<2x32xi1>, vector<2x32xf32>
    %359 = vector.extract_strided_slice %351 {offsets = [0, 0], sizes = [1, 32], strides = [1, 1]} : vector<2x32xf32> to vector<1x32xf32>
    %360 = vector.extract_strided_slice %352 {offsets = [0, 0], sizes = [1, 32], strides = [1, 1]} : vector<2x32xf32> to vector<1x32xf32>
    %361 = vector.extract_strided_slice %353 {offsets = [0, 0], sizes = [1, 32], strides = [1, 1]} : vector<2x32xf32> to vector<1x32xf32>
    %362 = vector.extract_strided_slice %354 {offsets = [0, 0], sizes = [1, 32], strides = [1, 1]} : vector<2x32xf32> to vector<1x32xf32>
    %363 = vector.extract_strided_slice %355 {offsets = [0, 0], sizes = [1, 32], strides = [1, 1]} : vector<2x32xf32> to vector<1x32xf32>
    %364 = vector.extract_strided_slice %356 {offsets = [0, 0], sizes = [1, 32], strides = [1, 1]} : vector<2x32xf32> to vector<1x32xf32>
    %365 = vector.extract_strided_slice %357 {offsets = [0, 0], sizes = [1, 32], strides = [1, 1]} : vector<2x32xf32> to vector<1x32xf32>
    %366 = vector.extract_strided_slice %358 {offsets = [0, 0], sizes = [1, 32], strides = [1, 1]} : vector<2x32xf32> to vector<1x32xf32>
    %367 = vector.extract_strided_slice %351 {offsets = [1, 0], sizes = [1, 32], strides = [1, 1]} : vector<2x32xf32> to vector<1x32xf32>
    %368 = vector.extract_strided_slice %352 {offsets = [1, 0], sizes = [1, 32], strides = [1, 1]} : vector<2x32xf32> to vector<1x32xf32>
    %369 = vector.extract_strided_slice %353 {offsets = [1, 0], sizes = [1, 32], strides = [1, 1]} : vector<2x32xf32> to vector<1x32xf32>
    %370 = vector.extract_strided_slice %354 {offsets = [1, 0], sizes = [1, 32], strides = [1, 1]} : vector<2x32xf32> to vector<1x32xf32>
    %371 = vector.extract_strided_slice %355 {offsets = [1, 0], sizes = [1, 32], strides = [1, 1]} : vector<2x32xf32> to vector<1x32xf32>
    %372 = vector.extract_strided_slice %356 {offsets = [1, 0], sizes = [1, 32], strides = [1, 1]} : vector<2x32xf32> to vector<1x32xf32>
    %373 = vector.extract_strided_slice %357 {offsets = [1, 0], sizes = [1, 32], strides = [1, 1]} : vector<2x32xf32> to vector<1x32xf32>
    %374 = vector.extract_strided_slice %358 {offsets = [1, 0], sizes = [1, 32], strides = [1, 1]} : vector<2x32xf32> to vector<1x32xf32>
    %375 = tpu.concatenate %359, %360, %361, %362, %363, %364, %365, %366, %367, %368, %369, %370, %371, %372, %373, %374 in 0 : vector<1x32xf32>, vector<1x32xf32>, vector<1x32xf32>, vector<1x32xf32>, vector<1x32xf32>, vector<1x32xf32>, vector<1x32xf32>, vector<1x32xf32>, vector<1x32xf32>, vector<1x32xf32>, vector<1x32xf32>, vector<1x32xf32>, vector<1x32xf32>, vector<1x32xf32>, vector<1x32xf32>, vector<1x32xf32> -> vector<16x32xf32>
    %c288 = arith.constant 288 : index
    %c0_57 = arith.constant 0 : index
    %376 = vector.load %arg2[%c288, %c0_57] : memref<384x128xf32, #tpu.memory_space<vmem>>, vector<32x128xf32>
    %c320 = arith.constant 320 : index
    %c0_58 = arith.constant 0 : index
    %377 = vector.load %arg2[%c320, %c0_58] : memref<384x128xf32, #tpu.memory_space<vmem>>, vector<32x128xf32>
    %378 = vector.extract_strided_slice %0 {offsets = [11, 0], sizes = [1, 128], strides = [1, 1]} : vector<16x128xf32> to vector<1x128xf32>
    %cst_59 = arith.constant dense<0.000000e+00> : vector<16x128xf32>
    %379 = tpu.matmul %375, %376, %cst_59 {dimension_numbers = #tpu.dot_dimension_numbers<[1], [0], [0], [1], [0, 0, 1, 1], [], []>} : vector<16x32xf32>, vector<32x128xf32>, vector<16x128xf32> -> vector<16x128xf32>
    %380 = vector.broadcast %378 : vector<1x128xf32> to vector<16x128xf32>
    %381 = arith.addf %379, %380 : vector<16x128xf32>
    %382 = vector.extract_strided_slice %381 {offsets = [0, 0], sizes = [1, 128], strides = [1, 1]} : vector<16x128xf32> to vector<1x128xf32>
    %383 = vector.extract_strided_slice %381 {offsets = [8, 0], sizes = [1, 128], strides = [1, 1]} : vector<16x128xf32> to vector<1x128xf32>
    %384 = tpu.concatenate %382, %383 in 0 : vector<1x128xf32>, vector<1x128xf32> -> vector<2x128xf32>
    %385 = vector.extract_strided_slice %381 {offsets = [7, 0], sizes = [1, 128], strides = [1, 1]} : vector<16x128xf32> to vector<1x128xf32>
    %386 = vector.extract_strided_slice %381 {offsets = [15, 0], sizes = [1, 128], strides = [1, 1]} : vector<16x128xf32> to vector<1x128xf32>
    %387 = tpu.concatenate %385, %386 in 0 : vector<1x128xf32>, vector<1x128xf32> -> vector<2x128xf32>
    %388 = arith.select %147, %384, %387 : vector<2x128xi1>, vector<2x128xf32>
    %389 = vector.extract_strided_slice %381 {offsets = [1, 0], sizes = [1, 128], strides = [1, 1]} : vector<16x128xf32> to vector<1x128xf32>
    %390 = vector.extract_strided_slice %381 {offsets = [9, 0], sizes = [1, 128], strides = [1, 1]} : vector<16x128xf32> to vector<1x128xf32>
    %391 = tpu.concatenate %389, %390 in 0 : vector<1x128xf32>, vector<1x128xf32> -> vector<2x128xf32>
    %392 = vector.extract_strided_slice %381 {offsets = [6, 0], sizes = [1, 128], strides = [1, 1]} : vector<16x128xf32> to vector<1x128xf32>
    %393 = vector.extract_strided_slice %381 {offsets = [14, 0], sizes = [1, 128], strides = [1, 1]} : vector<16x128xf32> to vector<1x128xf32>
    %394 = tpu.concatenate %392, %393 in 0 : vector<1x128xf32>, vector<1x128xf32> -> vector<2x128xf32>
    %395 = arith.select %147, %391, %394 : vector<2x128xi1>, vector<2x128xf32>
    %396 = vector.extract_strided_slice %381 {offsets = [2, 0], sizes = [1, 128], strides = [1, 1]} : vector<16x128xf32> to vector<1x128xf32>
    %397 = vector.extract_strided_slice %381 {offsets = [10, 0], sizes = [1, 128], strides = [1, 1]} : vector<16x128xf32> to vector<1x128xf32>
    %398 = tpu.concatenate %396, %397 in 0 : vector<1x128xf32>, vector<1x128xf32> -> vector<2x128xf32>
    %399 = vector.extract_strided_slice %381 {offsets = [5, 0], sizes = [1, 128], strides = [1, 1]} : vector<16x128xf32> to vector<1x128xf32>
    %400 = vector.extract_strided_slice %381 {offsets = [13, 0], sizes = [1, 128], strides = [1, 1]} : vector<16x128xf32> to vector<1x128xf32>
    %401 = tpu.concatenate %399, %400 in 0 : vector<1x128xf32>, vector<1x128xf32> -> vector<2x128xf32>
    %402 = arith.select %147, %398, %401 : vector<2x128xi1>, vector<2x128xf32>
    %403 = vector.extract_strided_slice %381 {offsets = [3, 0], sizes = [1, 128], strides = [1, 1]} : vector<16x128xf32> to vector<1x128xf32>
    %404 = vector.extract_strided_slice %381 {offsets = [11, 0], sizes = [1, 128], strides = [1, 1]} : vector<16x128xf32> to vector<1x128xf32>
    %405 = tpu.concatenate %403, %404 in 0 : vector<1x128xf32>, vector<1x128xf32> -> vector<2x128xf32>
    %406 = vector.extract_strided_slice %381 {offsets = [4, 0], sizes = [1, 128], strides = [1, 1]} : vector<16x128xf32> to vector<1x128xf32>
    %407 = vector.extract_strided_slice %381 {offsets = [12, 0], sizes = [1, 128], strides = [1, 1]} : vector<16x128xf32> to vector<1x128xf32>
    %408 = tpu.concatenate %406, %407 in 0 : vector<1x128xf32>, vector<1x128xf32> -> vector<2x128xf32>
    %409 = arith.select %147, %405, %408 : vector<2x128xi1>, vector<2x128xf32>
    %410 = vector.extract_strided_slice %381 {offsets = [4, 0], sizes = [1, 128], strides = [1, 1]} : vector<16x128xf32> to vector<1x128xf32>
    %411 = vector.extract_strided_slice %381 {offsets = [12, 0], sizes = [1, 128], strides = [1, 1]} : vector<16x128xf32> to vector<1x128xf32>
    %412 = tpu.concatenate %410, %411 in 0 : vector<1x128xf32>, vector<1x128xf32> -> vector<2x128xf32>
    %413 = vector.extract_strided_slice %381 {offsets = [3, 0], sizes = [1, 128], strides = [1, 1]} : vector<16x128xf32> to vector<1x128xf32>
    %414 = vector.extract_strided_slice %381 {offsets = [11, 0], sizes = [1, 128], strides = [1, 1]} : vector<16x128xf32> to vector<1x128xf32>
    %415 = tpu.concatenate %413, %414 in 0 : vector<1x128xf32>, vector<1x128xf32> -> vector<2x128xf32>
    %416 = arith.select %147, %412, %415 : vector<2x128xi1>, vector<2x128xf32>
    %417 = vector.extract_strided_slice %381 {offsets = [5, 0], sizes = [1, 128], strides = [1, 1]} : vector<16x128xf32> to vector<1x128xf32>
    %418 = vector.extract_strided_slice %381 {offsets = [13, 0], sizes = [1, 128], strides = [1, 1]} : vector<16x128xf32> to vector<1x128xf32>
    %419 = tpu.concatenate %417, %418 in 0 : vector<1x128xf32>, vector<1x128xf32> -> vector<2x128xf32>
    %420 = vector.extract_strided_slice %381 {offsets = [2, 0], sizes = [1, 128], strides = [1, 1]} : vector<16x128xf32> to vector<1x128xf32>
    %421 = vector.extract_strided_slice %381 {offsets = [10, 0], sizes = [1, 128], strides = [1, 1]} : vector<16x128xf32> to vector<1x128xf32>
    %422 = tpu.concatenate %420, %421 in 0 : vector<1x128xf32>, vector<1x128xf32> -> vector<2x128xf32>
    %423 = arith.select %147, %419, %422 : vector<2x128xi1>, vector<2x128xf32>
    %424 = vector.extract_strided_slice %381 {offsets = [6, 0], sizes = [1, 128], strides = [1, 1]} : vector<16x128xf32> to vector<1x128xf32>
    %425 = vector.extract_strided_slice %381 {offsets = [14, 0], sizes = [1, 128], strides = [1, 1]} : vector<16x128xf32> to vector<1x128xf32>
    %426 = tpu.concatenate %424, %425 in 0 : vector<1x128xf32>, vector<1x128xf32> -> vector<2x128xf32>
    %427 = vector.extract_strided_slice %381 {offsets = [1, 0], sizes = [1, 128], strides = [1, 1]} : vector<16x128xf32> to vector<1x128xf32>
    %428 = vector.extract_strided_slice %381 {offsets = [9, 0], sizes = [1, 128], strides = [1, 1]} : vector<16x128xf32> to vector<1x128xf32>
    %429 = tpu.concatenate %427, %428 in 0 : vector<1x128xf32>, vector<1x128xf32> -> vector<2x128xf32>
    %430 = arith.select %147, %426, %429 : vector<2x128xi1>, vector<2x128xf32>
    %431 = vector.extract_strided_slice %381 {offsets = [7, 0], sizes = [1, 128], strides = [1, 1]} : vector<16x128xf32> to vector<1x128xf32>
    %432 = vector.extract_strided_slice %381 {offsets = [15, 0], sizes = [1, 128], strides = [1, 1]} : vector<16x128xf32> to vector<1x128xf32>
    %433 = tpu.concatenate %431, %432 in 0 : vector<1x128xf32>, vector<1x128xf32> -> vector<2x128xf32>
    %434 = vector.extract_strided_slice %381 {offsets = [0, 0], sizes = [1, 128], strides = [1, 1]} : vector<16x128xf32> to vector<1x128xf32>
    %435 = vector.extract_strided_slice %381 {offsets = [8, 0], sizes = [1, 128], strides = [1, 1]} : vector<16x128xf32> to vector<1x128xf32>
    %436 = tpu.concatenate %434, %435 in 0 : vector<1x128xf32>, vector<1x128xf32> -> vector<2x128xf32>
    %437 = arith.select %147, %433, %436 : vector<2x128xi1>, vector<2x128xf32>
    %cst_60 = arith.constant 0.000000e+00 : f32
    %438 = vector.broadcast %cst_60 : f32 to vector<2x32xf32>
    %cst_61 = arith.constant 0.000000e+00 : f32
    %439 = vector.broadcast %cst_61 : f32 to vector<2x32xf32>
    %cst_62 = arith.constant dense<0.000000e+00> : vector<2x128xf32>
    %440 = tpu.matmul %438, %377, %cst_62 {dimension_numbers = #tpu.dot_dimension_numbers<[1], [0], [0], [1], [0, 0, 1, 1], [], []>} : vector<2x32xf32>, vector<32x128xf32>, vector<2x128xf32> -> vector<2x128xf32>
    %441 = arith.addf %388, %440 : vector<2x128xf32>
    %442 = arith.negf %441 : vector<2x128xf32>
    %443 = math.exp %442 : vector<2x128xf32>
    %cst_63 = arith.constant 1.000000e+00 : f32
    %444 = vector.broadcast %cst_63 : f32 to vector<2x128xf32>
    %445 = arith.addf %444, %443 : vector<2x128xf32>
    %446 = arith.divf %444, %445 : vector<2x128xf32>
    %447 = math.tanh %441 : vector<2x128xf32>
    %448 = vector.extract_strided_slice %446 {offsets = [0, 0], sizes = [2, 32], strides = [1, 1]} : vector<2x128xf32> to vector<2x32xf32>
    %449 = vector.extract_strided_slice %446 {offsets = [0, 32], sizes = [2, 32], strides = [1, 1]} : vector<2x128xf32> to vector<2x32xf32>
    %450 = vector.extract_strided_slice %447 {offsets = [0, 64], sizes = [2, 32], strides = [1, 1]} : vector<2x128xf32> to vector<2x32xf32>
    %451 = vector.extract_strided_slice %446 {offsets = [0, 96], sizes = [2, 32], strides = [1, 1]} : vector<2x128xf32> to vector<2x32xf32>
    %452 = arith.mulf %449, %439 : vector<2x32xf32>
    %453 = arith.mulf %448, %450 : vector<2x32xf32>
    %454 = arith.addf %452, %453 : vector<2x32xf32>
    %455 = math.tanh %454 : vector<2x32xf32>
    %456 = arith.mulf %451, %455 : vector<2x32xf32>
    %cst_64 = arith.constant dense<0.000000e+00> : vector<2x128xf32>
    %457 = tpu.matmul %456, %377, %cst_64 {dimension_numbers = #tpu.dot_dimension_numbers<[1], [0], [0], [1], [0, 0, 1, 1], [], []>} : vector<2x32xf32>, vector<32x128xf32>, vector<2x128xf32> -> vector<2x128xf32>
    %458 = arith.addf %395, %457 : vector<2x128xf32>
    %459 = arith.negf %458 : vector<2x128xf32>
    %460 = math.exp %459 : vector<2x128xf32>
    %cst_65 = arith.constant 1.000000e+00 : f32
    %461 = vector.broadcast %cst_65 : f32 to vector<2x128xf32>
    %462 = arith.addf %461, %460 : vector<2x128xf32>
    %463 = arith.divf %461, %462 : vector<2x128xf32>
    %464 = math.tanh %458 : vector<2x128xf32>
    %465 = vector.extract_strided_slice %463 {offsets = [0, 0], sizes = [2, 32], strides = [1, 1]} : vector<2x128xf32> to vector<2x32xf32>
    %466 = vector.extract_strided_slice %463 {offsets = [0, 32], sizes = [2, 32], strides = [1, 1]} : vector<2x128xf32> to vector<2x32xf32>
    %467 = vector.extract_strided_slice %464 {offsets = [0, 64], sizes = [2, 32], strides = [1, 1]} : vector<2x128xf32> to vector<2x32xf32>
    %468 = vector.extract_strided_slice %463 {offsets = [0, 96], sizes = [2, 32], strides = [1, 1]} : vector<2x128xf32> to vector<2x32xf32>
    %469 = arith.mulf %466, %454 : vector<2x32xf32>
    %470 = arith.mulf %465, %467 : vector<2x32xf32>
    %471 = arith.addf %469, %470 : vector<2x32xf32>
    %472 = math.tanh %471 : vector<2x32xf32>
    %473 = arith.mulf %468, %472 : vector<2x32xf32>
    %cst_66 = arith.constant dense<0.000000e+00> : vector<2x128xf32>
    %474 = tpu.matmul %473, %377, %cst_66 {dimension_numbers = #tpu.dot_dimension_numbers<[1], [0], [0], [1], [0, 0, 1, 1], [], []>} : vector<2x32xf32>, vector<32x128xf32>, vector<2x128xf32> -> vector<2x128xf32>
    %475 = arith.addf %402, %474 : vector<2x128xf32>
    %476 = arith.negf %475 : vector<2x128xf32>
    %477 = math.exp %476 : vector<2x128xf32>
    %cst_67 = arith.constant 1.000000e+00 : f32
    %478 = vector.broadcast %cst_67 : f32 to vector<2x128xf32>
    %479 = arith.addf %478, %477 : vector<2x128xf32>
    %480 = arith.divf %478, %479 : vector<2x128xf32>
    %481 = math.tanh %475 : vector<2x128xf32>
    %482 = vector.extract_strided_slice %480 {offsets = [0, 0], sizes = [2, 32], strides = [1, 1]} : vector<2x128xf32> to vector<2x32xf32>
    %483 = vector.extract_strided_slice %480 {offsets = [0, 32], sizes = [2, 32], strides = [1, 1]} : vector<2x128xf32> to vector<2x32xf32>
    %484 = vector.extract_strided_slice %481 {offsets = [0, 64], sizes = [2, 32], strides = [1, 1]} : vector<2x128xf32> to vector<2x32xf32>
    %485 = vector.extract_strided_slice %480 {offsets = [0, 96], sizes = [2, 32], strides = [1, 1]} : vector<2x128xf32> to vector<2x32xf32>
    %486 = arith.mulf %483, %471 : vector<2x32xf32>
    %487 = arith.mulf %482, %484 : vector<2x32xf32>
    %488 = arith.addf %486, %487 : vector<2x32xf32>
    %489 = math.tanh %488 : vector<2x32xf32>
    %490 = arith.mulf %485, %489 : vector<2x32xf32>
    %cst_68 = arith.constant dense<0.000000e+00> : vector<2x128xf32>
    %491 = tpu.matmul %490, %377, %cst_68 {dimension_numbers = #tpu.dot_dimension_numbers<[1], [0], [0], [1], [0, 0, 1, 1], [], []>} : vector<2x32xf32>, vector<32x128xf32>, vector<2x128xf32> -> vector<2x128xf32>
    %492 = arith.addf %409, %491 : vector<2x128xf32>
    %493 = arith.negf %492 : vector<2x128xf32>
    %494 = math.exp %493 : vector<2x128xf32>
    %cst_69 = arith.constant 1.000000e+00 : f32
    %495 = vector.broadcast %cst_69 : f32 to vector<2x128xf32>
    %496 = arith.addf %495, %494 : vector<2x128xf32>
    %497 = arith.divf %495, %496 : vector<2x128xf32>
    %498 = math.tanh %492 : vector<2x128xf32>
    %499 = vector.extract_strided_slice %497 {offsets = [0, 0], sizes = [2, 32], strides = [1, 1]} : vector<2x128xf32> to vector<2x32xf32>
    %500 = vector.extract_strided_slice %497 {offsets = [0, 32], sizes = [2, 32], strides = [1, 1]} : vector<2x128xf32> to vector<2x32xf32>
    %501 = vector.extract_strided_slice %498 {offsets = [0, 64], sizes = [2, 32], strides = [1, 1]} : vector<2x128xf32> to vector<2x32xf32>
    %502 = vector.extract_strided_slice %497 {offsets = [0, 96], sizes = [2, 32], strides = [1, 1]} : vector<2x128xf32> to vector<2x32xf32>
    %503 = arith.mulf %500, %488 : vector<2x32xf32>
    %504 = arith.mulf %499, %501 : vector<2x32xf32>
    %505 = arith.addf %503, %504 : vector<2x32xf32>
    %506 = math.tanh %505 : vector<2x32xf32>
    %507 = arith.mulf %502, %506 : vector<2x32xf32>
    %cst_70 = arith.constant dense<0.000000e+00> : vector<2x128xf32>
    %508 = tpu.matmul %507, %377, %cst_70 {dimension_numbers = #tpu.dot_dimension_numbers<[1], [0], [0], [1], [0, 0, 1, 1], [], []>} : vector<2x32xf32>, vector<32x128xf32>, vector<2x128xf32> -> vector<2x128xf32>
    %509 = arith.addf %416, %508 : vector<2x128xf32>
    %510 = arith.negf %509 : vector<2x128xf32>
    %511 = math.exp %510 : vector<2x128xf32>
    %cst_71 = arith.constant 1.000000e+00 : f32
    %512 = vector.broadcast %cst_71 : f32 to vector<2x128xf32>
    %513 = arith.addf %512, %511 : vector<2x128xf32>
    %514 = arith.divf %512, %513 : vector<2x128xf32>
    %515 = math.tanh %509 : vector<2x128xf32>
    %516 = vector.extract_strided_slice %514 {offsets = [0, 0], sizes = [2, 32], strides = [1, 1]} : vector<2x128xf32> to vector<2x32xf32>
    %517 = vector.extract_strided_slice %514 {offsets = [0, 32], sizes = [2, 32], strides = [1, 1]} : vector<2x128xf32> to vector<2x32xf32>
    %518 = vector.extract_strided_slice %515 {offsets = [0, 64], sizes = [2, 32], strides = [1, 1]} : vector<2x128xf32> to vector<2x32xf32>
    %519 = vector.extract_strided_slice %514 {offsets = [0, 96], sizes = [2, 32], strides = [1, 1]} : vector<2x128xf32> to vector<2x32xf32>
    %520 = arith.mulf %517, %505 : vector<2x32xf32>
    %521 = arith.mulf %516, %518 : vector<2x32xf32>
    %522 = arith.addf %520, %521 : vector<2x32xf32>
    %523 = math.tanh %522 : vector<2x32xf32>
    %524 = arith.mulf %519, %523 : vector<2x32xf32>
    %cst_72 = arith.constant dense<0.000000e+00> : vector<2x128xf32>
    %525 = tpu.matmul %524, %377, %cst_72 {dimension_numbers = #tpu.dot_dimension_numbers<[1], [0], [0], [1], [0, 0, 1, 1], [], []>} : vector<2x32xf32>, vector<32x128xf32>, vector<2x128xf32> -> vector<2x128xf32>
    %526 = arith.addf %423, %525 : vector<2x128xf32>
    %527 = arith.negf %526 : vector<2x128xf32>
    %528 = math.exp %527 : vector<2x128xf32>
    %cst_73 = arith.constant 1.000000e+00 : f32
    %529 = vector.broadcast %cst_73 : f32 to vector<2x128xf32>
    %530 = arith.addf %529, %528 : vector<2x128xf32>
    %531 = arith.divf %529, %530 : vector<2x128xf32>
    %532 = math.tanh %526 : vector<2x128xf32>
    %533 = vector.extract_strided_slice %531 {offsets = [0, 0], sizes = [2, 32], strides = [1, 1]} : vector<2x128xf32> to vector<2x32xf32>
    %534 = vector.extract_strided_slice %531 {offsets = [0, 32], sizes = [2, 32], strides = [1, 1]} : vector<2x128xf32> to vector<2x32xf32>
    %535 = vector.extract_strided_slice %532 {offsets = [0, 64], sizes = [2, 32], strides = [1, 1]} : vector<2x128xf32> to vector<2x32xf32>
    %536 = vector.extract_strided_slice %531 {offsets = [0, 96], sizes = [2, 32], strides = [1, 1]} : vector<2x128xf32> to vector<2x32xf32>
    %537 = arith.mulf %534, %522 : vector<2x32xf32>
    %538 = arith.mulf %533, %535 : vector<2x32xf32>
    %539 = arith.addf %537, %538 : vector<2x32xf32>
    %540 = math.tanh %539 : vector<2x32xf32>
    %541 = arith.mulf %536, %540 : vector<2x32xf32>
    %cst_74 = arith.constant dense<0.000000e+00> : vector<2x128xf32>
    %542 = tpu.matmul %541, %377, %cst_74 {dimension_numbers = #tpu.dot_dimension_numbers<[1], [0], [0], [1], [0, 0, 1, 1], [], []>} : vector<2x32xf32>, vector<32x128xf32>, vector<2x128xf32> -> vector<2x128xf32>
    %543 = arith.addf %430, %542 : vector<2x128xf32>
    %544 = arith.negf %543 : vector<2x128xf32>
    %545 = math.exp %544 : vector<2x128xf32>
    %cst_75 = arith.constant 1.000000e+00 : f32
    %546 = vector.broadcast %cst_75 : f32 to vector<2x128xf32>
    %547 = arith.addf %546, %545 : vector<2x128xf32>
    %548 = arith.divf %546, %547 : vector<2x128xf32>
    %549 = math.tanh %543 : vector<2x128xf32>
    %550 = vector.extract_strided_slice %548 {offsets = [0, 0], sizes = [2, 32], strides = [1, 1]} : vector<2x128xf32> to vector<2x32xf32>
    %551 = vector.extract_strided_slice %548 {offsets = [0, 32], sizes = [2, 32], strides = [1, 1]} : vector<2x128xf32> to vector<2x32xf32>
    %552 = vector.extract_strided_slice %549 {offsets = [0, 64], sizes = [2, 32], strides = [1, 1]} : vector<2x128xf32> to vector<2x32xf32>
    %553 = vector.extract_strided_slice %548 {offsets = [0, 96], sizes = [2, 32], strides = [1, 1]} : vector<2x128xf32> to vector<2x32xf32>
    %554 = arith.mulf %551, %539 : vector<2x32xf32>
    %555 = arith.mulf %550, %552 : vector<2x32xf32>
    %556 = arith.addf %554, %555 : vector<2x32xf32>
    %557 = math.tanh %556 : vector<2x32xf32>
    %558 = arith.mulf %553, %557 : vector<2x32xf32>
    %cst_76 = arith.constant dense<0.000000e+00> : vector<2x128xf32>
    %559 = tpu.matmul %558, %377, %cst_76 {dimension_numbers = #tpu.dot_dimension_numbers<[1], [0], [0], [1], [0, 0, 1, 1], [], []>} : vector<2x32xf32>, vector<32x128xf32>, vector<2x128xf32> -> vector<2x128xf32>
    %560 = arith.addf %437, %559 : vector<2x128xf32>
    %561 = arith.negf %560 : vector<2x128xf32>
    %562 = math.exp %561 : vector<2x128xf32>
    %cst_77 = arith.constant 1.000000e+00 : f32
    %563 = vector.broadcast %cst_77 : f32 to vector<2x128xf32>
    %564 = arith.addf %563, %562 : vector<2x128xf32>
    %565 = arith.divf %563, %564 : vector<2x128xf32>
    %566 = math.tanh %560 : vector<2x128xf32>
    %567 = vector.extract_strided_slice %565 {offsets = [0, 0], sizes = [2, 32], strides = [1, 1]} : vector<2x128xf32> to vector<2x32xf32>
    %568 = vector.extract_strided_slice %565 {offsets = [0, 32], sizes = [2, 32], strides = [1, 1]} : vector<2x128xf32> to vector<2x32xf32>
    %569 = vector.extract_strided_slice %566 {offsets = [0, 64], sizes = [2, 32], strides = [1, 1]} : vector<2x128xf32> to vector<2x32xf32>
    %570 = vector.extract_strided_slice %565 {offsets = [0, 96], sizes = [2, 32], strides = [1, 1]} : vector<2x128xf32> to vector<2x32xf32>
    %571 = arith.mulf %568, %556 : vector<2x32xf32>
    %572 = arith.mulf %567, %569 : vector<2x32xf32>
    %573 = arith.addf %571, %572 : vector<2x32xf32>
    %574 = math.tanh %573 : vector<2x32xf32>
    %575 = arith.mulf %570, %574 : vector<2x32xf32>
    %576 = arith.select %150, %456, %575 : vector<2x32xi1>, vector<2x32xf32>
    %577 = arith.select %150, %473, %558 : vector<2x32xi1>, vector<2x32xf32>
    %578 = arith.select %150, %490, %541 : vector<2x32xi1>, vector<2x32xf32>
    %579 = arith.select %150, %507, %524 : vector<2x32xi1>, vector<2x32xf32>
    %580 = arith.select %150, %524, %507 : vector<2x32xi1>, vector<2x32xf32>
    %581 = arith.select %150, %541, %490 : vector<2x32xi1>, vector<2x32xf32>
    %582 = arith.select %150, %558, %473 : vector<2x32xi1>, vector<2x32xf32>
    %583 = arith.select %150, %575, %456 : vector<2x32xi1>, vector<2x32xf32>
    %584 = vector.extract_strided_slice %576 {offsets = [0, 0], sizes = [1, 32], strides = [1, 1]} : vector<2x32xf32> to vector<1x32xf32>
    %585 = vector.extract_strided_slice %577 {offsets = [0, 0], sizes = [1, 32], strides = [1, 1]} : vector<2x32xf32> to vector<1x32xf32>
    %586 = vector.extract_strided_slice %578 {offsets = [0, 0], sizes = [1, 32], strides = [1, 1]} : vector<2x32xf32> to vector<1x32xf32>
    %587 = vector.extract_strided_slice %579 {offsets = [0, 0], sizes = [1, 32], strides = [1, 1]} : vector<2x32xf32> to vector<1x32xf32>
    %588 = vector.extract_strided_slice %580 {offsets = [0, 0], sizes = [1, 32], strides = [1, 1]} : vector<2x32xf32> to vector<1x32xf32>
    %589 = vector.extract_strided_slice %581 {offsets = [0, 0], sizes = [1, 32], strides = [1, 1]} : vector<2x32xf32> to vector<1x32xf32>
    %590 = vector.extract_strided_slice %582 {offsets = [0, 0], sizes = [1, 32], strides = [1, 1]} : vector<2x32xf32> to vector<1x32xf32>
    %591 = vector.extract_strided_slice %583 {offsets = [0, 0], sizes = [1, 32], strides = [1, 1]} : vector<2x32xf32> to vector<1x32xf32>
    %592 = vector.extract_strided_slice %576 {offsets = [1, 0], sizes = [1, 32], strides = [1, 1]} : vector<2x32xf32> to vector<1x32xf32>
    %593 = vector.extract_strided_slice %577 {offsets = [1, 0], sizes = [1, 32], strides = [1, 1]} : vector<2x32xf32> to vector<1x32xf32>
    %594 = vector.extract_strided_slice %578 {offsets = [1, 0], sizes = [1, 32], strides = [1, 1]} : vector<2x32xf32> to vector<1x32xf32>
    %595 = vector.extract_strided_slice %579 {offsets = [1, 0], sizes = [1, 32], strides = [1, 1]} : vector<2x32xf32> to vector<1x32xf32>
    %596 = vector.extract_strided_slice %580 {offsets = [1, 0], sizes = [1, 32], strides = [1, 1]} : vector<2x32xf32> to vector<1x32xf32>
    %597 = vector.extract_strided_slice %581 {offsets = [1, 0], sizes = [1, 32], strides = [1, 1]} : vector<2x32xf32> to vector<1x32xf32>
    %598 = vector.extract_strided_slice %582 {offsets = [1, 0], sizes = [1, 32], strides = [1, 1]} : vector<2x32xf32> to vector<1x32xf32>
    %599 = vector.extract_strided_slice %583 {offsets = [1, 0], sizes = [1, 32], strides = [1, 1]} : vector<2x32xf32> to vector<1x32xf32>
    %600 = tpu.concatenate %584, %585, %586, %587, %588, %589, %590, %591, %592, %593, %594, %595, %596, %597, %598, %599 in 0 : vector<1x32xf32>, vector<1x32xf32>, vector<1x32xf32>, vector<1x32xf32>, vector<1x32xf32>, vector<1x32xf32>, vector<1x32xf32>, vector<1x32xf32>, vector<1x32xf32>, vector<1x32xf32>, vector<1x32xf32>, vector<1x32xf32>, vector<1x32xf32>, vector<1x32xf32>, vector<1x32xf32>, vector<1x32xf32> -> vector<16x32xf32>
    %c352 = arith.constant 352 : index
    %c0_78 = arith.constant 0 : index
    %601 = vector.load %arg2[%c352, %c0_78] : memref<384x128xf32, #tpu.memory_space<vmem>>, vector<32x128xf32>
    %cst_79 = arith.constant dense<0.000000e+00> : vector<16x128xf32>
    %602 = tpu.matmul %600, %601, %cst_79 {dimension_numbers = #tpu.dot_dimension_numbers<[1], [0], [0], [1], [0, 0, 1, 1], [], []>} : vector<16x32xf32>, vector<32x128xf32>, vector<16x128xf32> -> vector<16x128xf32>
    %603 = vector.extract_strided_slice %0 {offsets = [12, 0], sizes = [1, 128], strides = [1, 1]} : vector<16x128xf32> to vector<1x128xf32>
    %604 = vector.broadcast %603 : vector<1x128xf32> to vector<16x128xf32>
    %605 = arith.addf %602, %604 : vector<16x128xf32>
    %c0_80 = arith.constant 0 : index
    %c0_81 = arith.constant 0 : index
    %606 = vector.load %arg3[%c0_80, %c0_81] : memref<16x128xf32, #tpu.memory_space<vmem>>, vector<16x128xf32>
    tpu.vector_store %arg3[%c0_80, %c0_81], %605 {strides = array<i32>} : memref<16x128xf32, #tpu.memory_space<vmem>>, vector<16x128xf32>,
    return
  }
}

</mosaic_0001>

<bundles_post_ra>
// kernel: ner_head_forward.1
= control target key start
LH: loop header
LB: loop body
LE: loop exit
PB: predicated region body
PF: predicated region fallthrough
CT: control target
= control target key end

     0   :  { %8 = vsyncpa [#allocation3], 0  ;;  %s2304_s15 = smov [#allocation2]   ;;  %s2305_s17 = smov 128   ;;  %s2922_s0 = inlined_call_operand.vmem [shape: f32[16,32], index: 0, kind: input, shape index: {}]   ;;  %s2923_s1 = inlined_call_operand.vmem [shape: f32[16,128], index: 1, kind: input, shape index: {}]   ;;  %s2924_s2 = inlined_call_operand.hbm [shape: f32[384,128], index: 2, kind: input, shape index: {}]   ;;  %s2925_s3 = inlined_call_operand.vmem [shape: f32[16,128], index: 3, kind: output, shape index: {}]  }
   0x1   :  { %s17_s14 = sshll.u32 %s2924_s2, 4  ;;  %s19_s16 = sshll.u32 %s2304_s15, 4  ;;  %s18_s14 = int_to_ptr.hbm [resolvable:$true] %s17_s14  ;;  %s20_s16 = int_to_ptr.vmem [resolvable:$true] %s19_s16 }
   0x2   :  { %s2306_s18 = smov 8  }
   0x3   :  { %25 = dma.hbm_to_vmem [thread:$0]  %s18_s14, 6144, %s20_s16, [#allocation3], %s2305_s17, %s2305_s17, %s2306_s18  }
   0x4   :  { %2302 = dma.done.wait [#allocation3], 6144  }
   0x5   :  { %2303 = vsyncadd [#allocation3], 4294961152  ;;  %vm34_vm0 = vcmask 261120   ;;  %v32_v0 = vld [vmem:[%s2922_s0] sm:$0xff]  ;;  %v33_v2 = vld [vmem:[%s2922_s0 + $0x8] sm:$0xff]  ;;  %v2307_v4 = vmov 32.0  }
   0x6   :  { %v35_v1 = vsel %vm34_vm0, %v32_v0, 0.0  ;;  %v38_v3 = vsel %vm34_vm0, %v33_v2, 0.0  ;;  %2115 = vrcp.f32 %v2307_v4  ;;  %v95_v21 = vld [vmem:[#allocation2 + $0x18] sm:$0xff]  ;;  %v94_v22 = vld [vmem:[#allocation2 + $0x10] sm:$0xff]  ;;  %v93_v23 = vld [vmem:[#allocation2 + $0x8] sm:$0xff]  ;;  %s2308_s23 = smov 96  }
   0x7   :  { %36 = vadd.xlane.f32.xlu0 %v35_v1  ;;  %115 = vmatpush.msra.mxu0 %v95_v21  ;;  %v92_v24 = vld [vmem:[#allocation2] sm:$0xff]  ;;  %s2309_s24 = smov 112   ;;  %vm134_vm8 = vcmask 130048   ;;  %vm241_vm9 = vcmask 64512   ;;  %s2310_s25 = smov 64  }
   0x8   :  { %v2356_v36 = vld [vmem:[%s2923_s1] sm:$0xff]  ;;  %s2311_s26 = smov 16   ;;  %s2313_s29 = smov 32  }
   0x9   :  { %116 = vmatpush.msra.mxu0 %v94_v22  ;;  %v86_v40 = vperm.slane %v2356_v36, 0  ;;  %v89_v44 = vperm.slane %v2356_v36, 1  ;;  %v96_v54 = vperm.slane %v2356_v36, 2 }
   0xb   :  { %117 = vmatpush.msra.mxu0 %v93_v23 }
   0xc   :  { %v2116_v5 = vpop.eup %2115 }
   0xd   :  { %v42_v6 = vmul.f32 32.0, %v2116_v5  ;;  %vm46_vm1 = vweird.f32 %v2116_v5  ;;  %118 = vmatpush.msra.mxu0 %v92_v24 }
   0xf   :  { %39 = vadd.xlane.f32.xlu0 %v38_v3  ;;  %v43_v7 = vsub.f32 1.0, %v42_v6 }
  0x11   :  { %v44_v8 = vmul.f32 %v2116_v5, %v43_v7 }
  0x13   :  { %v45_v9 = vadd.f32 %v2116_v5, %v44_v8 }
  0x15   :  { %v2345_v10 = vsel %vm46_vm1, %v2116_v5, %v45_v9 }
  0x7a   :  { %v37_v11 = vpop.xlane.xlu0 %36 }
  0x7b   :  { %v48_v12 = vmul.f32 %v2345_v10, %v37_v11 }
  0x7d   :  { %v50_v13 = vsub.f32 %v32_v0, %v48_v12 }
  0x7f   :  { %v52_v14 = vmul.f32 %v50_v13, %v50_v13 }
  0x81   :  { %v54_v15 = vsel %vm34_vm0, %v52_v14, 0.0 }
  0x82   :  { %55 = vadd.xlane.f32.xlu1 %v54_v15  ;;  %v40_v16 = vpop.xlane.xlu0 %39 }
  0x83   :  { %v49_v17 = vmul.f32 %v2345_v10, %v40_v16 }
  0x85   :  { %v51_v18 = vsub.f32 %v33_v2, %v49_v17 }
  0x87   :  { %v53_v19 = vmul.f32 %v51_v18, %v51_v18 }
  0x89   :  { %v57_v20 = vsel %vm34_vm0, %v53_v19, 0.0 }
  0x8a   :  { %58 = vadd.xlane.f32.xlu1 %v57_v20 }
  0xf5   :  { %v56_v25 = vpop.xlane.xlu1 %55 }
  0xf6   :  { %v60_v26 = vmul.f32 %v56_v25, %v2345_v10 }
  0xf8   :  { %v62_v27 = vadd.f32 1e-12, %v60_v26 }
  0xfa   :  { %2117 = vrsqrt.f32 %v62_v27  ;;  %vm70_vm3 = vweird.f32 %v62_v27 }
  0xfd   :  { %v59_v28 = vpop.xlane.xlu1 %58 }
  0xfe   :  { %v61_v29 = vmul.f32 %v59_v28, %v2345_v10 }
 0x100   :  { %v2118_v30 = vpop.eup %2117  ;;  %v63_v31 = vadd.f32 1e-12, %v61_v29 }
 0x101   :  { %v65_v32 = vmul.f32 %v2118_v30, %v62_v27  ;;  %vm71_vm2 = vweird.f32 %v2118_v30 }
 0x102   :  { %2119 = vrsqrt.f32 %v63_v31  ;;  %vm72_vm4 = vmor %vm70_vm3, %vm71_vm2  ;;  %vm80_vm5 = vweird.f32 %v63_v31 }
 0x103   :  { %v66_v33 = vmul.f32 %v2118_v30, %v65_v32 }
 0x105   :  { %v67_v34 = vmul.f32 0.5, %v66_v33 }
 0x107   :  { %v68_v35 = vsub.f32 1.5, %v67_v34 }
 0x108   :  { %v2120_v37 = vpop.eup %2119 }
 0x109   :  { %v69_v38 = vmul.f32 %v2118_v30, %v68_v35  ;;  %v75_v39 = vmul.f32 %v2120_v37, %v63_v31  ;;  %vm81_vm6 = vweird.f32 %v2120_v37 }
 0x10a   :  { %vm82_vm7 = vmor %vm80_vm5, %vm81_vm6 }
 0x10b   :  { %v73_v41 = vsel %vm72_vm4, %v2118_v30, %v69_v38  ;;  %v76_v42 = vmul.f32 %v2120_v37, %v75_v39 }
 0x10c   :  { %v84_v43 = vmul.f32 %v73_v41, %v50_v13 }
 0x10d   :  { %v77_v45 = vmul.f32 0.5, %v76_v42 }
 0x10e   :  { %v87_v46 = vmul.f32 %v86_v40, %v84_v43 }
 0x10f   :  { %v78_v47 = vsub.f32 1.5, %v77_v45 }
 0x110   :  { %v2360_v48 = vadd.f32 %v89_v44, %v87_v46 }
 0x111   :  { %v79_v49 = vmul.f32 %v2120_v37, %v78_v47 }
 0x112   :  { %2046 = vmatmul.msk.f32.vlgmr.msra.gmra.mxu0 %vm34_vm0, %v2360_v48 }
 0x113   :  { %v83_v50 = vsel %vm82_vm7, %v2120_v37, %v79_v49 }
 0x114   :  { %v85_v51 = vmul.f32 %v83_v50, %v51_v18 }
 0x116   :  { %v88_v52 = vmul.f32 %v86_v40, %v85_v51 }
 0x118   :  { %v2364_v53 = vadd.f32 %v89_v44, %v88_v52 }
 0x11a   :  { %2047 = vmatmul.msk.f32.gmra.mxu0 %vm34_vm0, %v2364_v53 }
 0x18f   :  { %v120_v55 = vpop.f32.mrf.mxu0 }
 0x190   :  { %v121_v56 = vadd.f32 %v120_v55, %v96_v54 }
 0x192   :  { %132 = vrot.lane.b32.xlu0 %v121_v56, %s2308_s23  ;;  %128 = vrot.lane.b32.xlu2 %v121_v56, %s2309_s24 }
 0x197   :  { %v123_v57 = vpop.f32.mrf.mxu0 }
 0x198   :  { %v2369_v58 = vadd.f32 %v123_v57, %v96_v54 }
 0x19a   :  { %130 = vrot.lane.b32.xlu2 %v2369_v58, %s2309_s24 }
 0x1ec   :  { %v2372_v59 = vpop.permute.xlu2 %128 }
 0x1ed   :  { %185 = vrot.lane.b32.xlu1 %v2372_v59, %s2308_s23 }
 0x1f4   :  { %v2375_v60 = vpop.permute.xlu2 %130 }
 0x1f5   :  { %211 = vrot.lane.b32.xlu2 %v2375_v60, %s2308_s23  ;;  %v2110_v35 = vpack.i.bf16 %v2375_v60, %v2372_v59 }
 0x1fd   :  { %159 = vrot.lane.b32.xlu2 %v2369_v58, %s2308_s23 }
 0x204   :  { %v133_v61 = vpop.permute.xlu0 %132 }
 0x205   :  { %2048 = vmatpush.xpose.msk.msrb.mxu0 %vm134_vm8, %v133_v61 }
 0x208   :  { %2049 = vmatmul.msk.f32.vlgmr.msrb.gmra.mxu0 %vm134_vm8, %v121_v56 }
 0x24f   :  { %v212_v62 = vpop.permute.xlu2 %211 }
 0x250   :  { %2054 = vmatpush.xpose.msk.msra.mxu1 %vm134_vm8, %v212_v62 }
 0x253   :  { %2055 = vmatmul.msk.f32.vlgmr.msra.gmra.mxu1 %vm134_vm8, %v2375_v60 }
 0x257   :  { %v160_v63 = vpop.permute.xlu2 %159 }
 0x258   :  { %2050 = vmatpush.xpose.msk.msra.mxu2 %vm134_vm8, %v160_v63 }
 0x25b   :  { %2051 = vmatmul.msk.f32.vlgmr.msra.gmra.mxu2 %vm134_vm8, %v2369_v58 }
 0x25f   :  { %v186_v0 = vpop.permute.xlu1 %185 }
 0x260   :  { %2052 = vmatpush.xpose.msk.msra.mxu3 %vm134_vm8, %v186_v0 }
 0x263   :  { %2053 = vmatmul.msk.f32.vlgmr.msra.gmra.mxu3 %vm134_vm8, %v2372_v59 }
 0x285   :  { %v156_v1 = vpop.f32.mrf.mxu0 }
 0x286   :  { %v237_v2 = vmul.f32 0.25, %v156_v1 }
 0x288   :  { %v242_v3 = vsel %vm241_vm9, %v237_v2, -inf }
 0x289   :  { %243 = vmax.xlane.f32.xlu2 %v242_v3 }
 0x2d0   :  { %v234_v4 = vpop.f32.mrf.mxu1 }
 0x2d1   :  { %v240_v5 = vmul.f32 0.25, %v234_v4 }
 0x2d3   :  { %v251_v6 = vsel %vm241_vm9, %v240_v5, -inf }
 0x2d4   :  { %252 = vmax.xlane.f32.xlu1 %v251_v6 }
 0x2de   :  { %v182_v7 = vpop.f32.mrf.mxu2 }
 0x2df   :  { %v238_v8 = vmul.f32 0.25, %v182_v7 }
 0x2e1   :  { %v245_v9 = vsel %vm241_vm9, %v238_v8, -inf }
 0x2e2   :  { %246 = vmax.xlane.f32.xlu2 %v245_v9 }
 0x2e6   :  { %v208_v11 = vpop.f32.mrf.mxu3 }
 0x2e7   :  { %v239_v12 = vmul.f32 0.25, %v208_v11 }
 0x2e9   :  { %v248_v13 = vsel %vm241_vm9, %v239_v12, -inf }
 0x2ea   :  { %249 = vmax.xlane.f32.xlu0 %v248_v13 }
 0x2fc   :  { %v244_v14 = vpop.xlane.xlu2 %243 }
 0x2fd   :  { %v254_v15 = vsub.f32 %v237_v2, %v244_v14 }
 0x2ff   :  { %v258_v16 = vmul.f32 1.442695, %v254_v15 }
 0x301   :  { %2121 = vpow2.f32 %v258_v16 }
 0x307   :  { %v2122_v17 = vpop.eup %2121 }
 0x308   :  { %v266_v18 = vsel %vm241_vm9, %v2122_v17, 0.0 }
 0x309   :  { %267 = vadd.xlane.f32.xlu0 %v266_v18 }
 0x31d   :  { %338 = vrot.lane.b32.xlu0 %v121_v56, %s2310_s25 }
 0x347   :  { %v253_v19 = vpop.xlane.xlu1 %252 }
 0x348   :  { %v257_v20 = vsub.f32 %v240_v5, %v253_v19 }
 0x34a   :  { %v264_v21 = vmul.f32 1.442695, %v257_v20 }
 0x34c   :  { %2123 = vpow2.f32 %v264_v21 }
 0x352   :  { %v2396_v22 = vpop.eup %2123 }
 0x353   :  { %v275_v23 = vsel %vm241_vm9, %v2396_v22, 0.0 }
 0x354   :  { %276 = vadd.xlane.f32.xlu1 %v275_v23 }
 0x355   :  { %v247_v24 = vpop.xlane.xlu2 %246 }
 0x356   :  { %v255_v25 = vsub.f32 %v238_v8, %v247_v24 }
 0x358   :  { %v260_v26 = vmul.f32 1.442695, %v255_v25 }
 0x35a   :  { %2125 = vpow2.f32 %v260_v26 }
 0x35d   :  { %v250_v27 = vpop.xlane.xlu0 %249 }
 0x35e   :  { %v256_v28 = vsub.f32 %v239_v12, %v250_v27 }
 0x360   :  { %v2400_v29 = vpop.eup %2125  ;;  %v262_v30 = vmul.f32 1.442695, %v256_v28 }
 0x361   :  { %v269_v31 = vsel %vm241_vm9, %v2400_v29, 0.0 }
 0x362   :  { %2127 = vpow2.f32 %v262_v30  ;;  %270 = vadd.xlane.f32.xlu1 %v269_v31 }
 0x368   :  { %v2404_v32 = vpop.eup %2127 }
 0x369   :  { %v272_v33 = vsel %vm241_vm9, %v2404_v32, 0.0 }
 0x36a   :  { %273 = vadd.xlane.f32.xlu2 %v272_v33 }
 0x37b   :  { %364 = vrot.lane.b32.xlu1 %v2369_v58, %s2310_s25 }
 0x37c   :  { %v268_v34 = vpop.xlane.xlu0 %267 }
 0x37d   :  { %2129 = vrcp.f32 %v268_v34  ;;  %v289_v40 = vand.u32 2147483648, %v268_v34  ;;  %v287_v42 = vand.u32 2147483647, %v268_v34  ;;  %vm283_vm11 = vweird.f32 %v268_v34 }
 0x37f   :  { %v290_v44 = vor.u32 1.1754944e-38, %v289_v40  ;;  %vm288_vm13 = vcmp.eq.f32.partialorder %v287_v42, 8.507059e+37  ;;  %v485_v42 = vperm.slane %v2356_v36, 3 }
 0x382   :  { %2111 = vrot.lane.b32.xlu2 %v2110_v35, %s2310_s25  ;;  %v454_v35 = vld [vmem:[#allocation2 + $0x30] sm:$0xff] }
 0x383   :  { %v2130_v37 = vpop.eup %2129 }
 0x384   :  { %v279_v38 = vmul.f32 %v2130_v37, %v268_v34  ;;  %vm284_vm10 = vweird.f32 %v2130_v37  ;;  %v455_v34 = vld [vmem:[#allocation2 + $0x38] sm:$0xff] }
 0x385   :  { %vm285_vm12 = vmor %vm283_vm11, %vm284_vm10 }
 0x386   :  { %v280_v39 = vsub.f32 1.0, %v279_v38 }
 0x388   :  { %v281_v41 = vmul.f32 %v2130_v37, %v280_v39 }
 0x38a   :  { %v282_v43 = vadd.f32 %v2130_v37, %v281_v41 }
 0x38c   :  { %v286_v45 = vsel %vm285_vm12, %v2130_v37, %v282_v43  ;;  %v453_v37 = vld [vmem:[#allocation2 + $0x28] sm:$0xff] }
 0x38d   :  { %v291_v46 = vsel %vm288_vm13, %v290_v44, %v286_v45 }
 0x38e   :  { %v292_v47 = vmul.f32 %v2122_v17, %v291_v46 }
 0x38f   :  { %v339_v49 = vpop.permute.xlu0 %338 }
 0x390   :  { %359 = vmatpush.msrb.mxu2 %v339_v49 }
 0x391   :  { %2056 = vmatmul.msk.f32.vlgmr.msrb.gmra.mxu2 %vm241_vm9, %v292_v47 }
 0x3c7   :  { %v277_v50 = vpop.xlane.xlu1 %276 }
 0x3c8   :  { %2131 = vrcp.f32 %v277_v50  ;;  %v334_v61 = vand.u32 2147483648, %v277_v50  ;;  %vm328_vm15 = vweird.f32 %v277_v50  ;;  %v332_v62 = vand.u32 2147483647, %v277_v50 }
 0x3ca   :  { %v335_v2 = vor.u32 1.1754944e-38, %v334_v61  ;;  %vm333_vm2 = vcmp.eq.f32.partialorder %v332_v62, 8.507059e+37  ;;  %v542_v62 = vld [vmem:[#allocation2 + $0x50] sm:$0xff] }
 0x3ce   :  { %v2132_v51 = vpop.eup %2131 }
 0x3cf   :  { %v324_v52 = vmul.f32 %v2132_v51, %v277_v50  ;;  %vm329_vm14 = vweird.f32 %v2132_v51 }
 0x3d0   :  { %vm330_vm1 = vmor %vm328_vm15, %vm329_vm14 }
 0x3d1   :  { %v325_v54 = vsub.f32 1.0, %v324_v52 }
 0x3d3   :  { %v326_v56 = vmul.f32 %v2132_v51, %v325_v54 }
 0x3d5   :  { %v271_v55 = vpop.xlane.xlu1 %270  ;;  %v327_v58 = vadd.f32 %v2132_v51, %v326_v56 }
 0x3d6   :  { %2133 = vrcp.f32 %v271_v55  ;;  %v304_v6 = vand.u32 2147483648, %v271_v55  ;;  %vm298_vm4 = vweird.f32 %v271_v55  ;;  %v302_v7 = vand.u32 2147483647, %v271_v55 }
 0x3d7   :  { %v331_v0 = vsel %vm330_vm1, %v2132_v51, %v327_v58 }
 0x3d8   :  { %v336_v5 = vsel %vm333_vm2, %v335_v2, %v331_v0  ;;  %v305_v17 = vor.u32 1.1754944e-38, %v304_v6  ;;  %vm303_vm6 = vcmp.eq.f32.partialorder %v302_v7, 8.507059e+37  ;;  %v540_v0 = vld [vmem:[#allocation2 + $0x40] sm:$0xff]  ;;  %v605_v6 = vld [vmem:[#allocation2 + $0xc8] sm:$0xff] }
 0x3d9   :  { %v337_v15 = vmul.f32 %v2396_v22, %v336_v5  ;;  %v606_v5 = vld [vmem:[#allocation2 + $0xd0] sm:$0xff] }
 0x3dc   :  { %v2134_v57 = vpop.eup %2133 }
 0x3dd   :  { %v294_v59 = vmul.f32 %v2134_v57, %v271_v55  ;;  %v274_v60 = vpop.xlane.xlu2 %273  ;;  %vm299_vm3 = vweird.f32 %v2134_v57 }
 0x3de   :  { %2135 = vrcp.f32 %v274_v60  ;;  %vm2414_vm5 = vmor %vm298_vm4, %vm299_vm3  ;;  %v319_v18 = vand.u32 2147483648, %v274_v60  ;;  %v317_v20 = vand.u32 2147483647, %v274_v60  ;;  %vm313_vm10 = vweird.f32 %v274_v60 }
 0x3df   :  { %v295_v63 = vsub.f32 1.0, %v294_v59 }
 0x3e0   :  { %v320_v24 = vor.u32 1.1754944e-38, %v319_v18  ;;  %vm318_vm12 = vcmp.eq.f32.partialorder %v317_v20, 8.507059e+37 }
 0x3e1   :  { %v296_v1 = vmul.f32 %v2134_v57, %v295_v63  ;;  %v541_v63 = vld [vmem:[#allocation2 + $0x48] sm:$0xff] }
 0x3e3   :  { %v297_v3 = vadd.f32 %v2134_v57, %v296_v1 }
 0x3e4   :  { %v2136_v4 = vpop.eup %2135 }
 0x3e5   :  { %v309_v8 = vmul.f32 %v2136_v4, %v274_v60  ;;  %v2112_v9 = vpop.permute.xlu2 %2111  ;;  %v301_v16 = vsel %vm2414_vm5, %v2134_v57, %v297_v3  ;;  %vm314_vm7 = vweird.f32 %v2136_v4 }
 0x3e6   :  { %v2114_v12 = vunpack.i.h.bf16 %v2112_v9  ;;  %v2113_v13 = vunpack.i.l.bf16 %v2112_v9  ;;  %v306_v21 = vsel %vm303_vm6, %v305_v17, %v301_v16  ;;  %vm315_vm11 = vmor %vm313_vm10, %vm314_vm7  ;;  %vm732_vm10 = vcmask 1040384  }
 0x3e7   :  { %v310_v14 = vsub.f32 1.0, %v309_v8  ;;  %v307_v25 = vmul.f32 %v2400_v29, %v306_v21  ;;  %v452_v29 = vld [vmem:[#allocation2 + $0x20] sm:$0xff] }
 0x3e8   :  { %411 = vmatpush.msrb.mxu1 %v2113_v13  ;;  %437 = vmatpush.msra.mxu2 %v2114_v12 }
 0x3e9   :  { %v311_v19 = vmul.f32 %v2136_v4, %v310_v14  ;;  %2059 = vmatmul.msk.f32.vlgmr.msra.gmra.mxu2 %vm241_vm9, %v337_v15 }
 0x3eb   :  { %v312_v23 = vadd.f32 %v2136_v4, %v311_v19  ;;  %v534_v19 = vperm.slane %v2356_v36, 4 }
 0x3ed   :  { %v365_v22 = vpop.permute.xlu1 %364  ;;  %v316_v26 = vsel %vm315_vm11, %v2136_v4, %v312_v23  ;;  %v607_v4 = vld [vmem:[#allocation2 + $0xd8] sm:$0xff] }
 0x3ee   :  { %385 = vmatpush.msrb.mxu3 %v365_v22  ;;  %v321_v27 = vsel %vm318_vm12, %v320_v24, %v316_v26  ;;  %v537_v24 = vperm.slane %v2356_v36, 5 }
 0x3ef   :  { %2057 = vmatmul.msk.f32.vlgmr.msrb.gmra.mxu3 %vm241_vm9, %v307_v25  ;;  %v322_v28 = vmul.f32 %v2404_v32, %v321_v27 }
 0x3f0   :  { %474 = vmatpush.msra.mxu3 %v455_v34 }
 0x3f1   :  { %2058 = vmatmul.msk.f32.vlgmr.msrb.gmra.mxu1 %vm241_vm9, %v322_v28 }
 0x3f2   :  { %475 = vmatpush.msra.mxu3 %v454_v35  ;;  %v604_v35 = vld [vmem:[#allocation2 + $0xc0] sm:$0xff] }
 0x3f4   :  { %476 = vmatpush.msra.mxu3 %v453_v37  ;;  %v603_v37 = vld [vmem:[#allocation2 + $0xb8] sm:$0xff] }
 0x3f6   :  { %477 = vmatpush.msra.mxu3 %v452_v29  ;;  %v602_v29 = vld [vmem:[#allocation2 + $0xb0] sm:$0xff] }
 0x414   :  { %v361_v30 = vpop.f32.mrf.mxu2 }
 0x46c   :  { %v439_v31 = vpop.f32.mrf.mxu2 }
 0x46d   :  { %446 = vrot.lane.b32.xlu2 %v439_v31, %s2311_s26 }
 0x46e   :  { %v413_v33 = vpop.f32.mrf.mxu1 }
 0x46f   :  { %444 = vrot.lane.b32.xlu0 %v413_v33, %s2311_s26 }
 0x472   :  { %v387_v40 = vpop.f32.mrf.mxu3 }
 0x4c7   :  { %v447_v32 = vpop.permute.xlu2 %446 }
 0x4c8   :  { %v451_v41 = vsel %vm134_vm8, %v387_v40, %v447_v32  ;;  %v599_v32 = vld [vmem:[#allocation2 + $0x98] sm:$0xff]  ;;  %v598_v40 = vld [vmem:[#allocation2 + $0x90] sm:$0xff] }
 0x4e1   :  { %v445_v38 = vpop.permute.xlu0 %444 }
 0x4e2   :  { %v450_v39 = vsel %vm134_vm8, %v361_v30, %v445_v38  ;;  %v601_v38 = vld [vmem:[#allocation2 + $0xa8] sm:$0xff] }
 0x4e3   :  { %2060 = vmatmul.msk.f32.vlgmr.msra.gmra.mxu3 %vm34_vm0, %v450_v39  ;;  %v600_v39 = vld [vmem:[#allocation2 + $0xa0] sm:$0xff] }
 0x4eb   :  { %2061 = vmatmul.msk.f32.gmra.mxu3 %vm34_vm0, %v451_v41  ;;  %v597_v41 = vld [vmem:[#allocation2 + $0x88] sm:$0xff] }
 0x566   :  { %v479_v43 = vpop.f32.mrf.mxu3 }
 0x567   :  { %v486_v44 = vadd.f32 %v485_v42, %v479_v43  ;;  %v595_v43 = vld [vmem:[#allocation2 + $0x78] sm:$0xff] }
 0x569   :  { %v488_v45 = vadd.f32 %v486_v44, %v2360_v48  ;;  %v594_v44 = vld [vmem:[#allocation2 + $0x70] sm:$0xff] }
 0x56b   :  { %v490_v46 = vsel %vm34_vm0, %v488_v45, 0.0 }
 0x56c   :  { %491 = vadd.xlane.f32.xlu0 %v490_v46  ;;  %v592_v46 = vld [vmem:[#allocation2 + $0x60] sm:$0xff] }
 0x56e   :  { %v482_v47 = vpop.f32.mrf.mxu3 }
 0x56f   :  { %v487_v49 = vadd.f32 %v485_v42, %v482_v47  ;;  %v596_v42 = vld [vmem:[#allocation2 + $0x80] sm:$0xff]  ;;  %v544_v47 = vperm.slane %v2356_v36, 6 }
 0x571   :  { %v489_v50 = vadd.f32 %v487_v49, %v2364_v53  ;;  %v543_v53 = vld [vmem:[#allocation2 + $0x58] sm:$0xff] }
 0x572   :  { %563 = vmatpush.msra.mxu1 %v543_v53 }
 0x573   :  { %v493_v51 = vsel %vm34_vm0, %v489_v50, 0.0 }
 0x574   :  { %494 = vadd.xlane.f32.xlu2 %v493_v51  ;;  %564 = vmatpush.msra.mxu1 %v542_v62 }
 0x576   :  { %565 = vmatpush.msra.mxu1 %v541_v63 }
 0x578   :  { %566 = vmatpush.msra.mxu1 %v540_v0 }
 0x57a   :  { %608 = vmatpush.msrb.mxu1 %v607_v4 }
 0x57c   :  { %609 = vmatpush.msrb.mxu1 %v606_v5 }
 0x57e   :  { %610 = vmatpush.msrb.mxu1 %v605_v6  ;;  %v631_v6 = vperm.slane %v2356_v36, 7 }
 0x580   :  { %611 = vmatpush.msrb.mxu1 %v604_v35 }
 0x582   :  { %612 = vmatpush.msrb.mxu1 %v603_v37 }
 0x584   :  { %613 = vmatpush.msrb.mxu1 %v602_v29  ;;  %v2485_v29 = vld [vmem:[#allocation2 + $0x100] sm:$0xff] }
 0x586   :  { %614 = vmatpush.msrb.mxu1 %v601_v38  ;;  %v2312_v38 = vmov 0.0  }
 0x588   :  { %615 = vmatpush.msrb.mxu1 %v600_v39 }
 0x58a   :  { %616 = vmatpush.msrb.mxu1 %v599_v32 }
 0x58c   :  { %617 = vmatpush.msrb.mxu1 %v598_v40 }
 0x58e   :  { %618 = vmatpush.msrb.mxu1 %v597_v41 }
 0x590   :  { %619 = vmatpush.msrb.mxu1 %v596_v42 }
 0x592   :  { %620 = vmatpush.msrb.mxu1 %v595_v43 }
 0x594   :  { %621 = vmatpush.msrb.mxu1 %v594_v44  ;;  %v2505_v44 = vld [vmem:[%s2923_s1 + $0x8] sm:$0xff] }
 0x5df   :  { %v492_v52 = vpop.xlane.xlu0 %491 }
 0x5e0   :  { %v496_v54 = vmul.f32 %v492_v52, %v2345_v10 }
 0x5e2   :  { %v498_v55 = vsub.f32 %v488_v45, %v496_v54  ;;  %v593_v45 = vld [vmem:[#allocation2 + $0x68] sm:$0xff] }
 0x5e3   :  { %622 = vmatpush.msrb.mxu1 %v593_v45 }
 0x5e4   :  { %v500_v56 = vmul.f32 %v498_v55, %v498_v55 }
 0x5e5   :  { %623 = vmatpush.msrb.mxu1 %v592_v46 }
 0x5e6   :  { %v502_v57 = vsel %vm34_vm0, %v500_v56, 0.0 }
 0x5e7   :  { %503 = vadd.xlane.f32.xlu1 %v502_v57  ;;  %v495_v58 = vpop.xlane.xlu2 %494 }
 0x5e8   :  { %v497_v48 = vmul.f32 %v495_v58, %v2345_v10 }
 0x5ea   :  { %v499_v59 = vsub.f32 %v489_v50, %v497_v48 }
 0x5ec   :  { %v501_v60 = vmul.f32 %v499_v59, %v499_v59 }
 0x5ee   :  { %v505_v61 = vsel %vm34_vm0, %v501_v60, 0.0 }
 0x5ef   :  { %506 = vadd.xlane.f32.xlu0 %v505_v61 }
 0x65a   :  { %v504_v1 = vpop.xlane.xlu1 %503 }
 0x65b   :  { %v508_v2 = vmul.f32 %v504_v1, %v2345_v10 }
 0x65d   :  { %v510_v3 = vadd.f32 1e-12, %v508_v2 }
 0x65f   :  { %2137 = vrsqrt.f32 %v510_v3  ;;  %vm518_vm9 = vweird.f32 %v510_v3 }
 0x662   :  { %v507_v7 = vpop.xlane.xlu0 %506 }
 0x663   :  { %v509_v8 = vmul.f32 %v507_v7, %v2345_v10 }
 0x665   :  { %v2138_v9 = vpop.eup %2137  ;;  %v511_v11 = vadd.f32 1e-12, %v509_v8 }
 0x666   :  { %v513_v12 = vmul.f32 %v2138_v9, %v510_v3  ;;  %vm519_vm8 = vweird.f32 %v2138_v9 }
 0x667   :  { %2139 = vrsqrt.f32 %v511_v11  ;;  %vm520_vm13 = vmor %vm518_vm9, %vm519_vm8  ;;  %vm528_vm15 = vweird.f32 %v511_v11 }
 0x668   :  { %v514_v13 = vmul.f32 %v2138_v9, %v513_v12 }
 0x66a   :  { %v515_v14 = vmul.f32 0.5, %v514_v13 }
 0x66c   :  { %v516_v15 = vsub.f32 1.5, %v515_v14 }
 0x66d   :  { %v2140_v16 = vpop.eup %2139 }
 0x66e   :  { %v517_v17 = vmul.f32 %v2138_v9, %v516_v15  ;;  %v523_v18 = vmul.f32 %v2140_v16, %v511_v11  ;;  %vm529_vm14 = vweird.f32 %v2140_v16 }
 0x66f   :  { %vm530_vm1 = vmor %vm528_vm15, %vm529_vm14 }
 0x670   :  { %v521_v20 = vsel %vm520_vm13, %v2138_v9, %v517_v17  ;;  %v524_v21 = vmul.f32 %v2140_v16, %v523_v18 }
 0x671   :  { %v532_v23 = vmul.f32 %v521_v20, %v498_v55 }
 0x672   :  { %v525_v22 = vmul.f32 0.5, %v524_v21 }
 0x673   :  { %v535_v25 = vmul.f32 %v534_v19, %v532_v23 }
 0x674   :  { %v526_v26 = vsub.f32 1.5, %v525_v22 }
 0x675   :  { %v2443_v27 = vadd.f32 %v537_v24, %v535_v25  ;;  %v694_v25 = vld [vmem:[#allocation2 + $0xf8] sm:$0xff] }
 0x676   :  { %v527_v28 = vmul.f32 %v2140_v16, %v526_v26  ;;  %718 = vmatpush.msrb.mxu2 %v694_v25  ;;  %v693_v26 = vld [vmem:[#allocation2 + $0xf0] sm:$0xff] }
 0x677   :  { %2062 = vmatmul.msk.f32.vlgmr.msra.gmra.mxu1 %vm34_vm0, %v2443_v27 }
 0x678   :  { %v531_v30 = vsel %vm530_vm1, %v2140_v16, %v527_v28  ;;  %719 = vmatpush.msrb.mxu2 %v693_v26  ;;  %v691_v28 = vld [vmem:[#allocation2 + $0xe0] sm:$0xff] }
 0x679   :  { %v533_v31 = vmul.f32 %v531_v30, %v499_v59  ;;  %v2469_v30 = vld [vmem:[#allocation2 + $0x118] sm:$0xff] }
 0x67a   :  { %791 = vmatpush.msrb.mxu3 %v2469_v30  ;;  %854 = vmatpush.msra.mxu0 %v2469_v30 }
 0x67b   :  { %v536_v33 = vmul.f32 %v534_v19, %v533_v31  ;;  %v2471_v31 = vld [vmem:[#allocation2 + $0x110] sm:$0xff] }
 0x67c   :  { %792 = vmatpush.msrb.mxu3 %v2471_v31  ;;  %855 = vmatpush.msra.mxu0 %v2471_v31 }
 0x67d   :  { %v2447_v34 = vadd.f32 %v537_v24, %v536_v33 }
 0x67f   :  { %2063 = vmatmul.msk.f32.gmra.mxu1 %vm34_vm0, %v2447_v34 }
 0x6f4   :  { %v568_v49 = vpop.f32.mrf.mxu1 }
 0x6f5   :  { %v569_v50 = vadd.f32 %v568_v49, %v544_v47 }
 0x6f7   :  { %v574_v51 = vmul.f32 %v569_v50, %v569_v50 }
 0x6f9   :  { %v576_v52 = vmul.f32 %v574_v51, %v569_v50 }
 0x6fb   :  { %v578_v54 = vmul.f32 0.044715, %v576_v52 }
 0x6fc   :  { %v571_v55 = vpop.f32.mrf.mxu1 }
 0x6fd   :  { %v580_v56 = vadd.f32 %v578_v54, %v569_v50  ;;  %v572_v57 = vadd.f32 %v571_v55, %v544_v47  ;;  %v683_v55 = vperm.slane %v2505_v44, 1 }
 0x6ff   :  { %v582_v58 = vmul.f32 0.7978846, %v580_v56  ;;  %v575_v48 = vmul.f32 %v572_v57, %v572_v57 }
 0x701   :  { %2141 = vtanh.f32 %v582_v58  ;;  %v577_v59 = vmul.f32 %v575_v48, %v572_v57 }
 0x703   :  { %v579_v60 = vmul.f32 0.044715, %v577_v59 }
 0x705   :  { %v581_v61 = vadd.f32 %v579_v60, %v572_v57 }
 0x707   :  { %v2142_v53 = vpop.eup %2141  ;;  %v583_v62 = vmul.f32 0.7978846, %v581_v61 }
 0x708   :  { %v586_v63 = vadd.f32 1.0, %v2142_v53 }
 0x709   :  { %2143 = vtanh.f32 %v583_v62 }
 0x70a   :  { %v588_v0 = vmul.f32 0.5, %v586_v63  ;;  %v686_v63 = vlaneseq }
 0x70c   :  { %v590_v1 = vmul.f32 %v588_v0, %v569_v50  ;;  %v680_v50 = vperm.slane %v2505_v44, 0 }
 0x70e   :  { %624 = vmatmul.f32.vlgmr.msrb.gmra.mxu1 %v590_v1  ;;  %v699_v1 = vperm.slane %v2505_v44, 2 }
 0x70f   :  { %v2144_v2 = vpop.eup %2143 }
 0x710   :  { %v587_v3 = vadd.f32 1.0, %v2144_v2  ;;  %v2520_v2 = vand.u32 127, %v686_v63 }
 0x712   :  { %v589_v4 = vmul.f32 0.5, %v587_v3 }
 0x714   :  { %v591_v5 = vmul.f32 %v589_v4, %v572_v57  ;;  %v688_v4 = vand.u32 16, %v2520_v2 }
 0x716   :  { %627 = vmatmul.f32.gmra.mxu1 %v591_v5  ;;  %vm2523_vm11 = vcmp.eq.s32.totalorder %v688_v4, 0 }
 0x78b   :  { %v625_v7 = vpop.f32.mrf.mxu1 }
 0x78c   :  { %v632_v8 = vadd.f32 %v631_v6, %v625_v7 }
 0x78e   :  { %v634_v9 = vadd.f32 %v632_v8, %v2443_v27  ;;  %v692_v27 = vld [vmem:[#allocation2 + $0xe8] sm:$0xff] }
 0x78f   :  { %720 = vmatpush.msrb.mxu2 %v692_v27 }
 0x790   :  { %v636_v11 = vsel %vm34_vm0, %v634_v9, 0.0 }
 0x791   :  { %637 = vadd.xlane.f32.xlu2 %v636_v11  ;;  %721 = vmatpush.msrb.mxu2 %v691_v28 }
 0x793   :  { %v628_v12 = vpop.f32.mrf.mxu1  ;;  %917 = vmatpush.msra.mxu2 %v2469_v30 }
 0x794   :  { %v633_v13 = vadd.f32 %v631_v6, %v628_v12 }
 0x795   :  { %918 = vmatpush.msra.mxu2 %v2471_v31 }
 0x796   :  { %v635_v14 = vadd.f32 %v633_v13, %v2447_v34  ;;  %v2475_v34 = vld [vmem:[#allocation2 + $0x108] sm:$0xff] }
 0x797   :  { %793 = vmatpush.msrb.mxu3 %v2475_v34  ;;  %856 = vmatpush.msra.mxu0 %v2475_v34 }
 0x798   :  { %v639_v15 = vsel %vm34_vm0, %v635_v14, 0.0  ;;  %919 = vmatpush.msra.mxu2 %v2475_v34 }
 0x799   :  { %640 = vadd.xlane.f32.xlu0 %v639_v15  ;;  %794 = vmatpush.msrb.mxu3 %v2485_v29 }
 0x79a   :  { %857 = vmatpush.msra.mxu0 %v2485_v29  ;;  %795 = vmatmul.f32.vlgmr.msrb.gmra.mxu3 %v2312_v38 }
 0x79b   :  { %920 = vmatpush.msra.mxu2 %v2485_v29  ;;  %980 = vmatpush.msra.mxu3 %v2469_v30 }
 0x79c   :  { %1043 = vmatpush.msrb.mxu0 %v2469_v30 }
 0x79d   :  { %981 = vmatpush.msra.mxu3 %v2471_v31 }
 0x79e   :  { %1044 = vmatpush.msrb.mxu0 %v2471_v31 }
 0x79f   :  { %982 = vmatpush.msra.mxu3 %v2475_v34 }
 0x7a0   :  { %1045 = vmatpush.msrb.mxu0 %v2475_v34 }
 0x7a1   :  { %983 = vmatpush.msra.mxu3 %v2485_v29 }
 0x7a2   :  { %1046 = vmatpush.msrb.mxu0 %v2485_v29 }
 0x7a3   :  { %1169 = vmatpush.msrb.mxu3 %v2469_v30 }
 0x7a5   :  { %1170 = vmatpush.msrb.mxu3 %v2471_v31 }
 0x7a7   :  { %1171 = vmatpush.msrb.mxu3 %v2475_v34 }
 0x7a9   :  { %1172 = vmatpush.msrb.mxu3 %v2485_v29 }
 0x804   :  { %v638_v16 = vpop.xlane.xlu2 %637 }
 0x805   :  { %v642_v17 = vmul.f32 %v638_v16, %v2345_v10 }
 0x807   :  { %v2458_v18 = vsub.f32 %v634_v9, %v642_v17 }
 0x809   :  { %v646_v36 = vmul.f32 %v2458_v18, %v2458_v18 }
 0x80b   :  { %v648_v19 = vsel %vm34_vm0, %v646_v36, 0.0 }
 0x80c   :  { %649 = vadd.xlane.f32.xlu1 %v648_v19  ;;  %v641_v20 = vpop.xlane.xlu0 %640 }
 0x80d   :  { %v643_v21 = vmul.f32 %v641_v20, %v2345_v10 }
 0x80f   :  { %v2464_v23 = vsub.f32 %v635_v14, %v643_v21 }
 0x811   :  { %v647_v24 = vmul.f32 %v2464_v23, %v2464_v23 }
 0x813   :  { %v651_v22 = vsel %vm34_vm0, %v647_v24, 0.0 }
 0x814   :  { %652 = vadd.xlane.f32.xlu2 %v651_v22 }
 0x81d   :  { %v796_v36 = vpop.f32.mrf.mxu3 }
 0x87f   :  { %v650_v33 = vpop.xlane.xlu1 %649 }
 0x880   :  { %v654_v35 = vmul.f32 %v650_v33, %v2345_v10 }
 0x882   :  { %v656_v37 = vadd.f32 1e-12, %v654_v35 }
 0x884   :  { %2145 = vrsqrt.f32 %v656_v37  ;;  %vm664_vm3 = vweird.f32 %v656_v37 }
 0x887   :  { %v653_v39 = vpop.xlane.xlu2 %652 }
 0x888   :  { %v655_v32 = vmul.f32 %v653_v39, %v2345_v10 }
 0x88a   :  { %v2146_v40 = vpop.eup %2145  ;;  %v657_v41 = vadd.f32 1e-12, %v655_v32 }
 0x88b   :  { %v659_v42 = vmul.f32 %v2146_v40, %v656_v37  ;;  %vm665_vm2 = vweird.f32 %v2146_v40 }
 0x88c   :  { %2147 = vrsqrt.f32 %v657_v41  ;;  %vm666_vm4 = vmor %vm664_vm3, %vm665_vm2  ;;  %vm674_vm6 = vweird.f32 %v657_v41 }
 0x88d   :  { %v660_v43 = vmul.f32 %v2146_v40, %v659_v42 }
 0x88f   :  { %v661_v10 = vmul.f32 0.5, %v660_v43 }
 0x891   :  { %v662_v45 = vsub.f32 1.5, %v661_v10 }
 0x892   :  { %v2148_v46 = vpop.eup %2147 }
 0x893   :  { %v663_v47 = vmul.f32 %v2146_v40, %v662_v45  ;;  %v669_v49 = vmul.f32 %v2148_v46, %v657_v41  ;;  %vm675_vm5 = vweird.f32 %v2148_v46 }
 0x894   :  { %vm676_vm7 = vmor %vm674_vm6, %vm675_vm5 }
 0x895   :  { %v667_v51 = vsel %vm666_vm4, %v2146_v40, %v663_v47  ;;  %v670_v52 = vmul.f32 %v2148_v46, %v669_v49 }
 0x896   :  { %v678_v54 = vmul.f32 %v667_v51, %v2458_v18 }
 0x897   :  { %v671_v56 = vmul.f32 0.5, %v670_v52 }
 0x898   :  { %v681_v57 = vmul.f32 %v680_v50, %v678_v54 }
 0x899   :  { %v672_v58 = vsub.f32 1.5, %v671_v56 }
 0x89a   :  { %v684_v48 = vadd.f32 %v683_v55, %v681_v57 }
 0x89b   :  { %v673_v59 = vmul.f32 %v2148_v46, %v672_v58 }
 0x89c   :  { %2064 = vmatmul.msk.f32.vlgmr.msrb.gmra.mxu2 %vm34_vm0, %v684_v48 }
 0x89d   :  { %v677_v60 = vsel %vm676_vm7, %v2148_v46, %v673_v59  ;;  %1106 = vmatpush.msrb.mxu2 %v2469_v30 }
 0x89e   :  { %v679_v61 = vmul.f32 %v677_v60, %v2464_v23 }
 0x89f   :  { %1107 = vmatpush.msrb.mxu2 %v2471_v31 }
 0x8a0   :  { %v682_v53 = vmul.f32 %v680_v50, %v679_v61 }
 0x8a1   :  { %1108 = vmatpush.msrb.mxu2 %v2475_v34 }
 0x8a2   :  { %v685_v62 = vadd.f32 %v683_v55, %v682_v53 }
 0x8a3   :  { %1109 = vmatpush.msrb.mxu2 %v2485_v29 }
 0x8a4   :  { %2065 = vmatmul.msk.f32.gmra.mxu2 %vm34_vm0, %v685_v62 }
 0x91f   :  { %v723_v0 = vpop.f32.mrf.mxu2 }
 0x920   :  { %v724_v3 = vadd.f32 %v723_v0, %v699_v1 }
 0x922   :  { %v735_v8 = vrot.slane %v724_v3, 7  ;;  %v741_v9 = vrot.slane %v724_v3, 1  ;;  %v744_v11 = vrot.slane %v724_v3, 6  ;;  %v750_v12 = vrot.slane %v724_v3, 2 }
 0x923   :  { %v755_v13 = vrot.slane %v724_v3, 5  ;;  %v761_v14 = vrot.slane %v724_v3, 3  ;;  %v766_v26 = vrot.slane %v724_v3, 4 }
 0x927   :  { %v726_v5 = vpop.f32.mrf.mxu2 }
 0x928   :  { %v727_v6 = vadd.f32 %v726_v5, %v699_v1 }
 0x92a   :  { %v730_v15 = vrot.slane %v727_v6, 7  ;;  %v737_v16 = vrot.slane %v727_v6, 6  ;;  %v2528_v17 = vsel %vm732_vm10, %v741_v9, %v727_v6  ;;  %v746_v18 = vrot.slane %v727_v6, 5 }
 0x92b   :  { %v752_v19 = vrot.slane %v727_v6, 1  ;;  %v757_v20 = vrot.slane %v727_v6, 4  ;;  %v763_v21 = vrot.slane %v727_v6, 2  ;;  %v768_v23 = vrot.slane %v727_v6, 3 }
 0x92c   :  { %v2531_v24 = vsel %vm732_vm10, %v724_v3, %v730_v15  ;;  %v2534_v22 = vsel %vm732_vm10, %v735_v8, %v737_v16  ;;  %v2537_v25 = vsel %vm732_vm10, %v744_v11, %v746_v18 }
 0x92d   :  { %v740_v27 = vsel %vm2523_vm11, %v2531_v24, %v2534_v22  ;;  %v749_v28 = vsel %vm2523_vm11, %v2528_v17, %v2537_v25  ;;  %v2548_v33 = vsel %vm732_vm10, %v750_v12, %v752_v19  ;;  %v2551_v35 = vsel %vm732_vm10, %v755_v13, %v757_v20 }
 0x92e   :  { %v799_v37 = vadd.f32 %v796_v36, %v740_v27  ;;  %v760_v39 = vsel %vm2523_vm11, %v2548_v33, %v2551_v35  ;;  %v2558_v32 = vsel %vm732_vm10, %v761_v14, %v763_v21  ;;  %v2561_v40 = vsel %vm732_vm10, %v766_v26, %v768_v23 }
 0x92f   :  { %v771_v41 = vsel %vm2523_vm11, %v2558_v32, %v2561_v40  ;;  %v772_v42 = vsel %vm2523_vm11, %v2561_v40, %v2558_v32  ;;  %v773_v43 = vsel %vm2523_vm11, %v2551_v35, %v2548_v33  ;;  %v774_v10 = vsel %vm2523_vm11, %v2537_v25, %v2528_v17 }
 0x930   :  { %2149 = vtanh.f32 %v799_v37  ;;  %v775_v45 = vsel %vm2523_vm11, %v2534_v22, %v2531_v24  ;;  %v2066_v47 = vmul.f32 -1.442695, %v799_v37 }
 0x932   :  { %2151 = vpow2.f32 %v2066_v47 }
 0x936   :  { %v2150_v46 = vpop.eup %2149 }
 0x937   :  { %822 = vrot.lane.b32.xlu0 %v2150_v46, %s2310_s25 }
 0x938   :  { %v2152_v49 = vpop.eup %2151 }
 0x939   :  { %v803_v50 = vadd.f32 1.0, %v2152_v49 }
 0x93b   :  { %2153 = vrcp.f32 %v803_v50  ;;  %v815_v57 = vand.u32 2147483648, %v803_v50  ;;  %vm809_vm8 = vweird.f32 %v803_v50  ;;  %v813_v58 = vand.u32 2147483647, %v803_v50 }
 0x93d   :  { %v816_v59 = vor.u32 1.1754944e-38, %v815_v57  ;;  %vm814_vm13 = vcmp.eq.f32.partialorder %v813_v58, 8.507059e+37 }
 0x941   :  { %v2154_v51 = vpop.eup %2153 }
 0x942   :  { %v805_v52 = vmul.f32 %v2154_v51, %v803_v50  ;;  %vm810_vm12 = vweird.f32 %v2154_v51 }
 0x943   :  { %vm811_vm9 = vmor %vm809_vm8, %vm810_vm12 }
 0x944   :  { %v806_v54 = vsub.f32 1.0, %v805_v52 }
 0x946   :  { %v807_v55 = vmul.f32 %v2154_v51, %v806_v54 }
 0x948   :  { %v808_v56 = vadd.f32 %v2154_v51, %v807_v55 }
 0x94a   :  { %v812_v48 = vsel %vm811_vm9, %v2154_v51, %v808_v56 }
 0x94b   :  { %v817_v61 = vsel %vm814_vm13, %v816_v59, %v812_v48 }
 0x94c   :  { %v820_v62 = vmul.f32 0.0, %v817_v61 }
 0x9a9   :  { %v823_v60 = vpop.permute.xlu0 %822 }
 0x9aa   :  { %v825_v53 = vmul.f32 %v823_v60, %v817_v61 }
 0x9ac   :  { %827 = vrot.lane.b32.xlu1 %v825_v53, %s2313_s29 }
 0xa1e   :  { %v828_v63 = vpop.permute.xlu1 %827 }
 0xa1f   :  { %v830_v0 = vadd.f32 %v828_v63, %v820_v62 }
 0xa21   :  { %2155 = vtanh.f32 %v830_v0 }
 0xa27   :  { %v2156_v1 = vpop.eup %2155 }
 0xa28   :  { %833 = vrot.lane.b32.xlu2 %v2156_v1, %s2310_s25 }
 0xa82   :  { %v834_v3 = vpop.permute.xlu2 %833 }
 0xa83   :  { %v836_v4 = vmul.f32 %v834_v3, %v817_v61 }
 0xa85   :  { %838 = vrot.lane.b32.xlu0 %v836_v4, %s2313_s29 }
 0xaf7   :  { %v2587_v5 = vpop.permute.xlu0 %838 }
 0xaf8   :  { %2067 = vmatmul.msk.f32.vlgmr.msra.gmra.mxu0 %vm34_vm0, %v2587_v5 }
 0xaf9   :  { %1232 = vmatpush.msra.mxu0 %v2469_v30 }
 0xafb   :  { %1233 = vmatpush.msra.mxu0 %v2471_v31 }
 0xafd   :  { %1234 = vmatpush.msra.mxu0 %v2475_v34 }
 0xaff   :  { %1235 = vmatpush.msra.mxu0 %v2485_v29 }
 0xb75   :  { %v859_v6 = vpop.f32.mrf.mxu0 }
 0xb76   :  { %v862_v8 = vadd.f32 %v859_v6, %v749_v28 }
 0xb78   :  { %2157 = vtanh.f32 %v862_v8  ;;  %v2068_v11 = vmul.f32 -1.442695, %v862_v8 }
 0xb7a   :  { %2159 = vpow2.f32 %v2068_v11 }
 0xb7e   :  { %v2158_v9 = vpop.eup %2157 }
 0xb7f   :  { %885 = vrot.lane.b32.xlu1 %v2158_v9, %s2310_s25 }
 0xb80   :  { %v2160_v12 = vpop.eup %2159 }
 0xb81   :  { %v866_v13 = vadd.f32 1.0, %v2160_v12 }
 0xb83   :  { %2161 = vrcp.f32 %v866_v13  ;;  %v878_v34 = vand.u32 2147483648, %v866_v13  ;;  %vm872_vm15 = vweird.f32 %v866_v13  ;;  %v876_v29 = vand.u32 2147483647, %v866_v13 }
 0xb85   :  { %v879_v36 = vor.u32 1.1754944e-38, %v878_v34  ;;  %vm877_vm2 = vcmp.eq.f32.partialorder %v876_v29, 8.507059e+37 }
 0xb89   :  { %v2162_v14 = vpop.eup %2161 }
 0xb8a   :  { %v868_v15 = vmul.f32 %v2162_v14, %v866_v13  ;;  %vm873_vm14 = vweird.f32 %v2162_v14 }
 0xb8b   :  { %vm874_vm1 = vmor %vm872_vm15, %vm873_vm14 }
 0xb8c   :  { %v869_v30 = vsub.f32 1.0, %v868_v15 }
 0xb8e   :  { %v870_v16 = vmul.f32 %v2162_v14, %v869_v30 }
 0xb90   :  { %v871_v31 = vadd.f32 %v2162_v14, %v870_v16 }
 0xb92   :  { %v875_v18 = vsel %vm874_vm1, %v2162_v14, %v871_v31 }
 0xb93   :  { %v880_v20 = vsel %vm877_vm2, %v879_v36, %v875_v18 }
 0xb94   :  { %v883_v23 = vmul.f32 %v880_v20, %v830_v0 }
 0xbf1   :  { %v886_v19 = vpop.permute.xlu1 %885 }
 0xbf2   :  { %v888_v21 = vmul.f32 %v886_v19, %v880_v20 }
 0xbf4   :  { %890 = vrot.lane.b32.xlu0 %v888_v21, %s2313_s29 }
 0xc66   :  { %v891_v26 = vpop.permute.xlu0 %890 }
 0xc67   :  { %v893_v27 = vadd.f32 %v891_v26, %v883_v23 }
 0xc69   :  { %2163 = vtanh.f32 %v893_v27 }
 0xc6f   :  { %v2164_v28 = vpop.eup %2163 }
 0xc70   :  { %896 = vrot.lane.b32.xlu2 %v2164_v28, %s2310_s25 }
 0xcca   :  { %v897_v37 = vpop.permute.xlu2 %896 }
 0xccb   :  { %v899_v46 = vmul.f32 %v897_v37, %v880_v20 }
 0xccd   :  { %901 = vrot.lane.b32.xlu1 %v899_v46, %s2313_s29 }
 0xd3f   :  { %v2599_v47 = vpop.permute.xlu1 %901 }
 0xd40   :  { %2069 = vmatmul.msk.f32.vlgmr.msra.gmra.mxu2 %vm34_vm0, %v2599_v47 }
 0xdc3   :  { %v922_v49 = vpop.f32.mrf.mxu2 }
 0xdc4   :  { %v925_v50 = vadd.f32 %v922_v49, %v760_v39 }
 0xdc6   :  { %2165 = vtanh.f32 %v925_v50  ;;  %v2070_v52 = vmul.f32 -1.442695, %v925_v50 }
 0xdc8   :  { %2167 = vpow2.f32 %v2070_v52 }
 0xdcc   :  { %v2166_v51 = vpop.eup %2165 }
 0xdcd   :  { %948 = vrot.lane.b32.xlu0 %v2166_v51, %s2310_s25 }
 0xdce   :  { %v2168_v54 = vpop.eup %2167 }
 0xdcf   :  { %v929_v55 = vadd.f32 1.0, %v2168_v54 }
 0xdd1   :  { %2169 = vrcp.f32 %v929_v55  ;;  %v941_v60 = vand.u32 2147483648, %v929_v55  ;;  %vm935_vm4 = vweird.f32 %v929_v55  ;;  %v939_v61 = vand.u32 2147483647, %v929_v55 }
 0xdd3   :  { %v942_v53 = vor.u32 1.1754944e-38, %v941_v60  ;;  %vm940_vm6 = vcmp.eq.f32.partialorder %v939_v61, 8.507059e+37 }
 0xdd7   :  { %v2170_v56 = vpop.eup %2169 }
 0xdd8   :  { %v931_v57 = vmul.f32 %v2170_v56, %v929_v55  ;;  %vm936_vm3 = vweird.f32 %v2170_v56 }
 0xdd9   :  { %vm937_vm5 = vmor %vm935_vm4, %vm936_vm3 }
 0xdda   :  { %v932_v58 = vsub.f32 1.0, %v931_v57 }
 0xddc   :  { %v933_v48 = vmul.f32 %v2170_v56, %v932_v58 }
 0xdde   :  { %v934_v59 = vadd.f32 %v2170_v56, %v933_v48 }
 0xde0   :  { %v938_v39 = vsel %vm937_vm5, %v2170_v56, %v934_v59 }
 0xde1   :  { %v943_v63 = vsel %vm940_vm6, %v942_v53, %v938_v39 }
 0xde2   :  { %v946_v1 = vmul.f32 %v943_v63, %v893_v27 }
 0xe3f   :  { %v949_v62 = vpop.permute.xlu0 %948 }
 0xe40   :  { %v951_v0 = vmul.f32 %v949_v62, %v943_v63 }
 0xe42   :  { %953 = vrot.lane.b32.xlu2 %v951_v0, %s2313_s29 }
 0xe9c   :  { %v954_v3 = vpop.permute.xlu2 %953 }
 0xe9d   :  { %v956_v4 = vadd.f32 %v954_v3, %v946_v1 }
 0xe9f   :  { %2171 = vtanh.f32 %v956_v4 }
 0xea5   :  { %v2172_v6 = vpop.eup %2171 }
 0xea6   :  { %959 = vrot.lane.b32.xlu1 %v2172_v6, %s2310_s25 }
 0xf18   :  { %v960_v8 = vpop.permute.xlu1 %959 }
 0xf19   :  { %v962_v9 = vmul.f32 %v960_v8, %v943_v63 }
 0xf1b   :  { %964 = vrot.lane.b32.xlu0 %v962_v9, %s2313_s29 }
 0xf8d   :  { %v2612_v11 = vpop.permute.xlu0 %964 }
 0xf8e   :  { %2071 = vmatmul.msk.f32.vlgmr.msra.gmra.mxu3 %vm34_vm0, %v2612_v11 }
0x1011   :  { %v985_v12 = vpop.f32.mrf.mxu3 }
0x1012   :  { %v988_v13 = vadd.f32 %v985_v12, %v771_v41 }
0x1014   :  { %2173 = vtanh.f32 %v988_v13  ;;  %v2072_v15 = vmul.f32 -1.442695, %v988_v13 }
0x1016   :  { %2175 = vpow2.f32 %v2072_v15 }
0x101a   :  { %v2174_v14 = vpop.eup %2173 }
0x101b   :  { %1011 = vrot.lane.b32.xlu2 %v2174_v14, %s2310_s25 }
0x101c   :  { %v2176_v30 = vpop.eup %2175 }
0x101d   :  { %v992_v16 = vadd.f32 1.0, %v2176_v30 }
0x101f   :  { %2177 = vrcp.f32 %v992_v16  ;;  %v1004_v19 = vand.u32 2147483648, %v992_v16  ;;  %vm998_vm12 = vweird.f32 %v992_v16  ;;  %v1002_v20 = vand.u32 2147483647, %v992_v16 }
0x1021   :  { %v1005_v21 = vor.u32 1.1754944e-38, %v1004_v19  ;;  %vm1003_vm9 = vcmp.eq.f32.partialorder %v1002_v20, 8.507059e+37 }
0x1025   :  { %v2178_v31 = vpop.eup %2177 }
0x1026   :  { %v994_v34 = vmul.f32 %v2178_v31, %v992_v16  ;;  %vm999_vm7 = vweird.f32 %v2178_v31 }
0x1027   :  { %vm1000_vm8 = vmor %vm998_vm12, %vm999_vm7 }
0x1028   :  { %v995_v29 = vsub.f32 1.0, %v994_v34 }
0x102a   :  { %v996_v18 = vmul.f32 %v2178_v31, %v995_v29 }
0x102c   :  { %v997_v36 = vadd.f32 %v2178_v31, %v996_v18 }
0x102e   :  { %v1001_v41 = vsel %vm1000_vm8, %v2178_v31, %v997_v36 }
0x102f   :  { %v1006_v26 = vsel %vm1003_vm9, %v1005_v21, %v1001_v41 }
0x1030   :  { %v1009_v28 = vmul.f32 %v1006_v26, %v956_v4 }
0x1075   :  { %v1012_v23 = vpop.permute.xlu2 %1011 }
0x1076   :  { %v1014_v27 = vmul.f32 %v1012_v23, %v1006_v26 }
0x1078   :  { %1016 = vrot.lane.b32.xlu1 %v1014_v27, %s2313_s29 }
0x10ea   :  { %v1017_v37 = vpop.permute.xlu1 %1016 }
0x10eb   :  { %v1019_v46 = vadd.f32 %v1017_v37, %v1009_v28 }
0x10ed   :  { %2179 = vtanh.f32 %v1019_v46 }
0x10f3   :  { %v2180_v49 = vpop.eup %2179 }
0x10f4   :  { %1022 = vrot.lane.b32.xlu0 %v2180_v49, %s2310_s25 }
0x1166   :  { %v1023_v50 = vpop.permute.xlu0 %1022 }
0x1167   :  { %v1025_v51 = vmul.f32 %v1023_v50, %v1006_v26 }
0x1169   :  { %1027 = vrot.lane.b32.xlu2 %v1025_v51, %s2313_s29 }
0x11c3   :  { %v2625_v52 = vpop.permute.xlu2 %1027 }
0x11c4   :  { %2073 = vmatmul.msk.f32.vlgmr.msrb.gmra.mxu0 %vm34_vm0, %v2625_v52 }
0x1241   :  { %v1048_v54 = vpop.f32.mrf.mxu0 }
0x1242   :  { %v1051_v55 = vadd.f32 %v1048_v54, %v772_v42 }
0x1244   :  { %2181 = vtanh.f32 %v1051_v55  ;;  %v2074_v57 = vmul.f32 -1.442695, %v1051_v55 }
0x1246   :  { %2183 = vpow2.f32 %v2074_v57 }
0x124a   :  { %v2182_v56 = vpop.eup %2181 }
0x124b   :  { %1074 = vrot.lane.b32.xlu1 %v2182_v56, %s2310_s25 }
0x124c   :  { %v2184_v58 = vpop.eup %2183 }
0x124d   :  { %v1055_v48 = vadd.f32 1.0, %v2184_v58 }
0x124f   :  { %2185 = vrcp.f32 %v1055_v48  ;;  %v1067_v62 = vand.u32 2147483648, %v1055_v48  ;;  %vm1061_vm14 = vweird.f32 %v1055_v48  ;;  %v1065_v63 = vand.u32 2147483647, %v1055_v48 }
0x1251   :  { %v1068_v40 = vor.u32 1.1754944e-38, %v1067_v62  ;;  %vm1066_vm1 = vcmp.eq.f32.partialorder %v1065_v63, 8.507059e+37 }
0x1255   :  { %v2186_v59 = vpop.eup %2185 }
0x1256   :  { %v1057_v60 = vmul.f32 %v2186_v59, %v1055_v48  ;;  %vm1062_vm13 = vweird.f32 %v2186_v59 }
0x1257   :  { %vm1063_vm15 = vmor %vm1061_vm14, %vm1062_vm13 }
0x1258   :  { %v1058_v61 = vsub.f32 1.0, %v1057_v60 }
0x125a   :  { %v1059_v39 = vmul.f32 %v2186_v59, %v1058_v61 }
0x125c   :  { %v1060_v53 = vadd.f32 %v2186_v59, %v1059_v39 }
0x125e   :  { %v1064_v32 = vsel %vm1063_vm15, %v2186_v59, %v1060_v53 }
0x125f   :  { %v1069_v0 = vsel %vm1066_vm1, %v1068_v40, %v1064_v32  ;;  %vm690_vm1 = vcmp.lt.s32.totalorder %v2520_v2, 16 }
0x1260   :  { %v1072_v3 = vmul.f32 %v1069_v0, %v1019_v46 }
0x12bd   :  { %v1075_v42 = vpop.permute.xlu1 %1074 }
0x12be   :  { %v1077_v1 = vmul.f32 %v1075_v42, %v1069_v0 }
0x12c0   :  { %1079 = vrot.lane.b32.xlu0 %v1077_v1, %s2313_s29 }
0x1332   :  { %v1080_v4 = vpop.permute.xlu0 %1079 }
0x1333   :  { %v1082_v6 = vadd.f32 %v1080_v4, %v1072_v3 }
0x1335   :  { %2187 = vtanh.f32 %v1082_v6 }
0x133b   :  { %v2188_v8 = vpop.eup %2187 }
0x133c   :  { %1085 = vrot.lane.b32.xlu2 %v2188_v8, %s2310_s25 }
0x1396   :  { %v1086_v9 = vpop.permute.xlu2 %1085 }
0x1397   :  { %v1088_v12 = vmul.f32 %v1086_v9, %v1069_v0 }
0x1399   :  { %1090 = vrot.lane.b32.xlu1 %v1088_v12, %s2313_s29 }
0x140b   :  { %v2638_v13 = vpop.permute.xlu1 %1090 }
0x140c   :  { %2075 = vmatmul.msk.f32.vlgmr.msrb.gmra.mxu2 %vm34_vm0, %v2638_v13 }
0x148f   :  { %v1111_v14 = vpop.f32.mrf.mxu2 }
0x1490   :  { %v1114_v15 = vadd.f32 %v1111_v14, %v773_v43 }
0x1492   :  { %2189 = vtanh.f32 %v1114_v15  ;;  %v2076_v16 = vmul.f32 -1.442695, %v1114_v15 }
0x1494   :  { %2191 = vpow2.f32 %v2076_v16 }
0x1498   :  { %v2190_v30 = vpop.eup %2189 }
0x1499   :  { %1137 = vrot.lane.b32.xlu0 %v2190_v30, %s2310_s25 }
0x149a   :  { %v2192_v31 = vpop.eup %2191 }
0x149b   :  { %v1118_v34 = vadd.f32 1.0, %v2192_v31 }
0x149d   :  { %2193 = vrcp.f32 %v1118_v34  ;;  %v1130_v41 = vand.u32 2147483648, %v1118_v34  ;;  %vm1124_vm3 = vweird.f32 %v1118_v34  ;;  %v1128_v21 = vand.u32 2147483647, %v1118_v34 }
0x149f   :  { %v1131_v35 = vor.u32 1.1754944e-38, %v1130_v41  ;;  %vm1129_vm5 = vcmp.eq.f32.partialorder %v1128_v21, 8.507059e+37 }
0x14a3   :  { %v2194_v29 = vpop.eup %2193 }
0x14a4   :  { %v1120_v18 = vmul.f32 %v2194_v29, %v1118_v34  ;;  %vm1125_vm2 = vweird.f32 %v2194_v29 }
0x14a5   :  { %vm1126_vm4 = vmor %vm1124_vm3, %vm1125_vm2  ;;  %vm1334_vm2 = vcmask 1041408   ;;  %vm1336_vm3 = vcmask 1042432  }
0x14a6   :  { %v1121_v36 = vsub.f32 1.0, %v1120_v18 }
0x14a8   :  { %v1122_v19 = vmul.f32 %v2194_v29, %v1121_v36 }
0x14aa   :  { %v1123_v20 = vadd.f32 %v2194_v29, %v1122_v19 }
0x14ac   :  { %v1127_v33 = vsel %vm1126_vm4, %v2194_v29, %v1123_v20  ;;  %vm1338_vm4 = vcmask 1043456  }
0x14ad   :  { %v1132_v23 = vsel %vm1129_vm5, %v1131_v35, %v1127_v33  ;;  %vm1340_vm5 = vcmask 1044480  }
0x14ae   :  { %v1135_v27 = vmul.f32 %v1132_v23, %v1082_v6 }
0x150b   :  { %v1138_v43 = vpop.permute.xlu0 %1137 }
0x150c   :  { %v1140_v26 = vmul.f32 %v1138_v43, %v1132_v23 }
0x150e   :  { %1142 = vrot.lane.b32.xlu2 %v1140_v26, %s2313_s29 }
0x1568   :  { %v1143_v28 = vpop.permute.xlu2 %1142 }
0x1569   :  { %v1145_v37 = vadd.f32 %v1143_v28, %v1135_v27  ;;  %v1356_v28 = vld [vmem:[#allocation2 + $0x138] sm:$0xff] }
0x156a   :  { %1380 = vmatpush.msra.mxu2 %v1356_v28 }
0x156b   :  { %2195 = vtanh.f32 %v1145_v37 }
0x1571   :  { %v2196_v46 = vpop.eup %2195 }
0x1572   :  { %1148 = vrot.lane.b32.xlu1 %v2196_v46, %s2310_s25  ;;  %v1354_v46 = vld [vmem:[#allocation2 + $0x128] sm:$0xff] }
0x15e4   :  { %v1149_v49 = vpop.permute.xlu1 %1148 }
0x15e5   :  { %v1151_v50 = vmul.f32 %v1149_v49, %v1132_v23  ;;  %v1353_v49 = vld [vmem:[#allocation2 + $0x120] sm:$0xff] }
0x15e7   :  { %1153 = vrot.lane.b32.xlu0 %v1151_v50, %s2313_s29  ;;  %v1360_v50 = vld [vmem:[#allocation2 + $0x158] sm:$0xff] }
0x15e8   :  { %1449 = vmatpush.msra.mxu3 %v1360_v50  ;;  %1512 = vmatpush.msrb.mxu0 %v1360_v50 }
0x15e9   :  { %1575 = vmatpush.msra.mxu1 %v1360_v50 }
0x1659   :  { %v2651_v51 = vpop.permute.xlu0 %1153 }
0x165a   :  { %2077 = vmatmul.msk.f32.vlgmr.msrb.gmra.mxu3 %vm34_vm0, %v2651_v51 }
0x16dd   :  { %v1174_v54 = vpop.f32.mrf.mxu3 }
0x16de   :  { %v1177_v55 = vadd.f32 %v1174_v54, %v774_v10  ;;  %v1359_v54 = vld [vmem:[#allocation2 + $0x150] sm:$0xff] }
0x16df   :  { %1450 = vmatpush.msra.mxu3 %v1359_v54  ;;  %1513 = vmatpush.msrb.mxu0 %v1359_v54 }
0x16e0   :  { %2197 = vtanh.f32 %v1177_v55  ;;  %v2078_v57 = vmul.f32 -1.442695, %v1177_v55  ;;  %v1358_v55 = vld [vmem:[#allocation2 + $0x148] sm:$0xff]  ;;  %1576 = vmatpush.msra.mxu1 %v1359_v54 }
0x16e1   :  { %1451 = vmatpush.msra.mxu3 %v1358_v55  ;;  %1514 = vmatpush.msrb.mxu0 %v1358_v55 }
0x16e2   :  { %2199 = vpow2.f32 %v2078_v57  ;;  %1577 = vmatpush.msra.mxu1 %v1358_v55  ;;  %v1292_v57 = vsel %vm690_vm1, %v2625_v52, %v2638_v13 }
0x16e6   :  { %v2198_v56 = vpop.eup %2197 }
0x16e7   :  { %1200 = vrot.lane.b32.xlu2 %v2198_v56, %s2310_s25  ;;  %v1357_v56 = vld [vmem:[#allocation2 + $0x140] sm:$0xff] }
0x16e8   :  { %v2200_v58 = vpop.eup %2199  ;;  %1452 = vmatpush.msra.mxu3 %v1357_v56  ;;  %1515 = vmatpush.msrb.mxu0 %v1357_v56 }
0x16e9   :  { %v1181_v48 = vadd.f32 1.0, %v2200_v58  ;;  %1453 = vmatmul.f32.vlgmr.msra.gmra.mxu3 %v2312_v38  ;;  %1578 = vmatpush.msra.mxu1 %v1357_v56  ;;  %v1293_v38 = vsel %vm690_vm1, %v2638_v13, %v2625_v52  ;;  %v1323_v52 = vrot.slane %v1292_v57, 6 }
0x16ea   :  { %1638 = vmatpush.msrb.mxu3 %v1360_v50  ;;  %v1325_v13 = vrot.slane %v1293_v38, 5 }
0x16eb   :  { %2201 = vrcp.f32 %v1181_v48  ;;  %v1193_v62 = vand.u32 2147483648, %v1181_v48  ;;  %vm1187_vm7 = vweird.f32 %v1181_v48  ;;  %v1191_v63 = vand.u32 2147483647, %v1181_v48  ;;  %1764 = vmatpush.msrb.mxu1 %v1360_v50 }
0x16ec   :  { %1639 = vmatpush.msrb.mxu3 %v1359_v54 }
0x16ed   :  { %v1194_v25 = vor.u32 1.1754944e-38, %v1193_v62  ;;  %vm1192_vm8 = vcmp.eq.f32.partialorder %v1191_v63, 8.507059e+37  ;;  %1765 = vmatpush.msrb.mxu1 %v1359_v54 }
0x16ee   :  { %1640 = vmatpush.msrb.mxu3 %v1358_v55 }
0x16ef   :  { %1766 = vmatpush.msrb.mxu1 %v1358_v55 }
0x16f0   :  { %1641 = vmatpush.msrb.mxu3 %v1357_v56 }
0x16f1   :  { %v2202_v59 = vpop.eup %2201  ;;  %1767 = vmatpush.msrb.mxu1 %v1357_v56 }
0x16f2   :  { %v1183_v60 = vmul.f32 %v2202_v59, %v1181_v48  ;;  %vm1188_vm6 = vweird.f32 %v2202_v59  ;;  %v1289_v48 = vsel %vm690_vm1, %v2612_v11, %v2651_v51  ;;  %1890 = vmatpush.msra.mxu3 %v1360_v50 }
0x16f3   :  { %vm1189_vm12 = vmor %vm1187_vm7, %vm1188_vm6  ;;  %v1301_v62 = vrot.slane %v1289_v48, 6  ;;  %vm1342_vm6 = vcmask 1045504   ;;  %vm1344_vm7 = vcmask 1046528  }
0x16f4   :  { %v1184_v61 = vsub.f32 1.0, %v1183_v60  ;;  %v1307_v60 = vrot.slane %v1293_v38, 4  ;;  %1891 = vmatpush.msra.mxu3 %v1359_v54 }
0x16f6   :  { %v1185_v39 = vmul.f32 %v2202_v59, %v1184_v61  ;;  %1892 = vmatpush.msra.mxu3 %v1358_v55 }
0x16f8   :  { %v1186_v53 = vadd.f32 %v2202_v59, %v1185_v39  ;;  %1893 = vmatpush.msra.mxu3 %v1357_v56 }
0x16fa   :  { %v1190_v17 = vsel %vm1189_vm12, %v2202_v59, %v1186_v53  ;;  %v1304_v59 = vrot.slane %v1292_v57, 5  ;;  %v1294_v53 = vsel %vm690_vm1, %v2651_v51, %v2612_v11 }
0x16fb   :  { %v1195_v32 = vsel %vm1192_vm8, %v1194_v25, %v1190_v17 }
0x16fc   :  { %v1198_v42 = vmul.f32 %v1195_v32, %v1145_v37  ;;  %v1355_v37 = vld [vmem:[#allocation2 + $0x130] sm:$0xff] }
0x16fd   :  { %1381 = vmatpush.msra.mxu2 %v1355_v37 }
0x16ff   :  { %1382 = vmatpush.msra.mxu2 %v1354_v46 }
0x1701   :  { %1383 = vmatpush.msra.mxu2 %v1353_v49 }
0x1703   :  { %1827 = vmatpush.msrb.mxu2 %v1360_v50 }
0x1705   :  { %1828 = vmatpush.msrb.mxu2 %v1359_v54 }
0x1707   :  { %1829 = vmatpush.msrb.mxu2 %v1358_v55 }
0x1709   :  { %1830 = vmatpush.msrb.mxu2 %v1357_v56 }
0x1741   :  { %v1201_v10 = vpop.permute.xlu2 %1200 }
0x1742   :  { %v1203_v40 = vmul.f32 %v1201_v10, %v1195_v32 }
0x1744   :  { %1205 = vrot.lane.b32.xlu1 %v1203_v40, %s2313_s29  ;;  %v1310_v40 = vrot.slane %v1294_v53, 3 }
0x17b6   :  { %v1206_v0 = vpop.permute.xlu1 %1205 }
0x17b7   :  { %v1208_v1 = vadd.f32 %v1206_v0, %v1198_v42 }
0x17b9   :  { %2203 = vtanh.f32 %v1208_v1 }
0x17bf   :  { %v2204_v3 = vpop.eup %2203 }
0x17c0   :  { %1211 = vrot.lane.b32.xlu0 %v2204_v3, %s2310_s25 }
0x1832   :  { %v1212_v4 = vpop.permute.xlu0 %1211 }
0x1833   :  { %v1214_v6 = vmul.f32 %v1212_v4, %v1195_v32  ;;  %v1321_v32 = vrot.slane %v1289_v48, 7 }
0x1835   :  { %1216 = vrot.lane.b32.xlu2 %v1214_v6, %s2313_s29 }
0x188f   :  { %v2664_v8 = vpop.permute.xlu2 %1216 }
0x1890   :  { %2079 = vmatmul.msk.f32.vlgmr.msra.gmra.mxu0 %vm34_vm0, %v2664_v8  ;;  %v1286_v58 = vsel %vm690_vm1, %v2599_v47, %v2664_v8  ;;  %v1295_v17 = vsel %vm690_vm1, %v2664_v8, %v2599_v47 }
0x1891   :  { %1701 = vmatpush.msra.mxu0 %v1360_v50  ;;  %v1298_v61 = vrot.slane %v1286_v58, 7  ;;  %v1313_v47 = vrot.slane %v1295_v17, 2 }
0x1893   :  { %1702 = vmatpush.msra.mxu0 %v1359_v54 }
0x1895   :  { %1703 = vmatpush.msra.mxu0 %v1358_v55 }
0x1897   :  { %1704 = vmatpush.msra.mxu0 %v1357_v56 }
0x190d   :  { %v1237_v9 = vpop.f32.mrf.mxu0 }
0x190e   :  { %v1240_v12 = vadd.f32 %v1237_v9, %v775_v45 }
0x1910   :  { %2205 = vtanh.f32 %v1240_v12  ;;  %v2080_v15 = vmul.f32 -1.442695, %v1240_v12  ;;  %v1327_v12 = vrot.slane %v1294_v53, 4 }
0x1912   :  { %2207 = vpow2.f32 %v2080_v15 }
0x1916   :  { %v2206_v14 = vpop.eup %2205 }
0x1917   :  { %1263 = vrot.lane.b32.xlu1 %v2206_v14, %s2310_s25 }
0x1918   :  { %v2208_v30 = vpop.eup %2207 }
0x1919   :  { %v1244_v16 = vadd.f32 1.0, %v2208_v30  ;;  %v1329_v30 = vrot.slane %v1295_v17, 3 }
0x191b   :  { %2209 = vrcp.f32 %v1244_v16  ;;  %v1256_v19 = vand.u32 2147483648, %v1244_v16  ;;  %vm1250_vm13 = vweird.f32 %v1244_v16  ;;  %v1254_v20 = vand.u32 2147483647, %v1244_v16 }
0x191d   :  { %v1257_v22 = vor.u32 1.1754944e-38, %v1256_v19  ;;  %vm1255_vm15 = vcmp.eq.f32.partialorder %v1254_v20, 8.507059e+37 }
0x1921   :  { %v2210_v31 = vpop.eup %2209 }
0x1922   :  { %v1246_v34 = vmul.f32 %v2210_v31, %v1244_v16  ;;  %vm1251_vm9 = vweird.f32 %v2210_v31 }
0x1923   :  { %vm1252_vm14 = vmor %vm1250_vm13, %vm1251_vm9 }
0x1924   :  { %v1247_v29 = vsub.f32 1.0, %v1246_v34 }
0x1926   :  { %v1248_v18 = vmul.f32 %v2210_v31, %v1247_v29 }
0x1928   :  { %v1249_v36 = vadd.f32 %v2210_v31, %v1248_v18  ;;  %v1361_v18 = vperm.slane %v2505_v44, 3 }
0x192a   :  { %v1253_v24 = vsel %vm1252_vm14, %v2210_v31, %v1249_v36 }
0x192b   :  { %v1258_v41 = vsel %vm1255_vm15, %v1257_v22, %v1253_v24 }
0x192c   :  { %v1261_v33 = vmul.f32 %v1258_v41, %v1208_v1 }
0x1989   :  { %v1264_v45 = vpop.permute.xlu1 %1263 }
0x198a   :  { %v1266_v21 = vmul.f32 %v1264_v45, %v1258_v41 }
0x198c   :  { %1268 = vrot.lane.b32.xlu0 %v1266_v21, %s2313_s29 }
0x19fe   :  { %v1269_v35 = vpop.permute.xlu0 %1268 }
0x19ff   :  { %v1271_v43 = vadd.f32 %v1269_v35, %v1261_v33 }
0x1a01   :  { %2211 = vtanh.f32 %v1271_v43 }
0x1a07   :  { %v2212_v23 = vpop.eup %2211 }
0x1a08   :  { %1274 = vrot.lane.b32.xlu2 %v2212_v23, %s2310_s25 }
0x1a62   :  { %v1275_v26 = vpop.permute.xlu2 %1274 }
0x1a63   :  { %v1277_v27 = vmul.f32 %v1275_v26, %v1258_v41 }
0x1a65   :  { %1280 = vrot.lane.b32.xlu1 %v1277_v27, %s2313_s29  ;;  %v1454_v27 = vpop.f32.mrf.mxu3 }
0x1ad7   :  { %v1281_v39 = vpop.permute.xlu1 %1280 }
0x1ad8   :  { %v1283_v63 = vsel %vm690_vm1, %v2587_v5, %v1281_v39  ;;  %v1296_v11 = vsel %vm690_vm1, %v1281_v39, %v2587_v5 }
0x1ad9   :  { %v1319_v25 = vrot.slane %v1283_v63, 1  ;;  %v1333_v10 = vsel %vm732_vm10, %v1283_v63, %v1298_v61  ;;  %v1316_v4 = vrot.slane %v1296_v11, 1  ;;  %v1331_v31 = vrot.slane %v1296_v11, 2 }
0x1ada   :  { %v1335_v51 = vsel %vm1334_vm2, %v1333_v10, %v1301_v62 }
0x1adb   :  { %v1337_v42 = vsel %vm1336_vm3, %v1335_v51, %v1304_v59  ;;  %v1346_v0 = vsel %vm732_vm10, %v1319_v25, %v1286_v58 }
0x1adc   :  { %v1339_v1 = vsel %vm1338_vm4, %v1337_v42, %v1307_v60  ;;  %v1347_v3 = vsel %vm1334_vm2, %v1346_v0, %v1321_v32 }
0x1add   :  { %v1341_v5 = vsel %vm1340_vm5, %v1339_v1, %v1310_v40  ;;  %v1348_v6 = vsel %vm1336_vm3, %v1347_v3, %v1323_v52 }
0x1ade   :  { %v1343_v8 = vsel %vm1342_vm6, %v1341_v5, %v1313_v47  ;;  %v1349_v9 = vsel %vm1338_vm4, %v1348_v6, %v1325_v13 }
0x1adf   :  { %v1345_v14 = vsel %vm1344_vm7, %v1343_v8, %v1316_v4  ;;  %v1350_v15 = vsel %vm1340_vm5, %v1349_v9, %v1327_v12 }
0x1ae0   :  { %2081 = vmatmul.msk.f32.vlgmr.msra.gmra.mxu2 %vm34_vm0, %v1345_v14  ;;  %v1351_v16 = vsel %vm1342_vm6, %v1350_v15, %v1329_v30 }
0x1ae1   :  { %v1352_v34 = vsel %vm1344_vm7, %v1351_v16, %v1331_v31 }
0x1ae8   :  { %2082 = vmatmul.msk.f32.gmra.mxu2 %vm34_vm0, %v1352_v34 }
0x1b63   :  { %v1385_v29 = vpop.f32.mrf.mxu2 }
0x1b64   :  { %v1386_v36 = vadd.f32 %v1385_v29, %v1361_v18 }
0x1b66   :  { %v1396_v24 = vrot.slane %v1386_v36, 7  ;;  %v1402_v22 = vrot.slane %v1386_v36, 1  ;;  %v1405_v45 = vrot.slane %v1386_v36, 6  ;;  %v1411_v41 = vrot.slane %v1386_v36, 2 }
0x1b67   :  { %v1416_v21 = vrot.slane %v1386_v36, 5  ;;  %v1422_v33 = vrot.slane %v1386_v36, 3  ;;  %v1427_v55 = vrot.slane %v1386_v36, 4 }
0x1b6b   :  { %v1388_v19 = vpop.f32.mrf.mxu2 }
0x1b6c   :  { %v1389_v20 = vadd.f32 %v1388_v19, %v1361_v18 }
0x1b6e   :  { %v1392_v35 = vrot.slane %v1389_v20, 7  ;;  %v1398_v43 = vrot.slane %v1389_v20, 6  ;;  %v2727_v23 = vsel %vm732_vm10, %v1402_v22, %v1389_v20  ;;  %v1407_v26 = vrot.slane %v1389_v20, 5 }
0x1b6f   :  { %v1413_v28 = vrot.slane %v1389_v20, 1  ;;  %v1418_v37 = vrot.slane %v1389_v20, 4  ;;  %v1424_v46 = vrot.slane %v1389_v20, 2  ;;  %v1429_v44 = vrot.slane %v1389_v20, 3 }
0x1b70   :  { %v2730_v49 = vsel %vm732_vm10, %v1386_v36, %v1392_v35  ;;  %v2733_v50 = vsel %vm732_vm10, %v1396_v24, %v1398_v43  ;;  %v2736_v54 = vsel %vm732_vm10, %v1405_v45, %v1407_v26 }
0x1b71   :  { %v1401_v56 = vsel %vm2523_vm11, %v2730_v49, %v2733_v50  ;;  %v1410_v57 = vsel %vm2523_vm11, %v2727_v23, %v2736_v54  ;;  %v2747_v38 = vsel %vm732_vm10, %v1411_v41, %v1413_v28  ;;  %v2750_v58 = vsel %vm732_vm10, %v1416_v21, %v1418_v37 }
0x1b72   :  { %v1457_v48 = vadd.f32 %v1454_v27, %v1401_v56  ;;  %v1421_v59 = vsel %vm2523_vm11, %v2747_v38, %v2750_v58  ;;  %v2757_v60 = vsel %vm732_vm10, %v1422_v33, %v1424_v46  ;;  %v2760_v52 = vsel %vm732_vm10, %v1427_v55, %v1429_v44 }
0x1b73   :  { %v1432_v13 = vsel %vm2523_vm11, %v2757_v60, %v2760_v52  ;;  %v1433_v61 = vsel %vm2523_vm11, %v2760_v52, %v2757_v60  ;;  %v1434_v39 = vsel %vm2523_vm11, %v2750_v58, %v2747_v38  ;;  %v1435_v53 = vsel %vm2523_vm11, %v2736_v54, %v2727_v23 }
0x1b74   :  { %2213 = vtanh.f32 %v1457_v48  ;;  %v1436_v62 = vsel %vm2523_vm11, %v2733_v50, %v2730_v49  ;;  %v2083_v17 = vmul.f32 -1.442695, %v1457_v48 }
0x1b76   :  { %2215 = vpow2.f32 %v2083_v17 }
0x1b7a   :  { %v2214_v63 = vpop.eup %2213 }
0x1b7b   :  { %1480 = vrot.lane.b32.xlu0 %v2214_v63, %s2310_s25 }
0x1b7c   :  { %v2216_v25 = vpop.eup %2215 }
0x1b7d   :  { %v1461_v10 = vadd.f32 1.0, %v2216_v25 }
0x1b7f   :  { %2217 = vrcp.f32 %v1461_v10  ;;  %v1473_v0 = vand.u32 2147483648, %v1461_v10  ;;  %vm1467_vm8 = vweird.f32 %v1461_v10  ;;  %v1471_v47 = vand.u32 2147483647, %v1461_v10 }
0x1b81   :  { %v1474_v3 = vor.u32 1.1754944e-38, %v1473_v0  ;;  %vm1472_vm13 = vcmp.eq.f32.partialorder %v1471_v47, 8.507059e+37 }
0x1b85   :  { %v2218_v32 = vpop.eup %2217 }
0x1b86   :  { %v1463_v11 = vmul.f32 %v2218_v32, %v1461_v10  ;;  %vm1468_vm12 = vweird.f32 %v2218_v32 }
0x1b87   :  { %vm1469_vm9 = vmor %vm1467_vm8, %vm1468_vm12 }
0x1b88   :  { %v1464_v51 = vsub.f32 1.0, %v1463_v11 }
0x1b8a   :  { %v1465_v40 = vmul.f32 %v2218_v32, %v1464_v51 }
0x1b8c   :  { %v1466_v42 = vadd.f32 %v2218_v32, %v1465_v40 }
0x1b8e   :  { %v1470_v1 = vsel %vm1469_vm9, %v2218_v32, %v1466_v42 }
0x1b8f   :  { %v1475_v5 = vsel %vm1472_vm13, %v1474_v3, %v1470_v1 }
0x1b90   :  { %v1478_v8 = vmul.f32 0.0, %v1475_v5 }
0x1bed   :  { %v1481_v4 = vpop.permute.xlu0 %1480 }
0x1bee   :  { %v1483_v6 = vmul.f32 %v1481_v4, %v1475_v5 }
0x1bf0   :  { %1485 = vrot.lane.b32.xlu2 %v1483_v6, %s2313_s29 }
0x1c4a   :  { %v1486_v9 = vpop.permute.xlu2 %1485 }
0x1c4b   :  { %v1488_v12 = vadd.f32 %v1486_v9, %v1478_v8 }
0x1c4d   :  { %2219 = vtanh.f32 %v1488_v12 }
0x1c53   :  { %v2220_v14 = vpop.eup %2219 }
0x1c54   :  { %1491 = vrot.lane.b32.xlu1 %v2220_v14, %s2310_s25 }
0x1cc6   :  { %v1492_v15 = vpop.permute.xlu1 %1491 }
0x1cc7   :  { %v1494_v30 = vmul.f32 %v1492_v15, %v1475_v5 }
0x1cc9   :  { %1496 = vrot.lane.b32.xlu0 %v1494_v30, %s2313_s29 }
0x1d3b   :  { %v2786_v16 = vpop.permute.xlu0 %1496 }
0x1d3c   :  { %2084 = vmatmul.msk.f32.vlgmr.msrb.gmra.mxu0 %vm34_vm0, %v2786_v16 }
0x1db9   :  { %v1517_v31 = vpop.f32.mrf.mxu0 }
0x1dba   :  { %v1520_v34 = vadd.f32 %v1517_v31, %v1410_v57 }
0x1dbc   :  { %2221 = vtanh.f32 %v1520_v34  ;;  %v2085_v18 = vmul.f32 -1.442695, %v1520_v34 }
0x1dbe   :  { %2223 = vpow2.f32 %v2085_v18 }
0x1dc2   :  { %v2222_v29 = vpop.eup %2221 }
0x1dc3   :  { %1543 = vrot.lane.b32.xlu2 %v2222_v29, %s2310_s25 }
0x1dc4   :  { %v2224_v36 = vpop.eup %2223 }
0x1dc5   :  { %v1524_v19 = vadd.f32 1.0, %v2224_v36 }
0x1dc7   :  { %2225 = vrcp.f32 %v1524_v19  ;;  %v1536_v21 = vand.u32 2147483648, %v1524_v19  ;;  %vm1530_vm15 = vweird.f32 %v1524_v19  ;;  %v1534_v33 = vand.u32 2147483647, %v1524_v19 }
0x1dc9   :  { %v1537_v43 = vor.u32 1.1754944e-38, %v1536_v21  ;;  %vm1535_vm8 = vcmp.eq.f32.partialorder %v1534_v33, 8.507059e+37 }
0x1dcd   :  { %v2226_v20 = vpop.eup %2225 }
0x1dce   :  { %v1526_v24 = vmul.f32 %v2226_v20, %v1524_v19  ;;  %vm1531_vm14 = vweird.f32 %v2226_v20 }
0x1dcf   :  { %vm1532_vm12 = vmor %vm1530_vm15, %vm1531_vm14 }
0x1dd0   :  { %v1527_v22 = vsub.f32 1.0, %v1526_v24 }
0x1dd2   :  { %v1528_v45 = vmul.f32 %v2226_v20, %v1527_v22 }
0x1dd4   :  { %v1529_v41 = vadd.f32 %v2226_v20, %v1528_v45 }
0x1dd6   :  { %v1533_v35 = vsel %vm1532_vm12, %v2226_v20, %v1529_v41 }
0x1dd7   :  { %v1538_v27 = vsel %vm1535_vm8, %v1537_v43, %v1533_v35 }
0x1dd8   :  { %v1541_v37 = vmul.f32 %v1538_v27, %v1488_v12 }
0x1e1d   :  { %v1544_v26 = vpop.permute.xlu2 %1543 }
0x1e1e   :  { %v1546_v28 = vmul.f32 %v1544_v26, %v1538_v27 }
0x1e20   :  { %1548 = vrot.lane.b32.xlu1 %v1546_v28, %s2313_s29 }
0x1e92   :  { %v1549_v46 = vpop.permute.xlu1 %1548 }
0x1e93   :  { %v1551_v44 = vadd.f32 %v1549_v46, %v1541_v37 }
0x1e95   :  { %2227 = vtanh.f32 %v1551_v44 }
0x1e9b   :  { %v2228_v55 = vpop.eup %2227 }
0x1e9c   :  { %1554 = vrot.lane.b32.xlu0 %v2228_v55, %s2310_s25 }
0x1f0e   :  { %v1555_v56 = vpop.permute.xlu0 %1554 }
0x1f0f   :  { %v1557_v57 = vmul.f32 %v1555_v56, %v1538_v27 }
0x1f11   :  { %1559 = vrot.lane.b32.xlu2 %v1557_v57, %s2313_s29 }
0x1f6b   :  { %v2794_v48 = vpop.permute.xlu2 %1559 }
0x1f6c   :  { %2086 = vmatmul.msk.f32.vlgmr.msra.gmra.mxu1 %vm34_vm0, %v2794_v48 }
0x1fe9   :  { %v1580_v63 = vpop.f32.mrf.mxu1 }
0x1fea   :  { %v1583_v17 = vadd.f32 %v1580_v63, %v1421_v59 }
0x1fec   :  { %2229 = vtanh.f32 %v1583_v17  ;;  %v2087_v10 = vmul.f32 -1.442695, %v1583_v17 }
0x1fee   :  { %2231 = vpow2.f32 %v2087_v10 }
0x1ff2   :  { %v2230_v25 = vpop.eup %2229 }
0x1ff3   :  { %1606 = vrot.lane.b32.xlu1 %v2230_v25, %s2310_s25 }
0x1ff4   :  { %v2232_v32 = vpop.eup %2231 }
0x1ff5   :  { %v1587_v11 = vadd.f32 1.0, %v2232_v32 }
0x1ff7   :  { %2233 = vrcp.f32 %v1587_v11  ;;  %v1599_v1 = vand.u32 2147483648, %v1587_v11  ;;  %vm1593_vm13 = vweird.f32 %v1587_v11  ;;  %v1597_v3 = vand.u32 2147483647, %v1587_v11 }
0x1ff9   :  { %v1600_v4 = vor.u32 1.1754944e-38, %v1599_v1  ;;  %vm1598_vm15 = vcmp.eq.f32.partialorder %v1597_v3, 8.507059e+37 }
0x1ffd   :  { %v2234_v51 = vpop.eup %2233 }
0x1ffe   :  { %v1589_v40 = vmul.f32 %v2234_v51, %v1587_v11  ;;  %vm1594_vm9 = vweird.f32 %v2234_v51 }
0x1fff   :  { %vm1595_vm14 = vmor %vm1593_vm13, %vm1594_vm9 }
0x2000   :  { %v1590_v42 = vsub.f32 1.0, %v1589_v40 }
0x2002   :  { %v1591_v0 = vmul.f32 %v2234_v51, %v1590_v42 }
0x2004   :  { %v1592_v47 = vadd.f32 %v2234_v51, %v1591_v0 }
0x2006   :  { %v1596_v59 = vsel %vm1595_vm14, %v2234_v51, %v1592_v47 }
0x2007   :  { %v1601_v6 = vsel %vm1598_vm15, %v1600_v4, %v1596_v59 }
0x2008   :  { %v1604_v9 = vmul.f32 %v1601_v6, %v1551_v44 }
0x2065   :  { %v1607_v5 = vpop.permute.xlu1 %1606 }
0x2066   :  { %v1609_v8 = vmul.f32 %v1607_v5, %v1601_v6 }
0x2068   :  { %1611 = vrot.lane.b32.xlu0 %v1609_v8, %s2313_s29 }
0x20da   :  { %v1612_v12 = vpop.permute.xlu0 %1611 }
0x20db   :  { %v1614_v14 = vadd.f32 %v1612_v12, %v1604_v9 }
0x20dd   :  { %2235 = vtanh.f32 %v1614_v14 }
0x20e3   :  { %v2236_v15 = vpop.eup %2235 }
0x20e4   :  { %1617 = vrot.lane.b32.xlu2 %v2236_v15, %s2310_s25 }
0x213e   :  { %v1618_v30 = vpop.permute.xlu2 %1617 }
0x213f   :  { %v1620_v31 = vmul.f32 %v1618_v30, %v1601_v6 }
0x2141   :  { %1622 = vrot.lane.b32.xlu1 %v1620_v31, %s2313_s29 }
0x21b3   :  { %v2807_v34 = vpop.permute.xlu1 %1622 }
0x21b4   :  { %2088 = vmatmul.msk.f32.vlgmr.msrb.gmra.mxu3 %vm34_vm0, %v2807_v34 }
0x2237   :  { %v1643_v29 = vpop.f32.mrf.mxu3 }
0x2238   :  { %v1646_v18 = vadd.f32 %v1643_v29, %v1432_v13 }
0x223a   :  { %2237 = vtanh.f32 %v1646_v18  ;;  %v2089_v19 = vmul.f32 -1.442695, %v1646_v18 }
0x223c   :  { %2239 = vpow2.f32 %v2089_v19 }
0x2240   :  { %v2238_v36 = vpop.eup %2237 }
0x2241   :  { %1669 = vrot.lane.b32.xlu0 %v2238_v36, %s2310_s25 }
0x2242   :  { %v2240_v20 = vpop.eup %2239 }
0x2243   :  { %v1650_v24 = vadd.f32 1.0, %v2240_v20 }
0x2245   :  { %2241 = vrcp.f32 %v1650_v24  ;;  %v1662_v35 = vand.u32 2147483648, %v1650_v24  ;;  %vm1656_vm8 = vweird.f32 %v1650_v24  ;;  %v1660_v43 = vand.u32 2147483647, %v1650_v24 }
0x2247   :  { %v1663_v26 = vor.u32 1.1754944e-38, %v1662_v35  ;;  %vm1661_vm13 = vcmp.eq.f32.partialorder %v1660_v43, 8.507059e+37 }
0x224b   :  { %v2242_v22 = vpop.eup %2241 }
0x224c   :  { %v1652_v45 = vmul.f32 %v2242_v22, %v1650_v24  ;;  %vm1657_vm12 = vweird.f32 %v2242_v22 }
0x224d   :  { %vm1658_vm9 = vmor %vm1656_vm8, %vm1657_vm12 }
0x224e   :  { %v1653_v41 = vsub.f32 1.0, %v1652_v45 }
0x2250   :  { %v1654_v21 = vmul.f32 %v2242_v22, %v1653_v41 }
0x2252   :  { %v1655_v33 = vadd.f32 %v2242_v22, %v1654_v21 }
0x2254   :  { %v1659_v13 = vsel %vm1658_vm9, %v2242_v22, %v1655_v33 }
0x2255   :  { %v1664_v28 = vsel %vm1661_vm13, %v1663_v26, %v1659_v13 }
0x2256   :  { %v1667_v46 = vmul.f32 %v1664_v28, %v1614_v14 }
0x22b3   :  { %v1670_v27 = vpop.permute.xlu0 %1669 }
0x22b4   :  { %v1672_v37 = vmul.f32 %v1670_v27, %v1664_v28 }
0x22b6   :  { %1674 = vrot.lane.b32.xlu2 %v1672_v37, %s2313_s29 }
0x2310   :  { %v1675_v44 = vpop.permute.xlu2 %1674 }
0x2311   :  { %v1677_v55 = vadd.f32 %v1675_v44, %v1667_v46 }
0x2313   :  { %2243 = vtanh.f32 %v1677_v55 }
0x2319   :  { %v2244_v56 = vpop.eup %2243 }
0x231a   :  { %1680 = vrot.lane.b32.xlu1 %v2244_v56, %s2310_s25 }
0x238c   :  { %v1681_v57 = vpop.permute.xlu1 %1680 }
0x238d   :  { %v1683_v63 = vmul.f32 %v1681_v57, %v1664_v28 }
0x238f   :  { %1685 = vrot.lane.b32.xlu0 %v1683_v63, %s2313_s29 }
0x2401   :  { %v2820_v17 = vpop.permute.xlu0 %1685 }
0x2402   :  { %2090 = vmatmul.msk.f32.vlgmr.msra.gmra.mxu0 %vm34_vm0, %v2820_v17 }
0x247f   :  { %v1706_v25 = vpop.f32.mrf.mxu0 }
0x2480   :  { %v1709_v10 = vadd.f32 %v1706_v25, %v1433_v61 }
0x2482   :  { %2245 = vtanh.f32 %v1709_v10  ;;  %v2091_v11 = vmul.f32 -1.442695, %v1709_v10 }
0x2484   :  { %2247 = vpow2.f32 %v2091_v11 }
0x2488   :  { %v2246_v32 = vpop.eup %2245 }
0x2489   :  { %1732 = vrot.lane.b32.xlu2 %v2246_v32, %s2310_s25 }
0x248a   :  { %v2248_v51 = vpop.eup %2247 }
0x248b   :  { %v1713_v40 = vadd.f32 1.0, %v2248_v51 }
0x248d   :  { %2249 = vrcp.f32 %v1713_v40  ;;  %v1725_v59 = vand.u32 2147483648, %v1713_v40  ;;  %vm1719_vm15 = vweird.f32 %v1713_v40  ;;  %v1723_v4 = vand.u32 2147483647, %v1713_v40 }
0x248f   :  { %v1726_v52 = vor.u32 1.1754944e-38, %v1725_v59  ;;  %vm1724_vm8 = vcmp.eq.f32.partialorder %v1723_v4, 8.507059e+37 }
0x2493   :  { %v2250_v42 = vpop.eup %2249 }
0x2494   :  { %v1715_v0 = vmul.f32 %v2250_v42, %v1713_v40  ;;  %vm1720_vm14 = vweird.f32 %v2250_v42 }
0x2495   :  { %vm1721_vm12 = vmor %vm1719_vm15, %vm1720_vm14 }
0x2496   :  { %v1716_v47 = vsub.f32 1.0, %v1715_v0 }
0x2498   :  { %v1717_v1 = vmul.f32 %v2250_v42, %v1716_v47 }
0x249a   :  { %v1718_v3 = vadd.f32 %v2250_v42, %v1717_v1 }
0x249c   :  { %v1722_v60 = vsel %vm1721_vm12, %v2250_v42, %v1718_v3 }
0x249d   :  { %v1727_v5 = vsel %vm1724_vm8, %v1726_v52, %v1722_v60 }
0x249e   :  { %v1730_v8 = vmul.f32 %v1727_v5, %v1677_v55 }
0x24e3   :  { %v1733_v61 = vpop.permute.xlu2 %1732 }
0x24e4   :  { %v1735_v6 = vmul.f32 %v1733_v61, %v1727_v5 }
0x24e6   :  { %1737 = vrot.lane.b32.xlu1 %v1735_v6, %s2313_s29 }
0x2558   :  { %v1738_v9 = vpop.permute.xlu1 %1737 }
0x2559   :  { %v1740_v12 = vadd.f32 %v1738_v9, %v1730_v8 }
0x255b   :  { %2251 = vtanh.f32 %v1740_v12 }
0x2561   :  { %v2252_v14 = vpop.eup %2251 }
0x2562   :  { %1743 = vrot.lane.b32.xlu0 %v2252_v14, %s2310_s25 }
0x25d4   :  { %v1744_v15 = vpop.permute.xlu0 %1743 }
0x25d5   :  { %v1746_v30 = vmul.f32 %v1744_v15, %v1727_v5 }
0x25d7   :  { %1748 = vrot.lane.b32.xlu2 %v1746_v30, %s2313_s29 }
0x2631   :  { %v2833_v31 = vpop.permute.xlu2 %1748 }
0x2632   :  { %2092 = vmatmul.msk.f32.vlgmr.msrb.gmra.mxu1 %vm34_vm0, %v2833_v31 }
0x26af   :  { %v1769_v29 = vpop.f32.mrf.mxu1 }
0x26b0   :  { %v1772_v18 = vadd.f32 %v1769_v29, %v1434_v39 }
0x26b2   :  { %2253 = vtanh.f32 %v1772_v18  ;;  %v2093_v19 = vmul.f32 -1.442695, %v1772_v18 }
0x26b4   :  { %2255 = vpow2.f32 %v2093_v19 }
0x26b8   :  { %v2254_v36 = vpop.eup %2253 }
0x26b9   :  { %1795 = vrot.lane.b32.xlu1 %v2254_v36, %s2310_s25 }
0x26ba   :  { %v2256_v20 = vpop.eup %2255 }
0x26bb   :  { %v1776_v24 = vadd.f32 1.0, %v2256_v20 }
0x26bd   :  { %2257 = vrcp.f32 %v1776_v24  ;;  %v1788_v35 = vand.u32 2147483648, %v1776_v24  ;;  %vm1782_vm13 = vweird.f32 %v1776_v24  ;;  %v1786_v43 = vand.u32 2147483647, %v1776_v24 }
0x26bf   :  { %v1789_v58 = vor.u32 1.1754944e-38, %v1788_v35  ;;  %vm1787_vm15 = vcmp.eq.f32.partialorder %v1786_v43, 8.507059e+37 }
0x26c3   :  { %v2258_v22 = vpop.eup %2257 }
0x26c4   :  { %v1778_v45 = vmul.f32 %v2258_v22, %v1776_v24  ;;  %vm1783_vm9 = vweird.f32 %v2258_v22 }
0x26c5   :  { %vm1784_vm14 = vmor %vm1782_vm13, %vm1783_vm9 }
0x26c6   :  { %v1779_v41 = vsub.f32 1.0, %v1778_v45 }
0x26c8   :  { %v1780_v21 = vmul.f32 %v2258_v22, %v1779_v41 }
0x26ca   :  { %v1781_v33 = vadd.f32 %v2258_v22, %v1780_v21 }
0x26cc   :  { %v1785_v38 = vsel %vm1784_vm14, %v2258_v22, %v1781_v33 }
0x26cd   :  { %v1790_v13 = vsel %vm1787_vm15, %v1789_v58, %v1785_v38 }
0x26ce   :  { %v1793_v27 = vmul.f32 %v1790_v13, %v1740_v12 }
0x272b   :  { %v1796_v39 = vpop.permute.xlu1 %1795 }
0x272c   :  { %v1798_v26 = vmul.f32 %v1796_v39, %v1790_v13 }
0x272e   :  { %1800 = vrot.lane.b32.xlu0 %v1798_v26, %s2313_s29  ;;  %v2007_v26 = vld [vmem:[#allocation2 + $0x170] sm:$0xff] }
0x27a0   :  { %v1801_v28 = vpop.permute.xlu0 %1800 }
0x27a1   :  { %v1803_v37 = vadd.f32 %v1801_v28, %v1793_v27  ;;  %v2006_v27 = vld [vmem:[#allocation2 + $0x168] sm:$0xff]  ;;  %v2005_v28 = vld [vmem:[#allocation2 + $0x160] sm:$0xff] }
0x27a3   :  { %2259 = vtanh.f32 %v1803_v37 }
0x27a9   :  { %v2260_v46 = vpop.eup %2259 }
0x27aa   :  { %1806 = vrot.lane.b32.xlu2 %v2260_v46, %s2310_s25 }
0x2804   :  { %v1807_v44 = vpop.permute.xlu2 %1806 }
0x2805   :  { %v1809_v55 = vmul.f32 %v1807_v44, %v1790_v13  ;;  %v2008_v13 = vld [vmem:[#allocation2 + $0x178] sm:$0xff]  ;;  %v1950_v44 = vsel %vm690_vm1, %v2820_v17, %v2833_v31 }
0x2806   :  { %2028 = vmatpush.msrb.mxu0 %v2008_v13 }
0x2807   :  { %1811 = vrot.lane.b32.xlu1 %v1809_v55, %s2313_s29  ;;  %v1951_v55 = vsel %vm690_vm1, %v2833_v31, %v2820_v17 }
0x2808   :  { %2029 = vmatpush.msrb.mxu0 %v2007_v26  ;;  %v1965_v31 = vrot.slane %v1951_v55, 4 }
0x280a   :  { %2030 = vmatpush.msrb.mxu0 %v2006_v27 }
0x280c   :  { %2031 = vmatpush.msrb.mxu0 %v2005_v28 }
0x2879   :  { %v2846_v56 = vpop.permute.xlu1 %1811 }
0x287a   :  { %2094 = vmatmul.msk.f32.vlgmr.msrb.gmra.mxu2 %vm34_vm0, %v2846_v56  ;;  %v1947_v46 = vsel %vm690_vm1, %v2807_v34, %v2846_v56 }
0x28fd   :  { %v1832_v57 = vpop.f32.mrf.mxu2 }
0x28fe   :  { %v1835_v63 = vadd.f32 %v1832_v57, %v1435_v53 }
0x2900   :  { %2261 = vtanh.f32 %v1835_v63  ;;  %v2095_v10 = vmul.f32 -1.442695, %v1835_v63 }
0x2902   :  { %2263 = vpow2.f32 %v2095_v10  ;;  %v1959_v10 = vrot.slane %v1947_v46, 6 }
0x2906   :  { %v2262_v25 = vpop.eup %2261 }
0x2907   :  { %1858 = vrot.lane.b32.xlu0 %v2262_v25, %s2310_s25  ;;  %v1952_v25 = vsel %vm690_vm1, %v2846_v56, %v2807_v34  ;;  %v1981_v56 = vrot.slane %v1950_v44, 6 }
0x2908   :  { %v2264_v32 = vpop.eup %2263 }
0x2909   :  { %v1839_v11 = vadd.f32 1.0, %v2264_v32 }
0x290b   :  { %2265 = vrcp.f32 %v1839_v11  ;;  %v1851_v1 = vand.u32 2147483648, %v1839_v11  ;;  %vm1845_vm8 = vweird.f32 %v1839_v11  ;;  %v1849_v3 = vand.u32 2147483647, %v1839_v11 }
0x290d   :  { %v1852_v54 = vor.u32 1.1754944e-38, %v1851_v1  ;;  %vm1850_vm13 = vcmp.eq.f32.partialorder %v1849_v3, 8.507059e+37 }
0x2911   :  { %v2266_v51 = vpop.eup %2265 }
0x2912   :  { %v1841_v40 = vmul.f32 %v2266_v51, %v1839_v11  ;;  %vm1846_vm12 = vweird.f32 %v2266_v51  ;;  %v1962_v11 = vrot.slane %v1950_v44, 5 }
0x2913   :  { %vm1847_vm9 = vmor %vm1845_vm8, %vm1846_vm12 }
0x2914   :  { %v1842_v42 = vsub.f32 1.0, %v1841_v40 }
0x2916   :  { %v1843_v0 = vmul.f32 %v2266_v51, %v1842_v42  ;;  %v1979_v42 = vrot.slane %v1947_v46, 7 }
0x2918   :  { %v1844_v47 = vadd.f32 %v2266_v51, %v1843_v0 }
0x291a   :  { %v1848_v23 = vsel %vm1847_vm9, %v2266_v51, %v1844_v47  ;;  %v1968_v47 = vrot.slane %v1952_v25, 3 }
0x291b   :  { %v1853_v59 = vsel %vm1850_vm13, %v1852_v54, %v1848_v23  ;;  %v1983_v23 = vrot.slane %v1951_v55, 5 }
0x291c   :  { %v1856_v60 = vmul.f32 %v1853_v59, %v1803_v37 }
0x2979   :  { %v1859_v53 = vpop.permute.xlu0 %1858 }
0x297a   :  { %v1861_v4 = vmul.f32 %v1859_v53, %v1853_v59 }
0x297c   :  { %1863 = vrot.lane.b32.xlu2 %v1861_v4, %s2313_s29 }
0x29d6   :  { %v1864_v52 = vpop.permute.xlu2 %1863 }
0x29d7   :  { %v1866_v61 = vadd.f32 %v1864_v52, %v1856_v60  ;;  %v1985_v52 = vrot.slane %v1952_v25, 4 }
0x29d9   :  { %2267 = vtanh.f32 %v1866_v61 }
0x29df   :  { %v2268_v5 = vpop.eup %2267 }
0x29e0   :  { %1869 = vrot.lane.b32.xlu1 %v2268_v5, %s2310_s25 }
0x2a52   :  { %v1870_v6 = vpop.permute.xlu1 %1869 }
0x2a53   :  { %v1872_v8 = vmul.f32 %v1870_v6, %v1853_v59 }
0x2a55   :  { %1874 = vrot.lane.b32.xlu0 %v1872_v8, %s2313_s29 }
0x2ac7   :  { %v1875_v9 = vpop.permute.xlu0 %1874 }
0x2ac8   :  { %2096 = vmatmul.msk.f32.vlgmr.msra.gmra.mxu3 %vm34_vm0, %v1875_v9  ;;  %v1944_v37 = vsel %vm690_vm1, %v2794_v48, %v1875_v9  ;;  %v1953_v51 = vsel %vm690_vm1, %v1875_v9, %v2794_v48 }
0x2ac9   :  { %v1956_v57 = vrot.slane %v1944_v37, 7  ;;  %v1971_v54 = vrot.slane %v1953_v51, 2  ;;  %v1987_v6 = vrot.slane %v1953_v51, 3 }
0x2b4b   :  { %v1895_v12 = vpop.f32.mrf.mxu3 }
0x2b4c   :  { %v1898_v14 = vadd.f32 %v1895_v12, %v1436_v62 }
0x2b4e   :  { %2269 = vtanh.f32 %v1898_v14  ;;  %v2097_v30 = vmul.f32 -1.442695, %v1898_v14  ;;  %v2277_v14 = vld [vmem:[%s2923_s1 + $0x8] sm:$0xff] }
0x2b50   :  { %2271 = vpow2.f32 %v2097_v30 }
0x2b54   :  { %v2270_v15 = vpop.eup %2269 }
0x2b55   :  { %1921 = vrot.lane.b32.xlu2 %v2270_v15, %s2310_s25  ;;  %v2009_v15 = vperm.slane %v2277_v14, 4 }
0x2b56   :  { %v2272_v29 = vpop.eup %2271 }
0x2b57   :  { %v1902_v18 = vadd.f32 1.0, %v2272_v29 }
0x2b59   :  { %2273 = vrcp.f32 %v1902_v18  ;;  %v1914_v7 = vand.u32 2147483648, %v1902_v18  ;;  %vm1908_vm15 = vweird.f32 %v1902_v18  ;;  %v1912_v45 = vand.u32 2147483647, %v1902_v18 }
0x2b5b   :  { %v1915_v50 = vor.u32 1.1754944e-38, %v1914_v7  ;;  %vm1913_vm12 = vcmp.eq.f32.partialorder %v1912_v45, 8.507059e+37 }
0x2b5f   :  { %v2274_v36 = vpop.eup %2273 }
0x2b60   :  { %v1904_v19 = vmul.f32 %v2274_v36, %v1902_v18  ;;  %vm1909_vm14 = vweird.f32 %v2274_v36 }
0x2b61   :  { %vm1910_vm11 = vmor %vm1908_vm15, %vm1909_vm14 }
0x2b62   :  { %v1905_v20 = vsub.f32 1.0, %v1904_v19 }
0x2b64   :  { %v1906_v24 = vmul.f32 %v2274_v36, %v1905_v20 }
0x2b66   :  { %v1907_v22 = vadd.f32 %v2274_v36, %v1906_v24 }
0x2b68   :  { %v1911_v49 = vsel %vm1910_vm11, %v2274_v36, %v1907_v22 }
0x2b69   :  { %v1916_v41 = vsel %vm1913_vm12, %v1915_v50, %v1911_v49 }
0x2b6a   :  { %v1919_v33 = vmul.f32 %v1916_v41, %v1866_v61 }
0x2baf   :  { %v1922_v62 = vpop.permute.xlu2 %1921 }
0x2bb0   :  { %v1924_v21 = vmul.f32 %v1922_v62, %v1916_v41 }
0x2bb2   :  { %1926 = vrot.lane.b32.xlu1 %v1924_v21, %s2313_s29 }
0x2c24   :  { %v1927_v35 = vpop.permute.xlu1 %1926 }
0x2c25   :  { %v1929_v43 = vadd.f32 %v1927_v35, %v1919_v33 }
0x2c27   :  { %2275 = vtanh.f32 %v1929_v43 }
0x2c2d   :  { %v2276_v38 = vpop.eup %2275 }
0x2c2e   :  { %1932 = vrot.lane.b32.xlu0 %v2276_v38, %s2310_s25 }
0x2ca0   :  { %v1933_v58 = vpop.permute.xlu0 %1932 }
0x2ca1   :  { %v1935_v39 = vmul.f32 %v1933_v58, %v1916_v41 }
0x2ca3   :  { %1938 = vrot.lane.b32.xlu2 %v1935_v39, %s2313_s29 }
0x2cfd   :  { %v1939_v63 = vpop.permute.xlu2 %1938 }
0x2cfe   :  { %v1941_v32 = vsel %vm690_vm1, %v2786_v16, %v1939_v63  ;;  %v1954_v0 = vsel %vm690_vm1, %v1939_v63, %v2786_v16 }
0x2cff   :  { %v1977_v40 = vrot.slane %v1941_v32, 1  ;;  %v1991_v17 = vsel %vm732_vm10, %v1941_v32, %v1956_v57  ;;  %v1974_v59 = vrot.slane %v1954_v0, 1  ;;  %v1989_v9 = vrot.slane %v1954_v0, 2 }
0x2d00   :  { %v1992_v34 = vsel %vm1334_vm2, %v1991_v17, %v1959_v10 }
0x2d01   :  { %v1993_v1 = vsel %vm1336_vm3, %v1992_v34, %v1962_v11  ;;  %v1998_v3 = vsel %vm732_vm10, %v1977_v40, %v1944_v37 }
0x2d02   :  { %v1994_v48 = vsel %vm1338_vm4, %v1993_v1, %v1965_v31  ;;  %v1999_v53 = vsel %vm1334_vm2, %v1998_v3, %v1979_v42 }
0x2d03   :  { %v1995_v4 = vsel %vm1340_vm5, %v1994_v48, %v1968_v47  ;;  %v2000_v2 = vsel %vm1336_vm3, %v1999_v53, %v1981_v56 }
0x2d04   :  { %v1996_v16 = vsel %vm1342_vm6, %v1995_v4, %v1971_v54  ;;  %v2001_v60 = vsel %vm1338_vm4, %v2000_v2, %v1983_v23 }
0x2d05   :  { %v1997_v61 = vsel %vm1344_vm7, %v1996_v16, %v1974_v59  ;;  %v2002_v5 = vsel %vm1340_vm5, %v2001_v60, %v1985_v52 }
0x2d06   :  { %2098 = vmatmul.msk.f32.vlgmr.msrb.gmra.mxu0 %vm34_vm0, %v1997_v61  ;;  %v2003_v8 = vsel %vm1342_vm6, %v2002_v5, %v1987_v6 }
0x2d07   :  { %v2004_v12 = vsel %vm1344_vm7, %v2003_v8, %v1989_v9 }
0x2d0e   :  { %2099 = vmatmul.msk.f32.gmra.mxu0 %vm34_vm0, %v2004_v12 }
0x2d83   :  { %v2033_v30 = vpop.f32.mrf.mxu0 }
0x2d84   :  { %v2034_v29 = vadd.f32 %v2033_v30, %v2009_v15 }
0x2d86   :  { %2039 = vst [vmem:[%s2925_s3] sm:$0xff] %v2034_v29 }
0x2d8b   :  { %v2036_v18 = vpop.f32.mrf.mxu0 }
0x2d8c   :  { %v2037_v36 = vadd.f32 %v2036_v18, %v2009_v15 }
0x2d8e   :  { %2040 = vst [vmem:[%s2925_s3 + $0x8] sm:$0xff] %v2037_v36 }
0x2d8f   :  { %2045 = vsyncpa [#allocation3], 1 }

</bundles_post_ra>
